<compile_context>
chip_gen: v7x
topology: tpu7x:2x2x1
jax: 0.10.0
libtpu: 0.0.40
codegen_flags: <defaults>
</compile_context>

<pallas_src>
import jax
import jax.numpy as jnp
from jax.experimental import pallas as pl
from jax.experimental.pallas import tpu as pltpu

KERNEL_SIZE = 31
PAD = (KERNEL_SIZE - 1) // 2
LANE = 128
# Soft budget for the per-step pipelined blocks + f32 intermediates; sized so a
# tile that passes it also fits v7x's 64 MiB physical VMEM with weights + headroom.
VMEM_SOFT_BUDGET = 40 * 1024 * 1024
VMEM_LIMIT_BYTES = 48 * 1024 * 1024


def _round_up(n, m):
    return ((n + m - 1) // m) * m


def mlp_kernel(x_ref, w1_ref, b1_ref, w2_ref, b2_ref,
               pw1_w_ref, pw1_b_ref, dw_w_ref, bn_bias_ref,
               pw2_w_ref, pw2_b_ref, out_ref):
    Bt, T, Fp = x_ref.shape          # T is the TRUE (unpadded) sequence length
    Op = out_ref.shape[2]
    R = Bt * T

    # Pack the batch block into one lane-dense (Bt*T, C) slab (free view: the
    # trailing dim is 128-aligned, leading dims just merge).
    x = x_ref[...].reshape(R, Fp)                                       # bf16

    # fc1 + ReLU -> bf16 in a single expression so the f32 (R, Hp) slab is not
    # kept live (largest single temporary at production H).
    hb = jnp.maximum(
        jnp.dot(x, w1_ref[...], preferred_element_type=jnp.float32) + b1_ref[...],
        0.0,
    ).astype(jnp.bfloat16)

    # fc2 + ReLU
    yb = jnp.maximum(
        jnp.dot(hb, w2_ref[...], preferred_element_type=jnp.float32) + b2_ref[...],
        0.0,
    ).astype(jnp.bfloat16)

    # ---- ConvModule -------------------------------------------------------
    # pointwise conv 1 + GLU: one (R, 2*Op) MXU pass; value / gate are
    # 128-aligned static lane slices (Op % 128 == 0), so the split is free.
    z = jnp.dot(yb, pw1_w_ref[...], preferred_element_type=jnp.float32) + pw1_b_ref[...]
    a = z[:, :Op] * jax.nn.sigmoid(z[:, Op:])                           # (R, Op) f32

    # Depthwise conv1d (kernel=31, SAME padding, groups == channels): 31 static
    # XLU sublane rolls of the packed slab + boundary masks.  The mask uses the
    # TRUE T, so taps never read wrapped rows or rows of another batch element.
    # TODO(synk): if a bundle dump shows VALU-bound on v6e/v7x, do the tap
    #             mul/select in bf16 (keep acc in f32); keep f32 on v5e.
    t_in = jax.lax.broadcasted_iota(jnp.int32, (R, 1), 0) % T
    acc = jnp.zeros((R, Op), jnp.float32)
    for k in range(KERNEL_SIZE):                                        # static unroll
        d = k - PAD                                                     # tap offset
        shifted = a if d == 0 else pltpu.roll(a, shift=(-d) % R, axis=0)
        src_t = t_in + d
        valid = jnp.logical_and(src_t >= 0, src_t < T)
        acc = acc + jnp.where(valid, shifted, 0.0) * dw_w_ref[k:k + 1, :]

    # BatchNorm1d (inference): scale already folded into the taps, add bias.
    acc = acc + bn_bias_ref[...]
    # Swish
    acc = acc * jax.nn.sigmoid(acc)

    # pointwise conv 2 (+ bias).  Dropout is identity at inference.
    o = jnp.dot(acc.astype(jnp.bfloat16), pw2_w_ref[...],
                preferred_element_type=jnp.float32) + pw2_b_ref[...]
    out_ref[...] = o.reshape(Bt, T, Op).astype(out_ref.dtype)


def _block_vmem_bytes(R, Fp, Hp, Op):
    """Dominant per-step VMEM terms: double-buffered x/out blocks + f32 temporaries."""
    io = 2 * (R * Fp * 2) + 2 * (R * Op * 4)      # bf16 in, (<=f32) out, double-buffered
    interm = R * (Hp + 6 * Op) * 4                # h/z/a/acc-style f32 slabs
    return io + interm


def _pick_batch_block(B, T, Fp, Hp, Op, target_rows=512):
    """Largest divisor Bt of B such that Bt*T <= ~target_rows packed rows, the
    per-step VMEM budget (v7x-sized) holds, and (when B > 1) grid = B//Bt >= 2
    so both v7x TensorCores get work via the 'parallel' grid axis."""
    max_bt = max(1, B // 2) if B > 1 else 1
    best = 1
    for d in range(1, B + 1):
        if B % d:
            continue
        if d > max_bt:
            continue
        r = d * T
        if r > max(target_rows, T):
            continue
        if _block_vmem_bytes(r, Fp, Hp, Op) > VMEM_SOFT_BUDGET:
            continue
        best = d
    return best


def _pad2(a, rows, cols):
    r, c = a.shape
    return jnp.pad(a, ((0, rows - r), (0, cols - c)))


def _prep_params(p, O, Fp, Hp, Op):
    """One-time host-side zero-padding / folding of parameters (padded channels
    stay exactly zero through the whole fused pipeline)."""
    bf16 = jnp.bfloat16
    w1 = _pad2(p["w1"], Fp, Hp).astype(bf16)
    b1 = _pad2(p["b1"], 1, Hp)
    w2 = _pad2(p["w2"], Hp, Op).astype(bf16)
    b2 = _pad2(p["b2"], 1, Op)
    # GLU pointwise conv: single (Op, 2*Op) weight; value -> cols [0, Op),
    # gate -> cols [Op, 2*Op), each half zero-padded to a 128-aligned boundary.
    pw1_w = jnp.zeros((Op, 2 * Op), jnp.float32)
    pw1_w = pw1_w.at[:O, :O].set(p["pw1_w"][:, :O])
    pw1_w = pw1_w.at[:O, Op:Op + O].set(p["pw1_w"][:, O:])
    pw1_b = jnp.zeros((1, 2 * Op), jnp.float32)
    pw1_b = pw1_b.at[:, :O].set(p["pw1_b"][:, :O])
    pw1_b = pw1_b.at[:, Op:Op + O].set(p["pw1_b"][:, O:])
    # fold BN scale into the depthwise taps (depthwise conv has no bias)
    dw_w = _pad2(p["dw_w"] * p["bn_scale"], KERNEL_SIZE, Op)
    bn_bias = _pad2(p["bn_bias"], 1, Op)
    pw2_w = _pad2(p["pw2_w"], Op, Op).astype(bf16)
    pw2_b = _pad2(p["pw2_b"], 1, Op)
    return (w1, b1, w2, b2, pw1_w.astype(bf16), pw1_b, dw_w, bn_bias, pw2_w, pw2_b)


def _build_call(B, T, Fp, Hp, Op, Bt, out_dtype, single_buffer_weights):
    def rep(shape):
        # Full-array parameter block, replicated across the batch grid.  Constant
        # index_map blocks are double-buffered by default; single-buffer them to
        # free VMEM for larger Bt*T tiles (most valuable on v7x's 64 MiB VMEM).
        nd = len(shape)
        if single_buffer_weights:
            return pl.BlockSpec(shape, lambda b: (0,) * nd,
                                pipeline_mode=pl.Buffered(1))
        return pl.BlockSpec(shape, lambda b: (0,) * nd)

    grid_spec = pltpu.PrefetchScalarGridSpec(
        num_scalar_prefetch=0,
        grid=(B // Bt,),
        in_specs=[
            pl.BlockSpec((Bt, T, Fp), lambda b: (b, 0, 0)),   # x (bf16), pipelined
            rep((Fp, Hp)),                                    # w1
            rep((1, Hp)),                                     # b1
            rep((Hp, Op)),                                    # w2
            rep((1, Op)),                                     # b2
            rep((Op, 2 * Op)),                                # pw1 (value | gate)
            rep((1, 2 * Op)),                                 # pw1 bias
            rep((KERNEL_SIZE, Op)),                           # dw taps (BN scale folded)
            rep((1, Op)),                                     # bn bias
            rep((Op, Op)),                                    # pw2 weight
            rep((1, Op)),                                     # pw2 bias
        ],
        out_specs=pl.BlockSpec((Bt, T, Op), lambda b: (b, 0, 0)),
    )
    return pl.pallas_call(
        mlp_kernel,
        out_shape=jax.ShapeDtypeStruct((B, T, Op), out_dtype),
        grid_spec=grid_spec,
        compiler_params=pltpu.CompilerParams(
            dimension_semantics=("parallel",),
            # Explicit: above the 16 MiB (v5e) / 32 MiB (v6e, v7x) scoped
            # defaults, inside v7x's 64 MiB physical VMEM.
            vmem_limit_bytes=VMEM_LIMIT_BYTES,
        ),
    )


def mlp_forward(x, p, out_dtype=jnp.float32):
    # out_dtype=jnp.bfloat16 halves output HBM writeback if the consumer tolerates it.
    B, T, F = x.shape
    H = p["w1"].shape[1]
    O = p["pw2_w"].shape[1]
    Fp, Hp, Op = (_round_up(d, LANE) for d in (F, H, O))
    Bt = _pick_batch_block(B, T, Fp, Hp, Op)

    x_p = jnp.pad(x, ((0, 0), (0, 0), (0, Fp - F))).astype(jnp.bfloat16)
    params = _prep_params(p, O, Fp, Hp, Op)

    try:
        out = _build_call(B, T, Fp, Hp, Op, Bt, out_dtype, True)(x_p, *params)
    except Exception:
        # Fallback for jax builds without BlockSpec pipeline_mode support:
        # identical kernel, weights default (double) buffered.
        out = _build_call(B, T, Fp, Hp, Op, Bt, out_dtype, False)(x_p, *params)

    # Drop the channel padding (padded lanes are exactly zero).
    return out[..., :O]


def mlp_reference(x, p):
    """Pure-JAX f32 reference mirroring the PyTorch forward (inference mode)."""
    O = p["pw2_w"].shape[1]
    T = x.shape[1]
    h = jax.nn.relu(x @ p["w1"] + p["b1"])
    y = jax.nn.relu(h @ p["w2"] + p["b2"])
    z = y @ p["pw1_w"] + p["pw1_b"]
    a = z[..., :O] * jax.nn.sigmoid(z[..., O:])
    ap = jnp.pad(a, ((0, 0), (PAD, PAD), (0, 0)))
    acc = jnp.zeros_like(a)
    for k in range(KERNEL_SIZE):
        acc = acc + ap[:, k:k + T, :] * p["dw_w"][k]
    acc = acc * p["bn_scale"] + p["bn_bias"]
    acc = acc * jax.nn.sigmoid(acc)
    return acc @ p["pw2_w"] + p["pw2_b"]


def init_params(key, input_dim, hidden_dim, output_dim):
    ks = jax.random.split(key, 8)
    n = lambda k, shape, s=0.1: (s * jax.random.normal(k, shape)).astype(jnp.float32)
    eps = 1e-5
    # bn_scale/bn_bias are the inference-folded BN params:
    #   scale = gamma / sqrt(running_var + eps), bias = beta - running_mean * scale.
    # Here BN is at default init (gamma=1, beta=0, mean=0, var=1).
    return {
        # nn.Linear weights stored pre-transposed as (in, out)
        "w1": n(ks[0], (input_dim, hidden_dim)),
        "b1": n(ks[1], (1, hidden_dim)),
        "w2": n(ks[2], (hidden_dim, output_dim)),
        "b2": n(ks[3], (1, output_dim)),
        # pointwise conv1d weights (out, in, 1) stored as (in, out)
        "pw1_w": n(ks[4], (output_dim, 2 * output_dim)),
        "pw1_b": n(ks[5], (1, 2 * output_dim)),
        # depthwise conv1d weight (C, 1, K) stored as (K, C)
        "dw_w": n(ks[6], (KERNEL_SIZE, output_dim)),
        "bn_scale": jnp.full((1, output_dim), 1.0 / jnp.sqrt(1.0 + eps), jnp.float32),
        "bn_bias": jnp.zeros((1, output_dim), jnp.float32),
        "pw2_w": n(ks[7], (output_dim, output_dim)),
        "pw2_b": jnp.zeros((1, output_dim), jnp.float32),
    }


if __name__ == "__main__":
    B, T, input_dim, hidden_dim, output_dim = 2, 16, 8, 32, 16

    key = jax.random.PRNGKey(0)
    k_x, k_p = jax.random.split(key)
    x = jax.random.normal(k_x, (B, T, input_dim), dtype=jnp.float32)
    params = init_params(k_p, input_dim, hidden_dim, output_dim)

    out = mlp_forward(x, params)
    out = jax.block_until_ready(out)

    ref = mlp_reference(x, params)
    assert out.shape == (B, T, output_dim)
    # bf16 matmul operands vs f32 reference -> small quantization noise.
    assert jnp.allclose(out, ref, rtol=2e-2, atol=2e-3), "mismatch vs JAX reference"

    print("KERNEL_OK")
</pallas_src>

<mosaic_0001>
module attributes {stable_mosaic.version = 11 : i64} {
  func.func @mlp_kernel(%arg0: i32, %arg1: memref<1x16x128xbf16, #tpu.memory_space<vmem>>, %arg2: memref<128x128xbf16, #tpu.memory_space<vmem>>, %arg3: memref<1x128xf32, #tpu.memory_space<vmem>>, %arg4: memref<128x128xbf16, #tpu.memory_space<vmem>>, %arg5: memref<1x128xf32, #tpu.memory_space<vmem>>, %arg6: memref<128x256xbf16, #tpu.memory_space<vmem>>, %arg7: memref<1x256xf32, #tpu.memory_space<vmem>>, %arg8: memref<31x128xf32, #tpu.memory_space<vmem>>, %arg9: memref<1x128xf32, #tpu.memory_space<vmem>>, %arg10: memref<128x128xbf16, #tpu.memory_space<vmem>>, %arg11: memref<1x128xf32, #tpu.memory_space<vmem>>, %arg12: memref<1x16x128xf32, #tpu.memory_space<vmem>>) attributes {dimension_semantics = [#tpu.dimension_semantics<parallel>], iteration_bounds = array<i64: 2>, scalar_prefetch = 0 : i64, scratch_operands = 0 : i64, tpu.core_type = #tpu.core_type<tc>, window_params = [{transform_indices = @transform_0, window_bounds = array<i64: 1, 16, 128>}, {pipeline_mode = #tpu.pipeline_mode<synchronous>, transform_indices = @transform_1, window_bounds = array<i64: 128, 128>}, {pipeline_mode = #tpu.pipeline_mode<synchronous>, transform_indices = @transform_2, window_bounds = array<i64: 1, 128>}, {pipeline_mode = #tpu.pipeline_mode<synchronous>, transform_indices = @transform_3, window_bounds = array<i64: 128, 128>}, {pipeline_mode = #tpu.pipeline_mode<synchronous>, transform_indices = @transform_4, window_bounds = array<i64: 1, 128>}, {pipeline_mode = #tpu.pipeline_mode<synchronous>, transform_indices = @transform_5, window_bounds = array<i64: 128, 256>}, {pipeline_mode = #tpu.pipeline_mode<synchronous>, transform_indices = @transform_6, window_bounds = array<i64: 1, 256>}, {pipeline_mode = #tpu.pipeline_mode<synchronous>, transform_indices = @transform_7, window_bounds = array<i64: 31, 128>}, {pipeline_mode = #tpu.pipeline_mode<synchronous>, transform_indices = @transform_8, window_bounds = array<i64: 1, 128>}, {pipeline_mode = #tpu.pipeline_mode<synchronous>, transform_indices = @transform_9, window_bounds = array<i64: 128, 128>}, {pipeline_mode = #tpu.pipeline_mode<synchronous>, transform_indices = @transform_10, window_bounds = array<i64: 1, 128>}, {transform_indices = @transform_11, window_bounds = array<i64: 1, 16, 128>}]} {
    %c0 = arith.constant 0 : index
    %c0_0 = arith.constant 0 : index
    %c0_1 = arith.constant 0 : index
    %0 = vector.load %arg1[%c0, %c0_0, %c0_1] : memref<1x16x128xbf16, #tpu.memory_space<vmem>>, vector<1x16x128xbf16>
    %1 = vector.shape_cast %0 : vector<1x16x128xbf16> to vector<16x128xbf16>
    %c0_2 = arith.constant 0 : index
    %c0_3 = arith.constant 0 : index
    %2 = vector.load %arg2[%c0_2, %c0_3] : memref<128x128xbf16, #tpu.memory_space<vmem>>, vector<128x128xbf16>
    %cst = arith.constant dense<0.000000e+00> : vector<16x128xf32>
    %3 = tpu.matmul %1, %2, %cst {dimension_numbers = #tpu.dot_dimension_numbers<[1], [0], [0], [1], [0, 0, 1, 1], [], []>} : vector<16x128xbf16>, vector<128x128xbf16>, vector<16x128xf32> -> vector<16x128xf32>
    %c0_4 = arith.constant 0 : index
    %c0_5 = arith.constant 0 : index
    %4 = vector.load %arg3[%c0_4, %c0_5] : memref<1x128xf32, #tpu.memory_space<vmem>>, vector<1x128xf32>
    %5 = vector.broadcast %4 : vector<1x128xf32> to vector<16x128xf32>
    %6 = arith.addf %3, %5 : vector<16x128xf32>
    %cst_6 = arith.constant 0.000000e+00 : f32
    %7 = vector.broadcast %cst_6 : f32 to vector<16x128xf32>
    %8 = arith.maximumf %6, %7 : vector<16x128xf32>
    %9 = arith.truncf %8 : vector<16x128xf32> to vector<16x128xbf16>
    %c0_7 = arith.constant 0 : index
    %c0_8 = arith.constant 0 : index
    %10 = vector.load %arg4[%c0_7, %c0_8] : memref<128x128xbf16, #tpu.memory_space<vmem>>, vector<128x128xbf16>
    %cst_9 = arith.constant dense<0.000000e+00> : vector<16x128xf32>
    %11 = tpu.matmul %9, %10, %cst_9 {dimension_numbers = #tpu.dot_dimension_numbers<[1], [0], [0], [1], [0, 0, 1, 1], [], []>} : vector<16x128xbf16>, vector<128x128xbf16>, vector<16x128xf32> -> vector<16x128xf32>
    %c0_10 = arith.constant 0 : index
    %c0_11 = arith.constant 0 : index
    %12 = vector.load %arg5[%c0_10, %c0_11] : memref<1x128xf32, #tpu.memory_space<vmem>>, vector<1x128xf32>
    %13 = vector.broadcast %12 : vector<1x128xf32> to vector<16x128xf32>
    %14 = arith.addf %11, %13 : vector<16x128xf32>
    %cst_12 = arith.constant 0.000000e+00 : f32
    %15 = vector.broadcast %cst_12 : f32 to vector<16x128xf32>
    %16 = arith.maximumf %14, %15 : vector<16x128xf32>
    %17 = arith.truncf %16 : vector<16x128xf32> to vector<16x128xbf16>
    %c0_13 = arith.constant 0 : index
    %c0_14 = arith.constant 0 : index
    %18 = vector.load %arg6[%c0_13, %c0_14] : memref<128x256xbf16, #tpu.memory_space<vmem>>, vector<128x256xbf16>
    %cst_15 = arith.constant dense<0.000000e+00> : vector<16x256xf32>
    %19 = tpu.matmul %17, %18, %cst_15 {dimension_numbers = #tpu.dot_dimension_numbers<[1], [0], [0], [1], [0, 0, 1, 1], [], []>} : vector<16x128xbf16>, vector<128x256xbf16>, vector<16x256xf32> -> vector<16x256xf32>
    %c0_16 = arith.constant 0 : index
    %c0_17 = arith.constant 0 : index
    %20 = vector.load %arg7[%c0_16, %c0_17] : memref<1x256xf32, #tpu.memory_space<vmem>>, vector<1x256xf32>
    %21 = vector.broadcast %20 : vector<1x256xf32> to vector<16x256xf32>
    %22 = arith.addf %19, %21 : vector<16x256xf32>
    %23 = vector.extract_strided_slice %22 {offsets = [0, 0], sizes = [16, 128], strides = [1, 1]} : vector<16x256xf32> to vector<16x128xf32>
    %24 = vector.extract_strided_slice %22 {offsets = [0, 128], sizes = [16, 128], strides = [1, 1]} : vector<16x256xf32> to vector<16x128xf32>
    %25 = arith.negf %24 : vector<16x128xf32>
    %26 = math.exp %25 : vector<16x128xf32>
    %cst_18 = arith.constant 1.000000e+00 : f32
    %27 = vector.broadcast %cst_18 : f32 to vector<16x128xf32>
    %28 = arith.addf %27, %26 : vector<16x128xf32>
    %29 = arith.divf %27, %28 : vector<16x128xf32>
    %30 = arith.mulf %23, %29 : vector<16x128xf32>
    %31 = tpu.iota {dimensions = array<i32: 0>} : vector<16x1xi32>
    %c16_i32 = arith.constant 16 : i32
    %c0_i32 = arith.constant 0 : i32
    %32 = arith.cmpi eq, %c16_i32, %c0_i32 : i32
    %c1_i32 = arith.constant 1 : i32
    %33 = arith.select %32, %c1_i32, %c16_i32 : i32
    %34 = vector.broadcast %33 : i32 to vector<16x1xi32>
    %35 = arith.remsi %31, %34 : vector<16x1xi32>
    %c0_i32_19 = arith.constant 0 : i32
    %36 = vector.broadcast %c0_i32_19 : i32 to vector<16x1xi32>
    %37 = arith.cmpi ne, %35, %36 : vector<16x1xi32>
    %c0_i32_20 = arith.constant 0 : i32
    %38 = vector.broadcast %c0_i32_20 : i32 to vector<16x1xi32>
    %39 = arith.cmpi slt, %35, %38 : vector<16x1xi32>
    %c0_i32_21 = arith.constant 0 : i32
    %40 = arith.cmpi slt, %33, %c0_i32_21 : i32
    %41 = vector.broadcast %40 : i1 to vector<16x1xi1>
    %42 = vector.broadcast %41 : vector<16x1xi1> to vector<16x1xi1>
    %43 = arith.xori %39, %42 : vector<16x1xi1>
    %44 = arith.andi %43, %37 : vector<16x1xi1>
    %45 = vector.broadcast %33 : i32 to vector<16x1xi32>
    %46 = arith.addi %35, %45 : vector<16x1xi32>
    %47 = arith.select %44, %46, %35 : vector<16x1xi1>, vector<16x1xi32>
    %cst_22 = arith.constant 0.000000e+00 : f32
    %48 = vector.broadcast %cst_22 : f32 to vector<16x128xf32>
    %c15_i32 = arith.constant 15 : i32
    %49 = tpu.dynamic_rotate %30 by %c15_i32 dim 0 : vector<16x128xf32>, i32 -> vector<16x128xf32>
    %c-15_i32 = arith.constant -15 : i32
    %50 = vector.broadcast %c-15_i32 : i32 to vector<16x1xi32>
    %51 = arith.addi %47, %50 : vector<16x1xi32>
    %c0_i32_23 = arith.constant 0 : i32
    %52 = vector.broadcast %c0_i32_23 : i32 to vector<16x1xi32>
    %53 = arith.cmpi sge, %51, %52 : vector<16x1xi32>
    %c16_i32_24 = arith.constant 16 : i32
    %54 = vector.broadcast %c16_i32_24 : i32 to vector<16x1xi32>
    %55 = arith.cmpi slt, %51, %54 : vector<16x1xi32>
    %56 = arith.andi %53, %55 : vector<16x1xi1>
    %cst_25 = arith.constant 0.000000e+00 : f32
    %57 = vector.shape_cast %56 : vector<16x1xi1> to vector<16x1xi1>
    %58 = vector.broadcast %57 : vector<16x1xi1> to vector<16x128xi1>
    %59 = vector.broadcast %cst_25 : f32 to vector<16x128xf32>
    %60 = arith.select %58, %49, %59 : vector<16x128xi1>, vector<16x128xf32>
    %c0_26 = arith.constant 0 : index
    %c0_27 = arith.constant 0 : index
    %61 = vector.load %arg8[%c0_26, %c0_27] : memref<31x128xf32, #tpu.memory_space<vmem>>, vector<1x128xf32>
    %62 = vector.broadcast %61 : vector<1x128xf32> to vector<16x128xf32>
    %63 = arith.mulf %60, %62 : vector<16x128xf32>
    %64 = arith.addf %48, %63 : vector<16x128xf32>
    %c14_i32 = arith.constant 14 : i32
    %65 = tpu.dynamic_rotate %30 by %c14_i32 dim 0 : vector<16x128xf32>, i32 -> vector<16x128xf32>
    %c-14_i32 = arith.constant -14 : i32
    %66 = vector.broadcast %c-14_i32 : i32 to vector<16x1xi32>
    %67 = arith.addi %47, %66 : vector<16x1xi32>
    %c0_i32_28 = arith.constant 0 : i32
    %68 = vector.broadcast %c0_i32_28 : i32 to vector<16x1xi32>
    %69 = arith.cmpi sge, %67, %68 : vector<16x1xi32>
    %c16_i32_29 = arith.constant 16 : i32
    %70 = vector.broadcast %c16_i32_29 : i32 to vector<16x1xi32>
    %71 = arith.cmpi slt, %67, %70 : vector<16x1xi32>
    %72 = arith.andi %69, %71 : vector<16x1xi1>
    %cst_30 = arith.constant 0.000000e+00 : f32
    %73 = vector.shape_cast %72 : vector<16x1xi1> to vector<16x1xi1>
    %74 = vector.broadcast %73 : vector<16x1xi1> to vector<16x128xi1>
    %75 = vector.broadcast %cst_30 : f32 to vector<16x128xf32>
    %76 = arith.select %74, %65, %75 : vector<16x128xi1>, vector<16x128xf32>
    %c1 = arith.constant 1 : index
    %c0_31 = arith.constant 0 : index
    %77 = vector.load %arg8[%c1, %c0_31] : memref<31x128xf32, #tpu.memory_space<vmem>>, vector<1x128xf32>
    %78 = vector.broadcast %77 : vector<1x128xf32> to vector<16x128xf32>
    %79 = arith.mulf %76, %78 : vector<16x128xf32>
    %80 = arith.addf %64, %79 : vector<16x128xf32>
    %c13_i32 = arith.constant 13 : i32
    %81 = tpu.dynamic_rotate %30 by %c13_i32 dim 0 : vector<16x128xf32>, i32 -> vector<16x128xf32>
    %c-13_i32 = arith.constant -13 : i32
    %82 = vector.broadcast %c-13_i32 : i32 to vector<16x1xi32>
    %83 = arith.addi %47, %82 : vector<16x1xi32>
    %c0_i32_32 = arith.constant 0 : i32
    %84 = vector.broadcast %c0_i32_32 : i32 to vector<16x1xi32>
    %85 = arith.cmpi sge, %83, %84 : vector<16x1xi32>
    %c16_i32_33 = arith.constant 16 : i32
    %86 = vector.broadcast %c16_i32_33 : i32 to vector<16x1xi32>
    %87 = arith.cmpi slt, %83, %86 : vector<16x1xi32>
    %88 = arith.andi %85, %87 : vector<16x1xi1>
    %cst_34 = arith.constant 0.000000e+00 : f32
    %89 = vector.shape_cast %88 : vector<16x1xi1> to vector<16x1xi1>
    %90 = vector.broadcast %89 : vector<16x1xi1> to vector<16x128xi1>
    %91 = vector.broadcast %cst_34 : f32 to vector<16x128xf32>
    %92 = arith.select %90, %81, %91 : vector<16x128xi1>, vector<16x128xf32>
    %c2 = arith.constant 2 : index
    %c0_35 = arith.constant 0 : index
    %93 = vector.load %arg8[%c2, %c0_35] : memref<31x128xf32, #tpu.memory_space<vmem>>, vector<1x128xf32>
    %94 = vector.broadcast %93 : vector<1x128xf32> to vector<16x128xf32>
    %95 = arith.mulf %92, %94 : vector<16x128xf32>
    %96 = arith.addf %80, %95 : vector<16x128xf32>
    %c12_i32 = arith.constant 12 : i32
    %97 = tpu.dynamic_rotate %30 by %c12_i32 dim 0 : vector<16x128xf32>, i32 -> vector<16x128xf32>
    %c-12_i32 = arith.constant -12 : i32
    %98 = vector.broadcast %c-12_i32 : i32 to vector<16x1xi32>
    %99 = arith.addi %47, %98 : vector<16x1xi32>
    %c0_i32_36 = arith.constant 0 : i32
    %100 = vector.broadcast %c0_i32_36 : i32 to vector<16x1xi32>
    %101 = arith.cmpi sge, %99, %100 : vector<16x1xi32>
    %c16_i32_37 = arith.constant 16 : i32
    %102 = vector.broadcast %c16_i32_37 : i32 to vector<16x1xi32>
    %103 = arith.cmpi slt, %99, %102 : vector<16x1xi32>
    %104 = arith.andi %101, %103 : vector<16x1xi1>
    %cst_38 = arith.constant 0.000000e+00 : f32
    %105 = vector.shape_cast %104 : vector<16x1xi1> to vector<16x1xi1>
    %106 = vector.broadcast %105 : vector<16x1xi1> to vector<16x128xi1>
    %107 = vector.broadcast %cst_38 : f32 to vector<16x128xf32>
    %108 = arith.select %106, %97, %107 : vector<16x128xi1>, vector<16x128xf32>
    %c3 = arith.constant 3 : index
    %c0_39 = arith.constant 0 : index
    %109 = vector.load %arg8[%c3, %c0_39] : memref<31x128xf32, #tpu.memory_space<vmem>>, vector<1x128xf32>
    %110 = vector.broadcast %109 : vector<1x128xf32> to vector<16x128xf32>
    %111 = arith.mulf %108, %110 : vector<16x128xf32>
    %112 = arith.addf %96, %111 : vector<16x128xf32>
    %c11_i32 = arith.constant 11 : i32
    %113 = tpu.dynamic_rotate %30 by %c11_i32 dim 0 : vector<16x128xf32>, i32 -> vector<16x128xf32>
    %c-11_i32 = arith.constant -11 : i32
    %114 = vector.broadcast %c-11_i32 : i32 to vector<16x1xi32>
    %115 = arith.addi %47, %114 : vector<16x1xi32>
    %c0_i32_40 = arith.constant 0 : i32
    %116 = vector.broadcast %c0_i32_40 : i32 to vector<16x1xi32>
    %117 = arith.cmpi sge, %115, %116 : vector<16x1xi32>
    %c16_i32_41 = arith.constant 16 : i32
    %118 = vector.broadcast %c16_i32_41 : i32 to vector<16x1xi32>
    %119 = arith.cmpi slt, %115, %118 : vector<16x1xi32>
    %120 = arith.andi %117, %119 : vector<16x1xi1>
    %cst_42 = arith.constant 0.000000e+00 : f32
    %121 = vector.shape_cast %120 : vector<16x1xi1> to vector<16x1xi1>
    %122 = vector.broadcast %121 : vector<16x1xi1> to vector<16x128xi1>
    %123 = vector.broadcast %cst_42 : f32 to vector<16x128xf32>
    %124 = arith.select %122, %113, %123 : vector<16x128xi1>, vector<16x128xf32>
    %c4 = arith.constant 4 : index
    %c0_43 = arith.constant 0 : index
    %125 = vector.load %arg8[%c4, %c0_43] : memref<31x128xf32, #tpu.memory_space<vmem>>, vector<1x128xf32>
    %126 = vector.broadcast %125 : vector<1x128xf32> to vector<16x128xf32>
    %127 = arith.mulf %124, %126 : vector<16x128xf32>
    %128 = arith.addf %112, %127 : vector<16x128xf32>
    %c10_i32 = arith.constant 10 : i32
    %129 = tpu.dynamic_rotate %30 by %c10_i32 dim 0 : vector<16x128xf32>, i32 -> vector<16x128xf32>
    %c-10_i32 = arith.constant -10 : i32
    %130 = vector.broadcast %c-10_i32 : i32 to vector<16x1xi32>
    %131 = arith.addi %47, %130 : vector<16x1xi32>
    %c0_i32_44 = arith.constant 0 : i32
    %132 = vector.broadcast %c0_i32_44 : i32 to vector<16x1xi32>
    %133 = arith.cmpi sge, %131, %132 : vector<16x1xi32>
    %c16_i32_45 = arith.constant 16 : i32
    %134 = vector.broadcast %c16_i32_45 : i32 to vector<16x1xi32>
    %135 = arith.cmpi slt, %131, %134 : vector<16x1xi32>
    %136 = arith.andi %133, %135 : vector<16x1xi1>
    %cst_46 = arith.constant 0.000000e+00 : f32
    %137 = vector.shape_cast %136 : vector<16x1xi1> to vector<16x1xi1>
    %138 = vector.broadcast %137 : vector<16x1xi1> to vector<16x128xi1>
    %139 = vector.broadcast %cst_46 : f32 to vector<16x128xf32>
    %140 = arith.select %138, %129, %139 : vector<16x128xi1>, vector<16x128xf32>
    %c5 = arith.constant 5 : index
    %c0_47 = arith.constant 0 : index
    %141 = vector.load %arg8[%c5, %c0_47] : memref<31x128xf32, #tpu.memory_space<vmem>>, vector<1x128xf32>
    %142 = vector.broadcast %141 : vector<1x128xf32> to vector<16x128xf32>
    %143 = arith.mulf %140, %142 : vector<16x128xf32>
    %144 = arith.addf %128, %143 : vector<16x128xf32>
    %c9_i32 = arith.constant 9 : i32
    %145 = tpu.dynamic_rotate %30 by %c9_i32 dim 0 : vector<16x128xf32>, i32 -> vector<16x128xf32>
    %c-9_i32 = arith.constant -9 : i32
    %146 = vector.broadcast %c-9_i32 : i32 to vector<16x1xi32>
    %147 = arith.addi %47, %146 : vector<16x1xi32>
    %c0_i32_48 = arith.constant 0 : i32
    %148 = vector.broadcast %c0_i32_48 : i32 to vector<16x1xi32>
    %149 = arith.cmpi sge, %147, %148 : vector<16x1xi32>
    %c16_i32_49 = arith.constant 16 : i32
    %150 = vector.broadcast %c16_i32_49 : i32 to vector<16x1xi32>
    %151 = arith.cmpi slt, %147, %150 : vector<16x1xi32>
    %152 = arith.andi %149, %151 : vector<16x1xi1>
    %cst_50 = arith.constant 0.000000e+00 : f32
    %153 = vector.shape_cast %152 : vector<16x1xi1> to vector<16x1xi1>
    %154 = vector.broadcast %153 : vector<16x1xi1> to vector<16x128xi1>
    %155 = vector.broadcast %cst_50 : f32 to vector<16x128xf32>
    %156 = arith.select %154, %145, %155 : vector<16x128xi1>, vector<16x128xf32>
    %c6 = arith.constant 6 : index
    %c0_51 = arith.constant 0 : index
    %157 = vector.load %arg8[%c6, %c0_51] : memref<31x128xf32, #tpu.memory_space<vmem>>, vector<1x128xf32>
    %158 = vector.broadcast %157 : vector<1x128xf32> to vector<16x128xf32>
    %159 = arith.mulf %156, %158 : vector<16x128xf32>
    %160 = arith.addf %144, %159 : vector<16x128xf32>
    %c8_i32 = arith.constant 8 : i32
    %161 = tpu.dynamic_rotate %30 by %c8_i32 dim 0 : vector<16x128xf32>, i32 -> vector<16x128xf32>
    %c-8_i32 = arith.constant -8 : i32
    %162 = vector.broadcast %c-8_i32 : i32 to vector<16x1xi32>
    %163 = arith.addi %47, %162 : vector<16x1xi32>
    %c0_i32_52 = arith.constant 0 : i32
    %164 = vector.broadcast %c0_i32_52 : i32 to vector<16x1xi32>
    %165 = arith.cmpi sge, %163, %164 : vector<16x1xi32>
    %c16_i32_53 = arith.constant 16 : i32
    %166 = vector.broadcast %c16_i32_53 : i32 to vector<16x1xi32>
    %167 = arith.cmpi slt, %163, %166 : vector<16x1xi32>
    %168 = arith.andi %165, %167 : vector<16x1xi1>
    %cst_54 = arith.constant 0.000000e+00 : f32
    %169 = vector.shape_cast %168 : vector<16x1xi1> to vector<16x1xi1>
    %170 = vector.broadcast %169 : vector<16x1xi1> to vector<16x128xi1>
    %171 = vector.broadcast %cst_54 : f32 to vector<16x128xf32>
    %172 = arith.select %170, %161, %171 : vector<16x128xi1>, vector<16x128xf32>
    %c7 = arith.constant 7 : index
    %c0_55 = arith.constant 0 : index
    %173 = vector.load %arg8[%c7, %c0_55] : memref<31x128xf32, #tpu.memory_space<vmem>>, vector<1x128xf32>
    %174 = vector.broadcast %173 : vector<1x128xf32> to vector<16x128xf32>
    %175 = arith.mulf %172, %174 : vector<16x128xf32>
    %176 = arith.addf %160, %175 : vector<16x128xf32>
    %c7_i32 = arith.constant 7 : i32
    %177 = tpu.dynamic_rotate %30 by %c7_i32 dim 0 : vector<16x128xf32>, i32 -> vector<16x128xf32>
    %c-7_i32 = arith.constant -7 : i32
    %178 = vector.broadcast %c-7_i32 : i32 to vector<16x1xi32>
    %179 = arith.addi %47, %178 : vector<16x1xi32>
    %c0_i32_56 = arith.constant 0 : i32
    %180 = vector.broadcast %c0_i32_56 : i32 to vector<16x1xi32>
    %181 = arith.cmpi sge, %179, %180 : vector<16x1xi32>
    %c16_i32_57 = arith.constant 16 : i32
    %182 = vector.broadcast %c16_i32_57 : i32 to vector<16x1xi32>
    %183 = arith.cmpi slt, %179, %182 : vector<16x1xi32>
    %184 = arith.andi %181, %183 : vector<16x1xi1>
    %cst_58 = arith.constant 0.000000e+00 : f32
    %185 = vector.shape_cast %184 : vector<16x1xi1> to vector<16x1xi1>
    %186 = vector.broadcast %185 : vector<16x1xi1> to vector<16x128xi1>
    %187 = vector.broadcast %cst_58 : f32 to vector<16x128xf32>
    %188 = arith.select %186, %177, %187 : vector<16x128xi1>, vector<16x128xf32>
    %c8 = arith.constant 8 : index
    %c0_59 = arith.constant 0 : index
    %189 = vector.load %arg8[%c8, %c0_59] : memref<31x128xf32, #tpu.memory_space<vmem>>, vector<1x128xf32>
    %190 = vector.broadcast %189 : vector<1x128xf32> to vector<16x128xf32>
    %191 = arith.mulf %188, %190 : vector<16x128xf32>
    %192 = arith.addf %176, %191 : vector<16x128xf32>
    %c6_i32 = arith.constant 6 : i32
    %193 = tpu.dynamic_rotate %30 by %c6_i32 dim 0 : vector<16x128xf32>, i32 -> vector<16x128xf32>
    %c-6_i32 = arith.constant -6 : i32
    %194 = vector.broadcast %c-6_i32 : i32 to vector<16x1xi32>
    %195 = arith.addi %47, %194 : vector<16x1xi32>
    %c0_i32_60 = arith.constant 0 : i32
    %196 = vector.broadcast %c0_i32_60 : i32 to vector<16x1xi32>
    %197 = arith.cmpi sge, %195, %196 : vector<16x1xi32>
    %c16_i32_61 = arith.constant 16 : i32
    %198 = vector.broadcast %c16_i32_61 : i32 to vector<16x1xi32>
    %199 = arith.cmpi slt, %195, %198 : vector<16x1xi32>
    %200 = arith.andi %197, %199 : vector<16x1xi1>
    %cst_62 = arith.constant 0.000000e+00 : f32
    %201 = vector.shape_cast %200 : vector<16x1xi1> to vector<16x1xi1>
    %202 = vector.broadcast %201 : vector<16x1xi1> to vector<16x128xi1>
    %203 = vector.broadcast %cst_62 : f32 to vector<16x128xf32>
    %204 = arith.select %202, %193, %203 : vector<16x128xi1>, vector<16x128xf32>
    %c9 = arith.constant 9 : index
    %c0_63 = arith.constant 0 : index
    %205 = vector.load %arg8[%c9, %c0_63] : memref<31x128xf32, #tpu.memory_space<vmem>>, vector<1x128xf32>
    %206 = vector.broadcast %205 : vector<1x128xf32> to vector<16x128xf32>
    %207 = arith.mulf %204, %206 : vector<16x128xf32>
    %208 = arith.addf %192, %207 : vector<16x128xf32>
    %c5_i32 = arith.constant 5 : i32
    %209 = tpu.dynamic_rotate %30 by %c5_i32 dim 0 : vector<16x128xf32>, i32 -> vector<16x128xf32>
    %c-5_i32 = arith.constant -5 : i32
    %210 = vector.broadcast %c-5_i32 : i32 to vector<16x1xi32>
    %211 = arith.addi %47, %210 : vector<16x1xi32>
    %c0_i32_64 = arith.constant 0 : i32
    %212 = vector.broadcast %c0_i32_64 : i32 to vector<16x1xi32>
    %213 = arith.cmpi sge, %211, %212 : vector<16x1xi32>
    %c16_i32_65 = arith.constant 16 : i32
    %214 = vector.broadcast %c16_i32_65 : i32 to vector<16x1xi32>
    %215 = arith.cmpi slt, %211, %214 : vector<16x1xi32>
    %216 = arith.andi %213, %215 : vector<16x1xi1>
    %cst_66 = arith.constant 0.000000e+00 : f32
    %217 = vector.shape_cast %216 : vector<16x1xi1> to vector<16x1xi1>
    %218 = vector.broadcast %217 : vector<16x1xi1> to vector<16x128xi1>
    %219 = vector.broadcast %cst_66 : f32 to vector<16x128xf32>
    %220 = arith.select %218, %209, %219 : vector<16x128xi1>, vector<16x128xf32>
    %c10 = arith.constant 10 : index
    %c0_67 = arith.constant 0 : index
    %221 = vector.load %arg8[%c10, %c0_67] : memref<31x128xf32, #tpu.memory_space<vmem>>, vector<1x128xf32>
    %222 = vector.broadcast %221 : vector<1x128xf32> to vector<16x128xf32>
    %223 = arith.mulf %220, %222 : vector<16x128xf32>
    %224 = arith.addf %208, %223 : vector<16x128xf32>
    %c4_i32 = arith.constant 4 : i32
    %225 = tpu.dynamic_rotate %30 by %c4_i32 dim 0 : vector<16x128xf32>, i32 -> vector<16x128xf32>
    %c-4_i32 = arith.constant -4 : i32
    %226 = vector.broadcast %c-4_i32 : i32 to vector<16x1xi32>
    %227 = arith.addi %47, %226 : vector<16x1xi32>
    %c0_i32_68 = arith.constant 0 : i32
    %228 = vector.broadcast %c0_i32_68 : i32 to vector<16x1xi32>
    %229 = arith.cmpi sge, %227, %228 : vector<16x1xi32>
    %c16_i32_69 = arith.constant 16 : i32
    %230 = vector.broadcast %c16_i32_69 : i32 to vector<16x1xi32>
    %231 = arith.cmpi slt, %227, %230 : vector<16x1xi32>
    %232 = arith.andi %229, %231 : vector<16x1xi1>
    %cst_70 = arith.constant 0.000000e+00 : f32
    %233 = vector.shape_cast %232 : vector<16x1xi1> to vector<16x1xi1>
    %234 = vector.broadcast %233 : vector<16x1xi1> to vector<16x128xi1>
    %235 = vector.broadcast %cst_70 : f32 to vector<16x128xf32>
    %236 = arith.select %234, %225, %235 : vector<16x128xi1>, vector<16x128xf32>
    %c11 = arith.constant 11 : index
    %c0_71 = arith.constant 0 : index
    %237 = vector.load %arg8[%c11, %c0_71] : memref<31x128xf32, #tpu.memory_space<vmem>>, vector<1x128xf32>
    %238 = vector.broadcast %237 : vector<1x128xf32> to vector<16x128xf32>
    %239 = arith.mulf %236, %238 : vector<16x128xf32>
    %240 = arith.addf %224, %239 : vector<16x128xf32>
    %c3_i32 = arith.constant 3 : i32
    %241 = tpu.dynamic_rotate %30 by %c3_i32 dim 0 : vector<16x128xf32>, i32 -> vector<16x128xf32>
    %c-3_i32 = arith.constant -3 : i32
    %242 = vector.broadcast %c-3_i32 : i32 to vector<16x1xi32>
    %243 = arith.addi %47, %242 : vector<16x1xi32>
    %c0_i32_72 = arith.constant 0 : i32
    %244 = vector.broadcast %c0_i32_72 : i32 to vector<16x1xi32>
    %245 = arith.cmpi sge, %243, %244 : vector<16x1xi32>
    %c16_i32_73 = arith.constant 16 : i32
    %246 = vector.broadcast %c16_i32_73 : i32 to vector<16x1xi32>
    %247 = arith.cmpi slt, %243, %246 : vector<16x1xi32>
    %248 = arith.andi %245, %247 : vector<16x1xi1>
    %cst_74 = arith.constant 0.000000e+00 : f32
    %249 = vector.shape_cast %248 : vector<16x1xi1> to vector<16x1xi1>
    %250 = vector.broadcast %249 : vector<16x1xi1> to vector<16x128xi1>
    %251 = vector.broadcast %cst_74 : f32 to vector<16x128xf32>
    %252 = arith.select %250, %241, %251 : vector<16x128xi1>, vector<16x128xf32>
    %c12 = arith.constant 12 : index
    %c0_75 = arith.constant 0 : index
    %253 = vector.load %arg8[%c12, %c0_75] : memref<31x128xf32, #tpu.memory_space<vmem>>, vector<1x128xf32>
    %254 = vector.broadcast %253 : vector<1x128xf32> to vector<16x128xf32>
    %255 = arith.mulf %252, %254 : vector<16x128xf32>
    %256 = arith.addf %240, %255 : vector<16x128xf32>
    %c2_i32 = arith.constant 2 : i32
    %257 = tpu.dynamic_rotate %30 by %c2_i32 dim 0 : vector<16x128xf32>, i32 -> vector<16x128xf32>
    %c-2_i32 = arith.constant -2 : i32
    %258 = vector.broadcast %c-2_i32 : i32 to vector<16x1xi32>
    %259 = arith.addi %47, %258 : vector<16x1xi32>
    %c0_i32_76 = arith.constant 0 : i32
    %260 = vector.broadcast %c0_i32_76 : i32 to vector<16x1xi32>
    %261 = arith.cmpi sge, %259, %260 : vector<16x1xi32>
    %c16_i32_77 = arith.constant 16 : i32
    %262 = vector.broadcast %c16_i32_77 : i32 to vector<16x1xi32>
    %263 = arith.cmpi slt, %259, %262 : vector<16x1xi32>
    %264 = arith.andi %261, %263 : vector<16x1xi1>
    %cst_78 = arith.constant 0.000000e+00 : f32
    %265 = vector.shape_cast %264 : vector<16x1xi1> to vector<16x1xi1>
    %266 = vector.broadcast %265 : vector<16x1xi1> to vector<16x128xi1>
    %267 = vector.broadcast %cst_78 : f32 to vector<16x128xf32>
    %268 = arith.select %266, %257, %267 : vector<16x128xi1>, vector<16x128xf32>
    %c13 = arith.constant 13 : index
    %c0_79 = arith.constant 0 : index
    %269 = vector.load %arg8[%c13, %c0_79] : memref<31x128xf32, #tpu.memory_space<vmem>>, vector<1x128xf32>
    %270 = vector.broadcast %269 : vector<1x128xf32> to vector<16x128xf32>
    %271 = arith.mulf %268, %270 : vector<16x128xf32>
    %272 = arith.addf %256, %271 : vector<16x128xf32>
    %c1_i32_80 = arith.constant 1 : i32
    %273 = tpu.dynamic_rotate %30 by %c1_i32_80 dim 0 : vector<16x128xf32>, i32 -> vector<16x128xf32>
    %c-1_i32 = arith.constant -1 : i32
    %274 = vector.broadcast %c-1_i32 : i32 to vector<16x1xi32>
    %275 = arith.addi %47, %274 : vector<16x1xi32>
    %c0_i32_81 = arith.constant 0 : i32
    %276 = vector.broadcast %c0_i32_81 : i32 to vector<16x1xi32>
    %277 = arith.cmpi sge, %275, %276 : vector<16x1xi32>
    %c16_i32_82 = arith.constant 16 : i32
    %278 = vector.broadcast %c16_i32_82 : i32 to vector<16x1xi32>
    %279 = arith.cmpi slt, %275, %278 : vector<16x1xi32>
    %280 = arith.andi %277, %279 : vector<16x1xi1>
    %cst_83 = arith.constant 0.000000e+00 : f32
    %281 = vector.shape_cast %280 : vector<16x1xi1> to vector<16x1xi1>
    %282 = vector.broadcast %281 : vector<16x1xi1> to vector<16x128xi1>
    %283 = vector.broadcast %cst_83 : f32 to vector<16x128xf32>
    %284 = arith.select %282, %273, %283 : vector<16x128xi1>, vector<16x128xf32>
    %c14 = arith.constant 14 : index
    %c0_84 = arith.constant 0 : index
    %285 = vector.load %arg8[%c14, %c0_84] : memref<31x128xf32, #tpu.memory_space<vmem>>, vector<1x128xf32>
    %286 = vector.broadcast %285 : vector<1x128xf32> to vector<16x128xf32>
    %287 = arith.mulf %284, %286 : vector<16x128xf32>
    %288 = arith.addf %272, %287 : vector<16x128xf32>
    %c0_i32_85 = arith.constant 0 : i32
    %289 = vector.broadcast %c0_i32_85 : i32 to vector<16x1xi32>
    %290 = arith.addi %47, %289 : vector<16x1xi32>
    %c0_i32_86 = arith.constant 0 : i32
    %291 = vector.broadcast %c0_i32_86 : i32 to vector<16x1xi32>
    %292 = arith.cmpi sge, %290, %291 : vector<16x1xi32>
    %c16_i32_87 = arith.constant 16 : i32
    %293 = vector.broadcast %c16_i32_87 : i32 to vector<16x1xi32>
    %294 = arith.cmpi slt, %290, %293 : vector<16x1xi32>
    %295 = arith.andi %292, %294 : vector<16x1xi1>
    %cst_88 = arith.constant 0.000000e+00 : f32
    %296 = vector.shape_cast %295 : vector<16x1xi1> to vector<16x1xi1>
    %297 = vector.broadcast %296 : vector<16x1xi1> to vector<16x128xi1>
    %298 = vector.broadcast %cst_88 : f32 to vector<16x128xf32>
    %299 = arith.select %297, %30, %298 : vector<16x128xi1>, vector<16x128xf32>
    %c15 = arith.constant 15 : index
    %c0_89 = arith.constant 0 : index
    %300 = vector.load %arg8[%c15, %c0_89] : memref<31x128xf32, #tpu.memory_space<vmem>>, vector<1x128xf32>
    %301 = vector.broadcast %300 : vector<1x128xf32> to vector<16x128xf32>
    %302 = arith.mulf %299, %301 : vector<16x128xf32>
    %303 = arith.addf %288, %302 : vector<16x128xf32>
    %c15_i32_90 = arith.constant 15 : i32
    %304 = tpu.dynamic_rotate %30 by %c15_i32_90 dim 0 : vector<16x128xf32>, i32 -> vector<16x128xf32>
    %c1_i32_91 = arith.constant 1 : i32
    %305 = vector.broadcast %c1_i32_91 : i32 to vector<16x1xi32>
    %306 = arith.addi %47, %305 : vector<16x1xi32>
    %c0_i32_92 = arith.constant 0 : i32
    %307 = vector.broadcast %c0_i32_92 : i32 to vector<16x1xi32>
    %308 = arith.cmpi sge, %306, %307 : vector<16x1xi32>
    %c16_i32_93 = arith.constant 16 : i32
    %309 = vector.broadcast %c16_i32_93 : i32 to vector<16x1xi32>
    %310 = arith.cmpi slt, %306, %309 : vector<16x1xi32>
    %311 = arith.andi %308, %310 : vector<16x1xi1>
    %cst_94 = arith.constant 0.000000e+00 : f32
    %312 = vector.shape_cast %311 : vector<16x1xi1> to vector<16x1xi1>
    %313 = vector.broadcast %312 : vector<16x1xi1> to vector<16x128xi1>
    %314 = vector.broadcast %cst_94 : f32 to vector<16x128xf32>
    %315 = arith.select %313, %304, %314 : vector<16x128xi1>, vector<16x128xf32>
    %c16 = arith.constant 16 : index
    %c0_95 = arith.constant 0 : index
    %316 = vector.load %arg8[%c16, %c0_95] : memref<31x128xf32, #tpu.memory_space<vmem>>, vector<1x128xf32>
    %317 = vector.broadcast %316 : vector<1x128xf32> to vector<16x128xf32>
    %318 = arith.mulf %315, %317 : vector<16x128xf32>
    %319 = arith.addf %303, %318 : vector<16x128xf32>
    %c14_i32_96 = arith.constant 14 : i32
    %320 = tpu.dynamic_rotate %30 by %c14_i32_96 dim 0 : vector<16x128xf32>, i32 -> vector<16x128xf32>
    %c2_i32_97 = arith.constant 2 : i32
    %321 = vector.broadcast %c2_i32_97 : i32 to vector<16x1xi32>
    %322 = arith.addi %47, %321 : vector<16x1xi32>
    %c0_i32_98 = arith.constant 0 : i32
    %323 = vector.broadcast %c0_i32_98 : i32 to vector<16x1xi32>
    %324 = arith.cmpi sge, %322, %323 : vector<16x1xi32>
    %c16_i32_99 = arith.constant 16 : i32
    %325 = vector.broadcast %c16_i32_99 : i32 to vector<16x1xi32>
    %326 = arith.cmpi slt, %322, %325 : vector<16x1xi32>
    %327 = arith.andi %324, %326 : vector<16x1xi1>
    %cst_100 = arith.constant 0.000000e+00 : f32
    %328 = vector.shape_cast %327 : vector<16x1xi1> to vector<16x1xi1>
    %329 = vector.broadcast %328 : vector<16x1xi1> to vector<16x128xi1>
    %330 = vector.broadcast %cst_100 : f32 to vector<16x128xf32>
    %331 = arith.select %329, %320, %330 : vector<16x128xi1>, vector<16x128xf32>
    %c17 = arith.constant 17 : index
    %c0_101 = arith.constant 0 : index
    %332 = vector.load %arg8[%c17, %c0_101] : memref<31x128xf32, #tpu.memory_space<vmem>>, vector<1x128xf32>
    %333 = vector.broadcast %332 : vector<1x128xf32> to vector<16x128xf32>
    %334 = arith.mulf %331, %333 : vector<16x128xf32>
    %335 = arith.addf %319, %334 : vector<16x128xf32>
    %c13_i32_102 = arith.constant 13 : i32
    %336 = tpu.dynamic_rotate %30 by %c13_i32_102 dim 0 : vector<16x128xf32>, i32 -> vector<16x128xf32>
    %c3_i32_103 = arith.constant 3 : i32
    %337 = vector.broadcast %c3_i32_103 : i32 to vector<16x1xi32>
    %338 = arith.addi %47, %337 : vector<16x1xi32>
    %c0_i32_104 = arith.constant 0 : i32
    %339 = vector.broadcast %c0_i32_104 : i32 to vector<16x1xi32>
    %340 = arith.cmpi sge, %338, %339 : vector<16x1xi32>
    %c16_i32_105 = arith.constant 16 : i32
    %341 = vector.broadcast %c16_i32_105 : i32 to vector<16x1xi32>
    %342 = arith.cmpi slt, %338, %341 : vector<16x1xi32>
    %343 = arith.andi %340, %342 : vector<16x1xi1>
    %cst_106 = arith.constant 0.000000e+00 : f32
    %344 = vector.shape_cast %343 : vector<16x1xi1> to vector<16x1xi1>
    %345 = vector.broadcast %344 : vector<16x1xi1> to vector<16x128xi1>
    %346 = vector.broadcast %cst_106 : f32 to vector<16x128xf32>
    %347 = arith.select %345, %336, %346 : vector<16x128xi1>, vector<16x128xf32>
    %c18 = arith.constant 18 : index
    %c0_107 = arith.constant 0 : index
    %348 = vector.load %arg8[%c18, %c0_107] : memref<31x128xf32, #tpu.memory_space<vmem>>, vector<1x128xf32>
    %349 = vector.broadcast %348 : vector<1x128xf32> to vector<16x128xf32>
    %350 = arith.mulf %347, %349 : vector<16x128xf32>
    %351 = arith.addf %335, %350 : vector<16x128xf32>
    %c12_i32_108 = arith.constant 12 : i32
    %352 = tpu.dynamic_rotate %30 by %c12_i32_108 dim 0 : vector<16x128xf32>, i32 -> vector<16x128xf32>
    %c4_i32_109 = arith.constant 4 : i32
    %353 = vector.broadcast %c4_i32_109 : i32 to vector<16x1xi32>
    %354 = arith.addi %47, %353 : vector<16x1xi32>
    %c0_i32_110 = arith.constant 0 : i32
    %355 = vector.broadcast %c0_i32_110 : i32 to vector<16x1xi32>
    %356 = arith.cmpi sge, %354, %355 : vector<16x1xi32>
    %c16_i32_111 = arith.constant 16 : i32
    %357 = vector.broadcast %c16_i32_111 : i32 to vector<16x1xi32>
    %358 = arith.cmpi slt, %354, %357 : vector<16x1xi32>
    %359 = arith.andi %356, %358 : vector<16x1xi1>
    %cst_112 = arith.constant 0.000000e+00 : f32
    %360 = vector.shape_cast %359 : vector<16x1xi1> to vector<16x1xi1>
    %361 = vector.broadcast %360 : vector<16x1xi1> to vector<16x128xi1>
    %362 = vector.broadcast %cst_112 : f32 to vector<16x128xf32>
    %363 = arith.select %361, %352, %362 : vector<16x128xi1>, vector<16x128xf32>
    %c19 = arith.constant 19 : index
    %c0_113 = arith.constant 0 : index
    %364 = vector.load %arg8[%c19, %c0_113] : memref<31x128xf32, #tpu.memory_space<vmem>>, vector<1x128xf32>
    %365 = vector.broadcast %364 : vector<1x128xf32> to vector<16x128xf32>
    %366 = arith.mulf %363, %365 : vector<16x128xf32>
    %367 = arith.addf %351, %366 : vector<16x128xf32>
    %c11_i32_114 = arith.constant 11 : i32
    %368 = tpu.dynamic_rotate %30 by %c11_i32_114 dim 0 : vector<16x128xf32>, i32 -> vector<16x128xf32>
    %c5_i32_115 = arith.constant 5 : i32
    %369 = vector.broadcast %c5_i32_115 : i32 to vector<16x1xi32>
    %370 = arith.addi %47, %369 : vector<16x1xi32>
    %c0_i32_116 = arith.constant 0 : i32
    %371 = vector.broadcast %c0_i32_116 : i32 to vector<16x1xi32>
    %372 = arith.cmpi sge, %370, %371 : vector<16x1xi32>
    %c16_i32_117 = arith.constant 16 : i32
    %373 = vector.broadcast %c16_i32_117 : i32 to vector<16x1xi32>
    %374 = arith.cmpi slt, %370, %373 : vector<16x1xi32>
    %375 = arith.andi %372, %374 : vector<16x1xi1>
    %cst_118 = arith.constant 0.000000e+00 : f32
    %376 = vector.shape_cast %375 : vector<16x1xi1> to vector<16x1xi1>
    %377 = vector.broadcast %376 : vector<16x1xi1> to vector<16x128xi1>
    %378 = vector.broadcast %cst_118 : f32 to vector<16x128xf32>
    %379 = arith.select %377, %368, %378 : vector<16x128xi1>, vector<16x128xf32>
    %c20 = arith.constant 20 : index
    %c0_119 = arith.constant 0 : index
    %380 = vector.load %arg8[%c20, %c0_119] : memref<31x128xf32, #tpu.memory_space<vmem>>, vector<1x128xf32>
    %381 = vector.broadcast %380 : vector<1x128xf32> to vector<16x128xf32>
    %382 = arith.mulf %379, %381 : vector<16x128xf32>
    %383 = arith.addf %367, %382 : vector<16x128xf32>
    %c10_i32_120 = arith.constant 10 : i32
    %384 = tpu.dynamic_rotate %30 by %c10_i32_120 dim 0 : vector<16x128xf32>, i32 -> vector<16x128xf32>
    %c6_i32_121 = arith.constant 6 : i32
    %385 = vector.broadcast %c6_i32_121 : i32 to vector<16x1xi32>
    %386 = arith.addi %47, %385 : vector<16x1xi32>
    %c0_i32_122 = arith.constant 0 : i32
    %387 = vector.broadcast %c0_i32_122 : i32 to vector<16x1xi32>
    %388 = arith.cmpi sge, %386, %387 : vector<16x1xi32>
    %c16_i32_123 = arith.constant 16 : i32
    %389 = vector.broadcast %c16_i32_123 : i32 to vector<16x1xi32>
    %390 = arith.cmpi slt, %386, %389 : vector<16x1xi32>
    %391 = arith.andi %388, %390 : vector<16x1xi1>
    %cst_124 = arith.constant 0.000000e+00 : f32
    %392 = vector.shape_cast %391 : vector<16x1xi1> to vector<16x1xi1>
    %393 = vector.broadcast %392 : vector<16x1xi1> to vector<16x128xi1>
    %394 = vector.broadcast %cst_124 : f32 to vector<16x128xf32>
    %395 = arith.select %393, %384, %394 : vector<16x128xi1>, vector<16x128xf32>
    %c21 = arith.constant 21 : index
    %c0_125 = arith.constant 0 : index
    %396 = vector.load %arg8[%c21, %c0_125] : memref<31x128xf32, #tpu.memory_space<vmem>>, vector<1x128xf32>
    %397 = vector.broadcast %396 : vector<1x128xf32> to vector<16x128xf32>
    %398 = arith.mulf %395, %397 : vector<16x128xf32>
    %399 = arith.addf %383, %398 : vector<16x128xf32>
    %c9_i32_126 = arith.constant 9 : i32
    %400 = tpu.dynamic_rotate %30 by %c9_i32_126 dim 0 : vector<16x128xf32>, i32 -> vector<16x128xf32>
    %c7_i32_127 = arith.constant 7 : i32
    %401 = vector.broadcast %c7_i32_127 : i32 to vector<16x1xi32>
    %402 = arith.addi %47, %401 : vector<16x1xi32>
    %c0_i32_128 = arith.constant 0 : i32
    %403 = vector.broadcast %c0_i32_128 : i32 to vector<16x1xi32>
    %404 = arith.cmpi sge, %402, %403 : vector<16x1xi32>
    %c16_i32_129 = arith.constant 16 : i32
    %405 = vector.broadcast %c16_i32_129 : i32 to vector<16x1xi32>
    %406 = arith.cmpi slt, %402, %405 : vector<16x1xi32>
    %407 = arith.andi %404, %406 : vector<16x1xi1>
    %cst_130 = arith.constant 0.000000e+00 : f32
    %408 = vector.shape_cast %407 : vector<16x1xi1> to vector<16x1xi1>
    %409 = vector.broadcast %408 : vector<16x1xi1> to vector<16x128xi1>
    %410 = vector.broadcast %cst_130 : f32 to vector<16x128xf32>
    %411 = arith.select %409, %400, %410 : vector<16x128xi1>, vector<16x128xf32>
    %c22 = arith.constant 22 : index
    %c0_131 = arith.constant 0 : index
    %412 = vector.load %arg8[%c22, %c0_131] : memref<31x128xf32, #tpu.memory_space<vmem>>, vector<1x128xf32>
    %413 = vector.broadcast %412 : vector<1x128xf32> to vector<16x128xf32>
    %414 = arith.mulf %411, %413 : vector<16x128xf32>
    %415 = arith.addf %399, %414 : vector<16x128xf32>
    %c8_i32_132 = arith.constant 8 : i32
    %416 = tpu.dynamic_rotate %30 by %c8_i32_132 dim 0 : vector<16x128xf32>, i32 -> vector<16x128xf32>
    %c8_i32_133 = arith.constant 8 : i32
    %417 = vector.broadcast %c8_i32_133 : i32 to vector<16x1xi32>
    %418 = arith.addi %47, %417 : vector<16x1xi32>
    %c0_i32_134 = arith.constant 0 : i32
    %419 = vector.broadcast %c0_i32_134 : i32 to vector<16x1xi32>
    %420 = arith.cmpi sge, %418, %419 : vector<16x1xi32>
    %c16_i32_135 = arith.constant 16 : i32
    %421 = vector.broadcast %c16_i32_135 : i32 to vector<16x1xi32>
    %422 = arith.cmpi slt, %418, %421 : vector<16x1xi32>
    %423 = arith.andi %420, %422 : vector<16x1xi1>
    %cst_136 = arith.constant 0.000000e+00 : f32
    %424 = vector.shape_cast %423 : vector<16x1xi1> to vector<16x1xi1>
    %425 = vector.broadcast %424 : vector<16x1xi1> to vector<16x128xi1>
    %426 = vector.broadcast %cst_136 : f32 to vector<16x128xf32>
    %427 = arith.select %425, %416, %426 : vector<16x128xi1>, vector<16x128xf32>
    %c23 = arith.constant 23 : index
    %c0_137 = arith.constant 0 : index
    %428 = vector.load %arg8[%c23, %c0_137] : memref<31x128xf32, #tpu.memory_space<vmem>>, vector<1x128xf32>
    %429 = vector.broadcast %428 : vector<1x128xf32> to vector<16x128xf32>
    %430 = arith.mulf %427, %429 : vector<16x128xf32>
    %431 = arith.addf %415, %430 : vector<16x128xf32>
    %c7_i32_138 = arith.constant 7 : i32
    %432 = tpu.dynamic_rotate %30 by %c7_i32_138 dim 0 : vector<16x128xf32>, i32 -> vector<16x128xf32>
    %c9_i32_139 = arith.constant 9 : i32
    %433 = vector.broadcast %c9_i32_139 : i32 to vector<16x1xi32>
    %434 = arith.addi %47, %433 : vector<16x1xi32>
    %c0_i32_140 = arith.constant 0 : i32
    %435 = vector.broadcast %c0_i32_140 : i32 to vector<16x1xi32>
    %436 = arith.cmpi sge, %434, %435 : vector<16x1xi32>
    %c16_i32_141 = arith.constant 16 : i32
    %437 = vector.broadcast %c16_i32_141 : i32 to vector<16x1xi32>
    %438 = arith.cmpi slt, %434, %437 : vector<16x1xi32>
    %439 = arith.andi %436, %438 : vector<16x1xi1>
    %cst_142 = arith.constant 0.000000e+00 : f32
    %440 = vector.shape_cast %439 : vector<16x1xi1> to vector<16x1xi1>
    %441 = vector.broadcast %440 : vector<16x1xi1> to vector<16x128xi1>
    %442 = vector.broadcast %cst_142 : f32 to vector<16x128xf32>
    %443 = arith.select %441, %432, %442 : vector<16x128xi1>, vector<16x128xf32>
    %c24 = arith.constant 24 : index
    %c0_143 = arith.constant 0 : index
    %444 = vector.load %arg8[%c24, %c0_143] : memref<31x128xf32, #tpu.memory_space<vmem>>, vector<1x128xf32>
    %445 = vector.broadcast %444 : vector<1x128xf32> to vector<16x128xf32>
    %446 = arith.mulf %443, %445 : vector<16x128xf32>
    %447 = arith.addf %431, %446 : vector<16x128xf32>
    %c6_i32_144 = arith.constant 6 : i32
    %448 = tpu.dynamic_rotate %30 by %c6_i32_144 dim 0 : vector<16x128xf32>, i32 -> vector<16x128xf32>
    %c10_i32_145 = arith.constant 10 : i32
    %449 = vector.broadcast %c10_i32_145 : i32 to vector<16x1xi32>
    %450 = arith.addi %47, %449 : vector<16x1xi32>
    %c0_i32_146 = arith.constant 0 : i32
    %451 = vector.broadcast %c0_i32_146 : i32 to vector<16x1xi32>
    %452 = arith.cmpi sge, %450, %451 : vector<16x1xi32>
    %c16_i32_147 = arith.constant 16 : i32
    %453 = vector.broadcast %c16_i32_147 : i32 to vector<16x1xi32>
    %454 = arith.cmpi slt, %450, %453 : vector<16x1xi32>
    %455 = arith.andi %452, %454 : vector<16x1xi1>
    %cst_148 = arith.constant 0.000000e+00 : f32
    %456 = vector.shape_cast %455 : vector<16x1xi1> to vector<16x1xi1>
    %457 = vector.broadcast %456 : vector<16x1xi1> to vector<16x128xi1>
    %458 = vector.broadcast %cst_148 : f32 to vector<16x128xf32>
    %459 = arith.select %457, %448, %458 : vector<16x128xi1>, vector<16x128xf32>
    %c25 = arith.constant 25 : index
    %c0_149 = arith.constant 0 : index
    %460 = vector.load %arg8[%c25, %c0_149] : memref<31x128xf32, #tpu.memory_space<vmem>>, vector<1x128xf32>
    %461 = vector.broadcast %460 : vector<1x128xf32> to vector<16x128xf32>
    %462 = arith.mulf %459, %461 : vector<16x128xf32>
    %463 = arith.addf %447, %462 : vector<16x128xf32>
    %c5_i32_150 = arith.constant 5 : i32
    %464 = tpu.dynamic_rotate %30 by %c5_i32_150 dim 0 : vector<16x128xf32>, i32 -> vector<16x128xf32>
    %c11_i32_151 = arith.constant 11 : i32
    %465 = vector.broadcast %c11_i32_151 : i32 to vector<16x1xi32>
    %466 = arith.addi %47, %465 : vector<16x1xi32>
    %c0_i32_152 = arith.constant 0 : i32
    %467 = vector.broadcast %c0_i32_152 : i32 to vector<16x1xi32>
    %468 = arith.cmpi sge, %466, %467 : vector<16x1xi32>
    %c16_i32_153 = arith.constant 16 : i32
    %469 = vector.broadcast %c16_i32_153 : i32 to vector<16x1xi32>
    %470 = arith.cmpi slt, %466, %469 : vector<16x1xi32>
    %471 = arith.andi %468, %470 : vector<16x1xi1>
    %cst_154 = arith.constant 0.000000e+00 : f32
    %472 = vector.shape_cast %471 : vector<16x1xi1> to vector<16x1xi1>
    %473 = vector.broadcast %472 : vector<16x1xi1> to vector<16x128xi1>
    %474 = vector.broadcast %cst_154 : f32 to vector<16x128xf32>
    %475 = arith.select %473, %464, %474 : vector<16x128xi1>, vector<16x128xf32>
    %c26 = arith.constant 26 : index
    %c0_155 = arith.constant 0 : index
    %476 = vector.load %arg8[%c26, %c0_155] : memref<31x128xf32, #tpu.memory_space<vmem>>, vector<1x128xf32>
    %477 = vector.broadcast %476 : vector<1x128xf32> to vector<16x128xf32>
    %478 = arith.mulf %475, %477 : vector<16x128xf32>
    %479 = arith.addf %463, %478 : vector<16x128xf32>
    %c4_i32_156 = arith.constant 4 : i32
    %480 = tpu.dynamic_rotate %30 by %c4_i32_156 dim 0 : vector<16x128xf32>, i32 -> vector<16x128xf32>
    %c12_i32_157 = arith.constant 12 : i32
    %481 = vector.broadcast %c12_i32_157 : i32 to vector<16x1xi32>
    %482 = arith.addi %47, %481 : vector<16x1xi32>
    %c0_i32_158 = arith.constant 0 : i32
    %483 = vector.broadcast %c0_i32_158 : i32 to vector<16x1xi32>
    %484 = arith.cmpi sge, %482, %483 : vector<16x1xi32>
    %c16_i32_159 = arith.constant 16 : i32
    %485 = vector.broadcast %c16_i32_159 : i32 to vector<16x1xi32>
    %486 = arith.cmpi slt, %482, %485 : vector<16x1xi32>
    %487 = arith.andi %484, %486 : vector<16x1xi1>
    %cst_160 = arith.constant 0.000000e+00 : f32
    %488 = vector.shape_cast %487 : vector<16x1xi1> to vector<16x1xi1>
    %489 = vector.broadcast %488 : vector<16x1xi1> to vector<16x128xi1>
    %490 = vector.broadcast %cst_160 : f32 to vector<16x128xf32>
    %491 = arith.select %489, %480, %490 : vector<16x128xi1>, vector<16x128xf32>
    %c27 = arith.constant 27 : index
    %c0_161 = arith.constant 0 : index
    %492 = vector.load %arg8[%c27, %c0_161] : memref<31x128xf32, #tpu.memory_space<vmem>>, vector<1x128xf32>
    %493 = vector.broadcast %492 : vector<1x128xf32> to vector<16x128xf32>
    %494 = arith.mulf %491, %493 : vector<16x128xf32>
    %495 = arith.addf %479, %494 : vector<16x128xf32>
    %c3_i32_162 = arith.constant 3 : i32
    %496 = tpu.dynamic_rotate %30 by %c3_i32_162 dim 0 : vector<16x128xf32>, i32 -> vector<16x128xf32>
    %c13_i32_163 = arith.constant 13 : i32
    %497 = vector.broadcast %c13_i32_163 : i32 to vector<16x1xi32>
    %498 = arith.addi %47, %497 : vector<16x1xi32>
    %c0_i32_164 = arith.constant 0 : i32
    %499 = vector.broadcast %c0_i32_164 : i32 to vector<16x1xi32>
    %500 = arith.cmpi sge, %498, %499 : vector<16x1xi32>
    %c16_i32_165 = arith.constant 16 : i32
    %501 = vector.broadcast %c16_i32_165 : i32 to vector<16x1xi32>
    %502 = arith.cmpi slt, %498, %501 : vector<16x1xi32>
    %503 = arith.andi %500, %502 : vector<16x1xi1>
    %cst_166 = arith.constant 0.000000e+00 : f32
    %504 = vector.shape_cast %503 : vector<16x1xi1> to vector<16x1xi1>
    %505 = vector.broadcast %504 : vector<16x1xi1> to vector<16x128xi1>
    %506 = vector.broadcast %cst_166 : f32 to vector<16x128xf32>
    %507 = arith.select %505, %496, %506 : vector<16x128xi1>, vector<16x128xf32>
    %c28 = arith.constant 28 : index
    %c0_167 = arith.constant 0 : index
    %508 = vector.load %arg8[%c28, %c0_167] : memref<31x128xf32, #tpu.memory_space<vmem>>, vector<1x128xf32>
    %509 = vector.broadcast %508 : vector<1x128xf32> to vector<16x128xf32>
    %510 = arith.mulf %507, %509 : vector<16x128xf32>
    %511 = arith.addf %495, %510 : vector<16x128xf32>
    %c2_i32_168 = arith.constant 2 : i32
    %512 = tpu.dynamic_rotate %30 by %c2_i32_168 dim 0 : vector<16x128xf32>, i32 -> vector<16x128xf32>
    %c14_i32_169 = arith.constant 14 : i32
    %513 = vector.broadcast %c14_i32_169 : i32 to vector<16x1xi32>
    %514 = arith.addi %47, %513 : vector<16x1xi32>
    %c0_i32_170 = arith.constant 0 : i32
    %515 = vector.broadcast %c0_i32_170 : i32 to vector<16x1xi32>
    %516 = arith.cmpi sge, %514, %515 : vector<16x1xi32>
    %c16_i32_171 = arith.constant 16 : i32
    %517 = vector.broadcast %c16_i32_171 : i32 to vector<16x1xi32>
    %518 = arith.cmpi slt, %514, %517 : vector<16x1xi32>
    %519 = arith.andi %516, %518 : vector<16x1xi1>
    %cst_172 = arith.constant 0.000000e+00 : f32
    %520 = vector.shape_cast %519 : vector<16x1xi1> to vector<16x1xi1>
    %521 = vector.broadcast %520 : vector<16x1xi1> to vector<16x128xi1>
    %522 = vector.broadcast %cst_172 : f32 to vector<16x128xf32>
    %523 = arith.select %521, %512, %522 : vector<16x128xi1>, vector<16x128xf32>
    %c29 = arith.constant 29 : index
    %c0_173 = arith.constant 0 : index
    %524 = vector.load %arg8[%c29, %c0_173] : memref<31x128xf32, #tpu.memory_space<vmem>>, vector<1x128xf32>
    %525 = vector.broadcast %524 : vector<1x128xf32> to vector<16x128xf32>
    %526 = arith.mulf %523, %525 : vector<16x128xf32>
    %527 = arith.addf %511, %526 : vector<16x128xf32>
    %c1_i32_174 = arith.constant 1 : i32
    %528 = tpu.dynamic_rotate %30 by %c1_i32_174 dim 0 : vector<16x128xf32>, i32 -> vector<16x128xf32>
    %c15_i32_175 = arith.constant 15 : i32
    %529 = vector.broadcast %c15_i32_175 : i32 to vector<16x1xi32>
    %530 = arith.addi %47, %529 : vector<16x1xi32>
    %c0_i32_176 = arith.constant 0 : i32
    %531 = vector.broadcast %c0_i32_176 : i32 to vector<16x1xi32>
    %532 = arith.cmpi sge, %530, %531 : vector<16x1xi32>
    %c16_i32_177 = arith.constant 16 : i32
    %533 = vector.broadcast %c16_i32_177 : i32 to vector<16x1xi32>
    %534 = arith.cmpi slt, %530, %533 : vector<16x1xi32>
    %535 = arith.andi %532, %534 : vector<16x1xi1>
    %cst_178 = arith.constant 0.000000e+00 : f32
    %536 = vector.shape_cast %535 : vector<16x1xi1> to vector<16x1xi1>
    %537 = vector.broadcast %536 : vector<16x1xi1> to vector<16x128xi1>
    %538 = vector.broadcast %cst_178 : f32 to vector<16x128xf32>
    %539 = arith.select %537, %528, %538 : vector<16x128xi1>, vector<16x128xf32>
    %c30 = arith.constant 30 : index
    %c0_179 = arith.constant 0 : index
    %540 = vector.load %arg8[%c30, %c0_179] : memref<31x128xf32, #tpu.memory_space<vmem>>, vector<1x128xf32>
    %541 = vector.broadcast %540 : vector<1x128xf32> to vector<16x128xf32>
    %542 = arith.mulf %539, %541 : vector<16x128xf32>
    %543 = arith.addf %527, %542 : vector<16x128xf32>
    %c0_180 = arith.constant 0 : index
    %c0_181 = arith.constant 0 : index
    %544 = vector.load %arg9[%c0_180, %c0_181] : memref<1x128xf32, #tpu.memory_space<vmem>>, vector<1x128xf32>
    %545 = vector.broadcast %544 : vector<1x128xf32> to vector<16x128xf32>
    %546 = arith.addf %543, %545 : vector<16x128xf32>
    %547 = arith.negf %546 : vector<16x128xf32>
    %548 = math.exp %547 : vector<16x128xf32>
    %cst_182 = arith.constant 1.000000e+00 : f32
    %549 = vector.broadcast %cst_182 : f32 to vector<16x128xf32>
    %550 = arith.addf %549, %548 : vector<16x128xf32>
    %551 = arith.divf %549, %550 : vector<16x128xf32>
    %552 = arith.mulf %546, %551 : vector<16x128xf32>
    %553 = arith.truncf %552 : vector<16x128xf32> to vector<16x128xbf16>
    %c0_183 = arith.constant 0 : index
    %c0_184 = arith.constant 0 : index
    %554 = vector.load %arg10[%c0_183, %c0_184] : memref<128x128xbf16, #tpu.memory_space<vmem>>, vector<128x128xbf16>
    %cst_185 = arith.constant dense<0.000000e+00> : vector<16x128xf32>
    %555 = tpu.matmul %553, %554, %cst_185 {dimension_numbers = #tpu.dot_dimension_numbers<[1], [0], [0], [1], [0, 0, 1, 1], [], []>} : vector<16x128xbf16>, vector<128x128xbf16>, vector<16x128xf32> -> vector<16x128xf32>
    %c0_186 = arith.constant 0 : index
    %c0_187 = arith.constant 0 : index
    %556 = vector.load %arg11[%c0_186, %c0_187] : memref<1x128xf32, #tpu.memory_space<vmem>>, vector<1x128xf32>
    %557 = vector.broadcast %556 : vector<1x128xf32> to vector<16x128xf32>
    %558 = arith.addf %555, %557 : vector<16x128xf32>
    %559 = vector.shape_cast %558 : vector<16x128xf32> to vector<1x16x128xf32>
    %c0_188 = arith.constant 0 : index
    %c0_189 = arith.constant 0 : index
    %c0_190 = arith.constant 0 : index
    %560 = vector.load %arg12[%c0_188, %c0_189, %c0_190] : memref<1x16x128xf32, #tpu.memory_space<vmem>>, vector<1x16x128xf32>
    tpu.vector_store %arg12[%c0_188, %c0_189, %c0_190], %559 {strides = array<i32>} : memref<1x16x128xf32, #tpu.memory_space<vmem>>, vector<1x16x128xf32>,
    return
  }
  func.func @transform_0(%arg0: i32) -> (i32, i32, i32) {
    %c0_i32 = arith.constant 0 : i32
    %c0_i32_0 = arith.constant 0 : i32
    %c0_i32_1 = arith.constant 0 : i32
    return %arg0, %c0_i32, %c0_i32_0 : i32, i32, i32
  }
  func.func @transform_1(%arg0: i32) -> (i32, i32) {
    %c0_i32 = arith.constant 0 : i32
    %c0_i32_0 = arith.constant 0 : i32
    %c0_i32_1 = arith.constant 0 : i32
    return %c0_i32, %c0_i32_0 : i32, i32
  }
  func.func @transform_2(%arg0: i32) -> (i32, i32) {
    %c0_i32 = arith.constant 0 : i32
    %c0_i32_0 = arith.constant 0 : i32
    %c0_i32_1 = arith.constant 0 : i32
    return %c0_i32, %c0_i32_0 : i32, i32
  }
  func.func @transform_3(%arg0: i32) -> (i32, i32) {
    %c0_i32 = arith.constant 0 : i32
    %c0_i32_0 = arith.constant 0 : i32
    %c0_i32_1 = arith.constant 0 : i32
    return %c0_i32, %c0_i32_0 : i32, i32
  }
  func.func @transform_4(%arg0: i32) -> (i32, i32) {
    %c0_i32 = arith.constant 0 : i32
    %c0_i32_0 = arith.constant 0 : i32
    %c0_i32_1 = arith.constant 0 : i32
    return %c0_i32, %c0_i32_0 : i32, i32
  }
  func.func @transform_5(%arg0: i32) -> (i32, i32) {
    %c0_i32 = arith.constant 0 : i32
    %c0_i32_0 = arith.constant 0 : i32
    %c0_i32_1 = arith.constant 0 : i32
    return %c0_i32, %c0_i32_0 : i32, i32
  }
  func.func @transform_6(%arg0: i32) -> (i32, i32) {
    %c0_i32 = arith.constant 0 : i32
    %c0_i32_0 = arith.constant 0 : i32
    %c0_i32_1 = arith.constant 0 : i32
    return %c0_i32, %c0_i32_0 : i32, i32
  }
  func.func @transform_7(%arg0: i32) -> (i32, i32) {
    %c0_i32 = arith.constant 0 : i32
    %c0_i32_0 = arith.constant 0 : i32
    %c0_i32_1 = arith.constant 0 : i32
    return %c0_i32, %c0_i32_0 : i32, i32
  }
  func.func @transform_8(%arg0: i32) -> (i32, i32) {
    %c0_i32 = arith.constant 0 : i32
    %c0_i32_0 = arith.constant 0 : i32
    %c0_i32_1 = arith.constant 0 : i32
    return %c0_i32, %c0_i32_0 : i32, i32
  }
  func.func @transform_9(%arg0: i32) -> (i32, i32) {
    %c0_i32 = arith.constant 0 : i32
    %c0_i32_0 = arith.constant 0 : i32
    %c0_i32_1 = arith.constant 0 : i32
    return %c0_i32, %c0_i32_0 : i32, i32
  }
  func.func @transform_10(%arg0: i32) -> (i32, i32) {
    %c0_i32 = arith.constant 0 : i32
    %c0_i32_0 = arith.constant 0 : i32
    %c0_i32_1 = arith.constant 0 : i32
    return %c0_i32, %c0_i32_0 : i32, i32
  }
  func.func @transform_11(%arg0: i32) -> (i32, i32, i32) {
    %c0_i32 = arith.constant 0 : i32
    %c0_i32_0 = arith.constant 0 : i32
    %c0_i32_1 = arith.constant 0 : i32
    return %arg0, %c0_i32, %c0_i32_0 : i32, i32, i32
  }
}

module attributes {stable_mosaic.version = 11 : i64} {
  func.func @mlp_kernel(%arg0: i32, %arg1: memref<1x16x128xbf16, #tpu.memory_space<vmem>>, %arg2: memref<128x128xbf16, #tpu.memory_space<vmem>>, %arg3: memref<1x128xf32, #tpu.memory_space<vmem>>, %arg4: memref<128x128xbf16, #tpu.memory_space<vmem>>, %arg5: memref<1x128xf32, #tpu.memory_space<vmem>>, %arg6: memref<128x256xbf16, #tpu.memory_space<vmem>>, %arg7: memref<1x256xf32, #tpu.memory_space<vmem>>, %arg8: memref<31x128xf32, #tpu.memory_space<vmem>>, %arg9: memref<1x128xf32, #tpu.memory_space<vmem>>, %arg10: memref<128x128xbf16, #tpu.memory_space<vmem>>, %arg11: memref<1x128xf32, #tpu.memory_space<vmem>>, %arg12: memref<1x16x128xf32, #tpu.memory_space<vmem>>) attributes {dimension_semantics = [#tpu.dimension_semantics<parallel>], iteration_bounds = array<i64: 2>, scalar_prefetch = 0 : i64, scratch_operands = 0 : i64, tpu.core_type = #tpu.core_type<tc>, window_params = [{transform_indices = @transform_0, window_bounds = array<i64: 1, 16, 128>}, {pipeline_mode = #tpu.pipeline_mode<synchronous>, transform_indices = @transform_1, window_bounds = array<i64: 128, 128>}, {pipeline_mode = #tpu.pipeline_mode<synchronous>, transform_indices = @transform_2, window_bounds = array<i64: 1, 128>}, {pipeline_mode = #tpu.pipeline_mode<synchronous>, transform_indices = @transform_3, window_bounds = array<i64: 128, 128>}, {pipeline_mode = #tpu.pipeline_mode<synchronous>, transform_indices = @transform_4, window_bounds = array<i64: 1, 128>}, {pipeline_mode = #tpu.pipeline_mode<synchronous>, transform_indices = @transform_5, window_bounds = array<i64: 128, 256>}, {pipeline_mode = #tpu.pipeline_mode<synchronous>, transform_indices = @transform_6, window_bounds = array<i64: 1, 256>}, {pipeline_mode = #tpu.pipeline_mode<synchronous>, transform_indices = @transform_7, window_bounds = array<i64: 31, 128>}, {pipeline_mode = #tpu.pipeline_mode<synchronous>, transform_indices = @transform_8, window_bounds = array<i64: 1, 128>}, {pipeline_mode = #tpu.pipeline_mode<synchronous>, transform_indices = @transform_9, window_bounds = array<i64: 128, 128>}, {pipeline_mode = #tpu.pipeline_mode<synchronous>, transform_indices = @transform_10, window_bounds = array<i64: 1, 128>}, {transform_indices = @transform_11, window_bounds = array<i64: 1, 16, 128>}]} {
    %c0 = arith.constant 0 : index
    %c0_0 = arith.constant 0 : index
    %c0_1 = arith.constant 0 : index
    %0 = vector.load %arg1[%c0, %c0_0, %c0_1] : memref<1x16x128xbf16, #tpu.memory_space<vmem>>, vector<1x16x128xbf16>
    %1 = vector.shape_cast %0 : vector<1x16x128xbf16> to vector<16x128xbf16>
    %c0_2 = arith.constant 0 : index
    %c0_3 = arith.constant 0 : index
    %2 = vector.load %arg2[%c0_2, %c0_3] : memref<128x128xbf16, #tpu.memory_space<vmem>>, vector<128x128xbf16>
    %cst = arith.constant dense<0.000000e+00> : vector<16x128xf32>
    %3 = tpu.matmul %1, %2, %cst {dimension_numbers = #tpu.dot_dimension_numbers<[1], [0], [0], [1], [0, 0, 1, 1], [], []>} : vector<16x128xbf16>, vector<128x128xbf16>, vector<16x128xf32> -> vector<16x128xf32>
    %c0_4 = arith.constant 0 : index
    %c0_5 = arith.constant 0 : index
    %4 = vector.load %arg3[%c0_4, %c0_5] : memref<1x128xf32, #tpu.memory_space<vmem>>, vector<1x128xf32>
    %5 = vector.broadcast %4 : vector<1x128xf32> to vector<16x128xf32>
    %6 = arith.addf %3, %5 : vector<16x128xf32>
    %cst_6 = arith.constant 0.000000e+00 : f32
    %7 = vector.broadcast %cst_6 : f32 to vector<16x128xf32>
    %8 = arith.maximumf %6, %7 : vector<16x128xf32>
    %9 = arith.truncf %8 : vector<16x128xf32> to vector<16x128xbf16>
    %c0_7 = arith.constant 0 : index
    %c0_8 = arith.constant 0 : index
    %10 = vector.load %arg4[%c0_7, %c0_8] : memref<128x128xbf16, #tpu.memory_space<vmem>>, vector<128x128xbf16>
    %cst_9 = arith.constant dense<0.000000e+00> : vector<16x128xf32>
    %11 = tpu.matmul %9, %10, %cst_9 {dimension_numbers = #tpu.dot_dimension_numbers<[1], [0], [0], [1], [0, 0, 1, 1], [], []>} : vector<16x128xbf16>, vector<128x128xbf16>, vector<16x128xf32> -> vector<16x128xf32>
    %c0_10 = arith.constant 0 : index
    %c0_11 = arith.constant 0 : index
    %12 = vector.load %arg5[%c0_10, %c0_11] : memref<1x128xf32, #tpu.memory_space<vmem>>, vector<1x128xf32>
    %13 = vector.broadcast %12 : vector<1x128xf32> to vector<16x128xf32>
    %14 = arith.addf %11, %13 : vector<16x128xf32>
    %cst_12 = arith.constant 0.000000e+00 : f32
    %15 = vector.broadcast %cst_12 : f32 to vector<16x128xf32>
    %16 = arith.maximumf %14, %15 : vector<16x128xf32>
    %17 = arith.truncf %16 : vector<16x128xf32> to vector<16x128xbf16>
    %c0_13 = arith.constant 0 : index
    %c0_14 = arith.constant 0 : index
    %18 = vector.load %arg6[%c0_13, %c0_14] : memref<128x256xbf16, #tpu.memory_space<vmem>>, vector<128x256xbf16>
    %cst_15 = arith.constant dense<0.000000e+00> : vector<16x256xf32>
    %19 = tpu.matmul %17, %18, %cst_15 {dimension_numbers = #tpu.dot_dimension_numbers<[1], [0], [0], [1], [0, 0, 1, 1], [], []>} : vector<16x128xbf16>, vector<128x256xbf16>, vector<16x256xf32> -> vector<16x256xf32>
    %c0_16 = arith.constant 0 : index
    %c0_17 = arith.constant 0 : index
    %20 = vector.load %arg7[%c0_16, %c0_17] : memref<1x256xf32, #tpu.memory_space<vmem>>, vector<1x256xf32>
    %21 = vector.broadcast %20 : vector<1x256xf32> to vector<16x256xf32>
    %22 = arith.addf %19, %21 : vector<16x256xf32>
    %23 = vector.extract_strided_slice %22 {offsets = [0, 0], sizes = [16, 128], strides = [1, 1]} : vector<16x256xf32> to vector<16x128xf32>
    %24 = vector.extract_strided_slice %22 {offsets = [0, 128], sizes = [16, 128], strides = [1, 1]} : vector<16x256xf32> to vector<16x128xf32>
    %25 = arith.negf %24 : vector<16x128xf32>
    %26 = math.exp %25 : vector<16x128xf32>
    %cst_18 = arith.constant 1.000000e+00 : f32
    %27 = vector.broadcast %cst_18 : f32 to vector<16x128xf32>
    %28 = arith.addf %27, %26 : vector<16x128xf32>
    %29 = arith.divf %27, %28 : vector<16x128xf32>
    %30 = arith.mulf %23, %29 : vector<16x128xf32>
    %31 = tpu.iota {dimensions = array<i32: 0>} : vector<16x1xi32>
    %c16_i32 = arith.constant 16 : i32
    %c0_i32 = arith.constant 0 : i32
    %32 = arith.cmpi eq, %c16_i32, %c0_i32 : i32
    %c1_i32 = arith.constant 1 : i32
    %33 = arith.select %32, %c1_i32, %c16_i32 : i32
    %34 = vector.broadcast %33 : i32 to vector<16x1xi32>
    %35 = arith.remsi %31, %34 : vector<16x1xi32>
    %c0_i32_19 = arith.constant 0 : i32
    %36 = vector.broadcast %c0_i32_19 : i32 to vector<16x1xi32>
    %37 = arith.cmpi ne, %35, %36 : vector<16x1xi32>
    %c0_i32_20 = arith.constant 0 : i32
    %38 = vector.broadcast %c0_i32_20 : i32 to vector<16x1xi32>
    %39 = arith.cmpi slt, %35, %38 : vector<16x1xi32>
    %c0_i32_21 = arith.constant 0 : i32
    %40 = arith.cmpi slt, %33, %c0_i32_21 : i32
    %41 = vector.broadcast %40 : i1 to vector<16x1xi1>
    %42 = vector.broadcast %41 : vector<16x1xi1> to vector<16x1xi1>
    %43 = arith.xori %39, %42 : vector<16x1xi1>
    %44 = arith.andi %43, %37 : vector<16x1xi1>
    %45 = vector.broadcast %33 : i32 to vector<16x1xi32>
    %46 = arith.addi %35, %45 : vector<16x1xi32>
    %47 = arith.select %44, %46, %35 : vector<16x1xi1>, vector<16x1xi32>
    %cst_22 = arith.constant 0.000000e+00 : f32
    %48 = vector.broadcast %cst_22 : f32 to vector<16x128xf32>
    %c15_i32 = arith.constant 15 : i32
    %49 = tpu.dynamic_rotate %30 by %c15_i32 dim 0 : vector<16x128xf32>, i32 -> vector<16x128xf32>
    %c-15_i32 = arith.constant -15 : i32
    %50 = vector.broadcast %c-15_i32 : i32 to vector<16x1xi32>
    %51 = arith.addi %47, %50 : vector<16x1xi32>
    %c0_i32_23 = arith.constant 0 : i32
    %52 = vector.broadcast %c0_i32_23 : i32 to vector<16x1xi32>
    %53 = arith.cmpi sge, %51, %52 : vector<16x1xi32>
    %c16_i32_24 = arith.constant 16 : i32
    %54 = vector.broadcast %c16_i32_24 : i32 to vector<16x1xi32>
    %55 = arith.cmpi slt, %51, %54 : vector<16x1xi32>
    %56 = arith.andi %53, %55 : vector<16x1xi1>
    %cst_25 = arith.constant 0.000000e+00 : f32
    %57 = vector.shape_cast %56 : vector<16x1xi1> to vector<16x1xi1>
    %58 = vector.broadcast %57 : vector<16x1xi1> to vector<16x128xi1>
    %59 = vector.broadcast %cst_25 : f32 to vector<16x128xf32>
    %60 = arith.select %58, %49, %59 : vector<16x128xi1>, vector<16x128xf32>
    %c0_26 = arith.constant 0 : index
    %c0_27 = arith.constant 0 : index
    %61 = vector.load %arg8[%c0_26, %c0_27] : memref<31x128xf32, #tpu.memory_space<vmem>>, vector<1x128xf32>
    %62 = vector.broadcast %61 : vector<1x128xf32> to vector<16x128xf32>
    %63 = arith.mulf %60, %62 : vector<16x128xf32>
    %64 = arith.addf %48, %63 : vector<16x128xf32>
    %c14_i32 = arith.constant 14 : i32
    %65 = tpu.dynamic_rotate %30 by %c14_i32 dim 0 : vector<16x128xf32>, i32 -> vector<16x128xf32>
    %c-14_i32 = arith.constant -14 : i32
    %66 = vector.broadcast %c-14_i32 : i32 to vector<16x1xi32>
    %67 = arith.addi %47, %66 : vector<16x1xi32>
    %c0_i32_28 = arith.constant 0 : i32
    %68 = vector.broadcast %c0_i32_28 : i32 to vector<16x1xi32>
    %69 = arith.cmpi sge, %67, %68 : vector<16x1xi32>
    %c16_i32_29 = arith.constant 16 : i32
    %70 = vector.broadcast %c16_i32_29 : i32 to vector<16x1xi32>
    %71 = arith.cmpi slt, %67, %70 : vector<16x1xi32>
    %72 = arith.andi %69, %71 : vector<16x1xi1>
    %cst_30 = arith.constant 0.000000e+00 : f32
    %73 = vector.shape_cast %72 : vector<16x1xi1> to vector<16x1xi1>
    %74 = vector.broadcast %73 : vector<16x1xi1> to vector<16x128xi1>
    %75 = vector.broadcast %cst_30 : f32 to vector<16x128xf32>
    %76 = arith.select %74, %65, %75 : vector<16x128xi1>, vector<16x128xf32>
    %c1 = arith.constant 1 : index
    %c0_31 = arith.constant 0 : index
    %77 = vector.load %arg8[%c1, %c0_31] : memref<31x128xf32, #tpu.memory_space<vmem>>, vector<1x128xf32>
    %78 = vector.broadcast %77 : vector<1x128xf32> to vector<16x128xf32>
    %79 = arith.mulf %76, %78 : vector<16x128xf32>
    %80 = arith.addf %64, %79 : vector<16x128xf32>
    %c13_i32 = arith.constant 13 : i32
    %81 = tpu.dynamic_rotate %30 by %c13_i32 dim 0 : vector<16x128xf32>, i32 -> vector<16x128xf32>
    %c-13_i32 = arith.constant -13 : i32
    %82 = vector.broadcast %c-13_i32 : i32 to vector<16x1xi32>
    %83 = arith.addi %47, %82 : vector<16x1xi32>
    %c0_i32_32 = arith.constant 0 : i32
    %84 = vector.broadcast %c0_i32_32 : i32 to vector<16x1xi32>
    %85 = arith.cmpi sge, %83, %84 : vector<16x1xi32>
    %c16_i32_33 = arith.constant 16 : i32
    %86 = vector.broadcast %c16_i32_33 : i32 to vector<16x1xi32>
    %87 = arith.cmpi slt, %83, %86 : vector<16x1xi32>
    %88 = arith.andi %85, %87 : vector<16x1xi1>
    %cst_34 = arith.constant 0.000000e+00 : f32
    %89 = vector.shape_cast %88 : vector<16x1xi1> to vector<16x1xi1>
    %90 = vector.broadcast %89 : vector<16x1xi1> to vector<16x128xi1>
    %91 = vector.broadcast %cst_34 : f32 to vector<16x128xf32>
    %92 = arith.select %90, %81, %91 : vector<16x128xi1>, vector<16x128xf32>
    %c2 = arith.constant 2 : index
    %c0_35 = arith.constant 0 : index
    %93 = vector.load %arg8[%c2, %c0_35] : memref<31x128xf32, #tpu.memory_space<vmem>>, vector<1x128xf32>
    %94 = vector.broadcast %93 : vector<1x128xf32> to vector<16x128xf32>
    %95 = arith.mulf %92, %94 : vector<16x128xf32>
    %96 = arith.addf %80, %95 : vector<16x128xf32>
    %c12_i32 = arith.constant 12 : i32
    %97 = tpu.dynamic_rotate %30 by %c12_i32 dim 0 : vector<16x128xf32>, i32 -> vector<16x128xf32>
    %c-12_i32 = arith.constant -12 : i32
    %98 = vector.broadcast %c-12_i32 : i32 to vector<16x1xi32>
    %99 = arith.addi %47, %98 : vector<16x1xi32>
    %c0_i32_36 = arith.constant 0 : i32
    %100 = vector.broadcast %c0_i32_36 : i32 to vector<16x1xi32>
    %101 = arith.cmpi sge, %99, %100 : vector<16x1xi32>
    %c16_i32_37 = arith.constant 16 : i32
    %102 = vector.broadcast %c16_i32_37 : i32 to vector<16x1xi32>
    %103 = arith.cmpi slt, %99, %102 : vector<16x1xi32>
    %104 = arith.andi %101, %103 : vector<16x1xi1>
    %cst_38 = arith.constant 0.000000e+00 : f32
    %105 = vector.shape_cast %104 : vector<16x1xi1> to vector<16x1xi1>
    %106 = vector.broadcast %105 : vector<16x1xi1> to vector<16x128xi1>
    %107 = vector.broadcast %cst_38 : f32 to vector<16x128xf32>
    %108 = arith.select %106, %97, %107 : vector<16x128xi1>, vector<16x128xf32>
    %c3 = arith.constant 3 : index
    %c0_39 = arith.constant 0 : index
    %109 = vector.load %arg8[%c3, %c0_39] : memref<31x128xf32, #tpu.memory_space<vmem>>, vector<1x128xf32>
    %110 = vector.broadcast %109 : vector<1x128xf32> to vector<16x128xf32>
    %111 = arith.mulf %108, %110 : vector<16x128xf32>
    %112 = arith.addf %96, %111 : vector<16x128xf32>
    %c11_i32 = arith.constant 11 : i32
    %113 = tpu.dynamic_rotate %30 by %c11_i32 dim 0 : vector<16x128xf32>, i32 -> vector<16x128xf32>
    %c-11_i32 = arith.constant -11 : i32
    %114 = vector.broadcast %c-11_i32 : i32 to vector<16x1xi32>
    %115 = arith.addi %47, %114 : vector<16x1xi32>
    %c0_i32_40 = arith.constant 0 : i32
    %116 = vector.broadcast %c0_i32_40 : i32 to vector<16x1xi32>
    %117 = arith.cmpi sge, %115, %116 : vector<16x1xi32>
    %c16_i32_41 = arith.constant 16 : i32
    %118 = vector.broadcast %c16_i32_41 : i32 to vector<16x1xi32>
    %119 = arith.cmpi slt, %115, %118 : vector<16x1xi32>
    %120 = arith.andi %117, %119 : vector<16x1xi1>
    %cst_42 = arith.constant 0.000000e+00 : f32
    %121 = vector.shape_cast %120 : vector<16x1xi1> to vector<16x1xi1>
    %122 = vector.broadcast %121 : vector<16x1xi1> to vector<16x128xi1>
    %123 = vector.broadcast %cst_42 : f32 to vector<16x128xf32>
    %124 = arith.select %122, %113, %123 : vector<16x128xi1>, vector<16x128xf32>
    %c4 = arith.constant 4 : index
    %c0_43 = arith.constant 0 : index
    %125 = vector.load %arg8[%c4, %c0_43] : memref<31x128xf32, #tpu.memory_space<vmem>>, vector<1x128xf32>
    %126 = vector.broadcast %125 : vector<1x128xf32> to vector<16x128xf32>
    %127 = arith.mulf %124, %126 : vector<16x128xf32>
    %128 = arith.addf %112, %127 : vector<16x128xf32>
    %c10_i32 = arith.constant 10 : i32
    %129 = tpu.dynamic_rotate %30 by %c10_i32 dim 0 : vector<16x128xf32>, i32 -> vector<16x128xf32>
    %c-10_i32 = arith.constant -10 : i32
    %130 = vector.broadcast %c-10_i32 : i32 to vector<16x1xi32>
    %131 = arith.addi %47, %130 : vector<16x1xi32>
    %c0_i32_44 = arith.constant 0 : i32
    %132 = vector.broadcast %c0_i32_44 : i32 to vector<16x1xi32>
    %133 = arith.cmpi sge, %131, %132 : vector<16x1xi32>
    %c16_i32_45 = arith.constant 16 : i32
    %134 = vector.broadcast %c16_i32_45 : i32 to vector<16x1xi32>
    %135 = arith.cmpi slt, %131, %134 : vector<16x1xi32>
    %136 = arith.andi %133, %135 : vector<16x1xi1>
    %cst_46 = arith.constant 0.000000e+00 : f32
    %137 = vector.shape_cast %136 : vector<16x1xi1> to vector<16x1xi1>
    %138 = vector.broadcast %137 : vector<16x1xi1> to vector<16x128xi1>
    %139 = vector.broadcast %cst_46 : f32 to vector<16x128xf32>
    %140 = arith.select %138, %129, %139 : vector<16x128xi1>, vector<16x128xf32>
    %c5 = arith.constant 5 : index
    %c0_47 = arith.constant 0 : index
    %141 = vector.load %arg8[%c5, %c0_47] : memref<31x128xf32, #tpu.memory_space<vmem>>, vector<1x128xf32>
    %142 = vector.broadcast %141 : vector<1x128xf32> to vector<16x128xf32>
    %143 = arith.mulf %140, %142 : vector<16x128xf32>
    %144 = arith.addf %128, %143 : vector<16x128xf32>
    %c9_i32 = arith.constant 9 : i32
    %145 = tpu.dynamic_rotate %30 by %c9_i32 dim 0 : vector<16x128xf32>, i32 -> vector<16x128xf32>
    %c-9_i32 = arith.constant -9 : i32
    %146 = vector.broadcast %c-9_i32 : i32 to vector<16x1xi32>
    %147 = arith.addi %47, %146 : vector<16x1xi32>
    %c0_i32_48 = arith.constant 0 : i32
    %148 = vector.broadcast %c0_i32_48 : i32 to vector<16x1xi32>
    %149 = arith.cmpi sge, %147, %148 : vector<16x1xi32>
    %c16_i32_49 = arith.constant 16 : i32
    %150 = vector.broadcast %c16_i32_49 : i32 to vector<16x1xi32>
    %151 = arith.cmpi slt, %147, %150 : vector<16x1xi32>
    %152 = arith.andi %149, %151 : vector<16x1xi1>
    %cst_50 = arith.constant 0.000000e+00 : f32
    %153 = vector.shape_cast %152 : vector<16x1xi1> to vector<16x1xi1>
    %154 = vector.broadcast %153 : vector<16x1xi1> to vector<16x128xi1>
    %155 = vector.broadcast %cst_50 : f32 to vector<16x128xf32>
    %156 = arith.select %154, %145, %155 : vector<16x128xi1>, vector<16x128xf32>
    %c6 = arith.constant 6 : index
    %c0_51 = arith.constant 0 : index
    %157 = vector.load %arg8[%c6, %c0_51] : memref<31x128xf32, #tpu.memory_space<vmem>>, vector<1x128xf32>
    %158 = vector.broadcast %157 : vector<1x128xf32> to vector<16x128xf32>
    %159 = arith.mulf %156, %158 : vector<16x128xf32>
    %160 = arith.addf %144, %159 : vector<16x128xf32>
    %c8_i32 = arith.constant 8 : i32
    %161 = tpu.dynamic_rotate %30 by %c8_i32 dim 0 : vector<16x128xf32>, i32 -> vector<16x128xf32>
    %c-8_i32 = arith.constant -8 : i32
    %162 = vector.broadcast %c-8_i32 : i32 to vector<16x1xi32>
    %163 = arith.addi %47, %162 : vector<16x1xi32>
    %c0_i32_52 = arith.constant 0 : i32
    %164 = vector.broadcast %c0_i32_52 : i32 to vector<16x1xi32>
    %165 = arith.cmpi sge, %163, %164 : vector<16x1xi32>
    %c16_i32_53 = arith.constant 16 : i32
    %166 = vector.broadcast %c16_i32_53 : i32 to vector<16x1xi32>
    %167 = arith.cmpi slt, %163, %166 : vector<16x1xi32>
    %168 = arith.andi %165, %167 : vector<16x1xi1>
    %cst_54 = arith.constant 0.000000e+00 : f32
    %169 = vector.shape_cast %168 : vector<16x1xi1> to vector<16x1xi1>
    %170 = vector.broadcast %169 : vector<16x1xi1> to vector<16x128xi1>
    %171 = vector.broadcast %cst_54 : f32 to vector<16x128xf32>
    %172 = arith.select %170, %161, %171 : vector<16x128xi1>, vector<16x128xf32>
    %c7 = arith.constant 7 : index
    %c0_55 = arith.constant 0 : index
    %173 = vector.load %arg8[%c7, %c0_55] : memref<31x128xf32, #tpu.memory_space<vmem>>, vector<1x128xf32>
    %174 = vector.broadcast %173 : vector<1x128xf32> to vector<16x128xf32>
    %175 = arith.mulf %172, %174 : vector<16x128xf32>
    %176 = arith.addf %160, %175 : vector<16x128xf32>
    %c7_i32 = arith.constant 7 : i32
    %177 = tpu.dynamic_rotate %30 by %c7_i32 dim 0 : vector<16x128xf32>, i32 -> vector<16x128xf32>
    %c-7_i32 = arith.constant -7 : i32
    %178 = vector.broadcast %c-7_i32 : i32 to vector<16x1xi32>
    %179 = arith.addi %47, %178 : vector<16x1xi32>
    %c0_i32_56 = arith.constant 0 : i32
    %180 = vector.broadcast %c0_i32_56 : i32 to vector<16x1xi32>
    %181 = arith.cmpi sge, %179, %180 : vector<16x1xi32>
    %c16_i32_57 = arith.constant 16 : i32
    %182 = vector.broadcast %c16_i32_57 : i32 to vector<16x1xi32>
    %183 = arith.cmpi slt, %179, %182 : vector<16x1xi32>
    %184 = arith.andi %181, %183 : vector<16x1xi1>
    %cst_58 = arith.constant 0.000000e+00 : f32
    %185 = vector.shape_cast %184 : vector<16x1xi1> to vector<16x1xi1>
    %186 = vector.broadcast %185 : vector<16x1xi1> to vector<16x128xi1>
    %187 = vector.broadcast %cst_58 : f32 to vector<16x128xf32>
    %188 = arith.select %186, %177, %187 : vector<16x128xi1>, vector<16x128xf32>
    %c8 = arith.constant 8 : index
    %c0_59 = arith.constant 0 : index
    %189 = vector.load %arg8[%c8, %c0_59] : memref<31x128xf32, #tpu.memory_space<vmem>>, vector<1x128xf32>
    %190 = vector.broadcast %189 : vector<1x128xf32> to vector<16x128xf32>
    %191 = arith.mulf %188, %190 : vector<16x128xf32>
    %192 = arith.addf %176, %191 : vector<16x128xf32>
    %c6_i32 = arith.constant 6 : i32
    %193 = tpu.dynamic_rotate %30 by %c6_i32 dim 0 : vector<16x128xf32>, i32 -> vector<16x128xf32>
    %c-6_i32 = arith.constant -6 : i32
    %194 = vector.broadcast %c-6_i32 : i32 to vector<16x1xi32>
    %195 = arith.addi %47, %194 : vector<16x1xi32>
    %c0_i32_60 = arith.constant 0 : i32
    %196 = vector.broadcast %c0_i32_60 : i32 to vector<16x1xi32>
    %197 = arith.cmpi sge, %195, %196 : vector<16x1xi32>
    %c16_i32_61 = arith.constant 16 : i32
    %198 = vector.broadcast %c16_i32_61 : i32 to vector<16x1xi32>
    %199 = arith.cmpi slt, %195, %198 : vector<16x1xi32>
    %200 = arith.andi %197, %199 : vector<16x1xi1>
    %cst_62 = arith.constant 0.000000e+00 : f32
    %201 = vector.shape_cast %200 : vector<16x1xi1> to vector<16x1xi1>
    %202 = vector.broadcast %201 : vector<16x1xi1> to vector<16x128xi1>
    %203 = vector.broadcast %cst_62 : f32 to vector<16x128xf32>
    %204 = arith.select %202, %193, %203 : vector<16x128xi1>, vector<16x128xf32>
    %c9 = arith.constant 9 : index
    %c0_63 = arith.constant 0 : index
    %205 = vector.load %arg8[%c9, %c0_63] : memref<31x128xf32, #tpu.memory_space<vmem>>, vector<1x128xf32>
    %206 = vector.broadcast %205 : vector<1x128xf32> to vector<16x128xf32>
    %207 = arith.mulf %204, %206 : vector<16x128xf32>
    %208 = arith.addf %192, %207 : vector<16x128xf32>
    %c5_i32 = arith.constant 5 : i32
    %209 = tpu.dynamic_rotate %30 by %c5_i32 dim 0 : vector<16x128xf32>, i32 -> vector<16x128xf32>
    %c-5_i32 = arith.constant -5 : i32
    %210 = vector.broadcast %c-5_i32 : i32 to vector<16x1xi32>
    %211 = arith.addi %47, %210 : vector<16x1xi32>
    %c0_i32_64 = arith.constant 0 : i32
    %212 = vector.broadcast %c0_i32_64 : i32 to vector<16x1xi32>
    %213 = arith.cmpi sge, %211, %212 : vector<16x1xi32>
    %c16_i32_65 = arith.constant 16 : i32
    %214 = vector.broadcast %c16_i32_65 : i32 to vector<16x1xi32>
    %215 = arith.cmpi slt, %211, %214 : vector<16x1xi32>
    %216 = arith.andi %213, %215 : vector<16x1xi1>
    %cst_66 = arith.constant 0.000000e+00 : f32
    %217 = vector.shape_cast %216 : vector<16x1xi1> to vector<16x1xi1>
    %218 = vector.broadcast %217 : vector<16x1xi1> to vector<16x128xi1>
    %219 = vector.broadcast %cst_66 : f32 to vector<16x128xf32>
    %220 = arith.select %218, %209, %219 : vector<16x128xi1>, vector<16x128xf32>
    %c10 = arith.constant 10 : index
    %c0_67 = arith.constant 0 : index
    %221 = vector.load %arg8[%c10, %c0_67] : memref<31x128xf32, #tpu.memory_space<vmem>>, vector<1x128xf32>
    %222 = vector.broadcast %221 : vector<1x128xf32> to vector<16x128xf32>
    %223 = arith.mulf %220, %222 : vector<16x128xf32>
    %224 = arith.addf %208, %223 : vector<16x128xf32>
    %c4_i32 = arith.constant 4 : i32
    %225 = tpu.dynamic_rotate %30 by %c4_i32 dim 0 : vector<16x128xf32>, i32 -> vector<16x128xf32>
    %c-4_i32 = arith.constant -4 : i32
    %226 = vector.broadcast %c-4_i32 : i32 to vector<16x1xi32>
    %227 = arith.addi %47, %226 : vector<16x1xi32>
    %c0_i32_68 = arith.constant 0 : i32
    %228 = vector.broadcast %c0_i32_68 : i32 to vector<16x1xi32>
    %229 = arith.cmpi sge, %227, %228 : vector<16x1xi32>
    %c16_i32_69 = arith.constant 16 : i32
    %230 = vector.broadcast %c16_i32_69 : i32 to vector<16x1xi32>
    %231 = arith.cmpi slt, %227, %230 : vector<16x1xi32>
    %232 = arith.andi %229, %231 : vector<16x1xi1>
    %cst_70 = arith.constant 0.000000e+00 : f32
    %233 = vector.shape_cast %232 : vector<16x1xi1> to vector<16x1xi1>
    %234 = vector.broadcast %233 : vector<16x1xi1> to vector<16x128xi1>
    %235 = vector.broadcast %cst_70 : f32 to vector<16x128xf32>
    %236 = arith.select %234, %225, %235 : vector<16x128xi1>, vector<16x128xf32>
    %c11 = arith.constant 11 : index
    %c0_71 = arith.constant 0 : index
    %237 = vector.load %arg8[%c11, %c0_71] : memref<31x128xf32, #tpu.memory_space<vmem>>, vector<1x128xf32>
    %238 = vector.broadcast %237 : vector<1x128xf32> to vector<16x128xf32>
    %239 = arith.mulf %236, %238 : vector<16x128xf32>
    %240 = arith.addf %224, %239 : vector<16x128xf32>
    %c3_i32 = arith.constant 3 : i32
    %241 = tpu.dynamic_rotate %30 by %c3_i32 dim 0 : vector<16x128xf32>, i32 -> vector<16x128xf32>
    %c-3_i32 = arith.constant -3 : i32
    %242 = vector.broadcast %c-3_i32 : i32 to vector<16x1xi32>
    %243 = arith.addi %47, %242 : vector<16x1xi32>
    %c0_i32_72 = arith.constant 0 : i32
    %244 = vector.broadcast %c0_i32_72 : i32 to vector<16x1xi32>
    %245 = arith.cmpi sge, %243, %244 : vector<16x1xi32>
    %c16_i32_73 = arith.constant 16 : i32
    %246 = vector.broadcast %c16_i32_73 : i32 to vector<16x1xi32>
    %247 = arith.cmpi slt, %243, %246 : vector<16x1xi32>
    %248 = arith.andi %245, %247 : vector<16x1xi1>
    %cst_74 = arith.constant 0.000000e+00 : f32
    %249 = vector.shape_cast %248 : vector<16x1xi1> to vector<16x1xi1>
    %250 = vector.broadcast %249 : vector<16x1xi1> to vector<16x128xi1>
    %251 = vector.broadcast %cst_74 : f32 to vector<16x128xf32>
    %252 = arith.select %250, %241, %251 : vector<16x128xi1>, vector<16x128xf32>
    %c12 = arith.constant 12 : index
    %c0_75 = arith.constant 0 : index
    %253 = vector.load %arg8[%c12, %c0_75] : memref<31x128xf32, #tpu.memory_space<vmem>>, vector<1x128xf32>
    %254 = vector.broadcast %253 : vector<1x128xf32> to vector<16x128xf32>
    %255 = arith.mulf %252, %254 : vector<16x128xf32>
    %256 = arith.addf %240, %255 : vector<16x128xf32>
    %c2_i32 = arith.constant 2 : i32
    %257 = tpu.dynamic_rotate %30 by %c2_i32 dim 0 : vector<16x128xf32>, i32 -> vector<16x128xf32>
    %c-2_i32 = arith.constant -2 : i32
    %258 = vector.broadcast %c-2_i32 : i32 to vector<16x1xi32>
    %259 = arith.addi %47, %258 : vector<16x1xi32>
    %c0_i32_76 = arith.constant 0 : i32
    %260 = vector.broadcast %c0_i32_76 : i32 to vector<16x1xi32>
    %261 = arith.cmpi sge, %259, %260 : vector<16x1xi32>
    %c16_i32_77 = arith.constant 16 : i32
    %262 = vector.broadcast %c16_i32_77 : i32 to vector<16x1xi32>
    %263 = arith.cmpi slt, %259, %262 : vector<16x1xi32>
    %264 = arith.andi %261, %263 : vector<16x1xi1>
    %cst_78 = arith.constant 0.000000e+00 : f32
    %265 = vector.shape_cast %264 : vector<16x1xi1> to vector<16x1xi1>
    %266 = vector.broadcast %265 : vector<16x1xi1> to vector<16x128xi1>
    %267 = vector.broadcast %cst_78 : f32 to vector<16x128xf32>
    %268 = arith.select %266, %257, %267 : vector<16x128xi1>, vector<16x128xf32>
    %c13 = arith.constant 13 : index
    %c0_79 = arith.constant 0 : index
    %269 = vector.load %arg8[%c13, %c0_79] : memref<31x128xf32, #tpu.memory_space<vmem>>, vector<1x128xf32>
    %270 = vector.broadcast %269 : vector<1x128xf32> to vector<16x128xf32>
    %271 = arith.mulf %268, %270 : vector<16x128xf32>
    %272 = arith.addf %256, %271 : vector<16x128xf32>
    %c1_i32_80 = arith.constant 1 : i32
    %273 = tpu.dynamic_rotate %30 by %c1_i32_80 dim 0 : vector<16x128xf32>, i32 -> vector<16x128xf32>
    %c-1_i32 = arith.constant -1 : i32
    %274 = vector.broadcast %c-1_i32 : i32 to vector<16x1xi32>
    %275 = arith.addi %47, %274 : vector<16x1xi32>
    %c0_i32_81 = arith.constant 0 : i32
    %276 = vector.broadcast %c0_i32_81 : i32 to vector<16x1xi32>
    %277 = arith.cmpi sge, %275, %276 : vector<16x1xi32>
    %c16_i32_82 = arith.constant 16 : i32
    %278 = vector.broadcast %c16_i32_82 : i32 to vector<16x1xi32>
    %279 = arith.cmpi slt, %275, %278 : vector<16x1xi32>
    %280 = arith.andi %277, %279 : vector<16x1xi1>
    %cst_83 = arith.constant 0.000000e+00 : f32
    %281 = vector.shape_cast %280 : vector<16x1xi1> to vector<16x1xi1>
    %282 = vector.broadcast %281 : vector<16x1xi1> to vector<16x128xi1>
    %283 = vector.broadcast %cst_83 : f32 to vector<16x128xf32>
    %284 = arith.select %282, %273, %283 : vector<16x128xi1>, vector<16x128xf32>
    %c14 = arith.constant 14 : index
    %c0_84 = arith.constant 0 : index
    %285 = vector.load %arg8[%c14, %c0_84] : memref<31x128xf32, #tpu.memory_space<vmem>>, vector<1x128xf32>
    %286 = vector.broadcast %285 : vector<1x128xf32> to vector<16x128xf32>
    %287 = arith.mulf %284, %286 : vector<16x128xf32>
    %288 = arith.addf %272, %287 : vector<16x128xf32>
    %c0_i32_85 = arith.constant 0 : i32
    %289 = vector.broadcast %c0_i32_85 : i32 to vector<16x1xi32>
    %290 = arith.addi %47, %289 : vector<16x1xi32>
    %c0_i32_86 = arith.constant 0 : i32
    %291 = vector.broadcast %c0_i32_86 : i32 to vector<16x1xi32>
    %292 = arith.cmpi sge, %290, %291 : vector<16x1xi32>
    %c16_i32_87 = arith.constant 16 : i32
    %293 = vector.broadcast %c16_i32_87 : i32 to vector<16x1xi32>
    %294 = arith.cmpi slt, %290, %293 : vector<16x1xi32>
    %295 = arith.andi %292, %294 : vector<16x1xi1>
    %cst_88 = arith.constant 0.000000e+00 : f32
    %296 = vector.shape_cast %295 : vector<16x1xi1> to vector<16x1xi1>
    %297 = vector.broadcast %296 : vector<16x1xi1> to vector<16x128xi1>
    %298 = vector.broadcast %cst_88 : f32 to vector<16x128xf32>
    %299 = arith.select %297, %30, %298 : vector<16x128xi1>, vector<16x128xf32>
    %c15 = arith.constant 15 : index
    %c0_89 = arith.constant 0 : index
    %300 = vector.load %arg8[%c15, %c0_89] : memref<31x128xf32, #tpu.memory_space<vmem>>, vector<1x128xf32>
    %301 = vector.broadcast %300 : vector<1x128xf32> to vector<16x128xf32>
    %302 = arith.mulf %299, %301 : vector<16x128xf32>
    %303 = arith.addf %288, %302 : vector<16x128xf32>
    %c15_i32_90 = arith.constant 15 : i32
    %304 = tpu.dynamic_rotate %30 by %c15_i32_90 dim 0 : vector<16x128xf32>, i32 -> vector<16x128xf32>
    %c1_i32_91 = arith.constant 1 : i32
    %305 = vector.broadcast %c1_i32_91 : i32 to vector<16x1xi32>
    %306 = arith.addi %47, %305 : vector<16x1xi32>
    %c0_i32_92 = arith.constant 0 : i32
    %307 = vector.broadcast %c0_i32_92 : i32 to vector<16x1xi32>
    %308 = arith.cmpi sge, %306, %307 : vector<16x1xi32>
    %c16_i32_93 = arith.constant 16 : i32
    %309 = vector.broadcast %c16_i32_93 : i32 to vector<16x1xi32>
    %310 = arith.cmpi slt, %306, %309 : vector<16x1xi32>
    %311 = arith.andi %308, %310 : vector<16x1xi1>
    %cst_94 = arith.constant 0.000000e+00 : f32
    %312 = vector.shape_cast %311 : vector<16x1xi1> to vector<16x1xi1>
    %313 = vector.broadcast %312 : vector<16x1xi1> to vector<16x128xi1>
    %314 = vector.broadcast %cst_94 : f32 to vector<16x128xf32>
    %315 = arith.select %313, %304, %314 : vector<16x128xi1>, vector<16x128xf32>
    %c16 = arith.constant 16 : index
    %c0_95 = arith.constant 0 : index
    %316 = vector.load %arg8[%c16, %c0_95] : memref<31x128xf32, #tpu.memory_space<vmem>>, vector<1x128xf32>
    %317 = vector.broadcast %316 : vector<1x128xf32> to vector<16x128xf32>
    %318 = arith.mulf %315, %317 : vector<16x128xf32>
    %319 = arith.addf %303, %318 : vector<16x128xf32>
    %c14_i32_96 = arith.constant 14 : i32
    %320 = tpu.dynamic_rotate %30 by %c14_i32_96 dim 0 : vector<16x128xf32>, i32 -> vector<16x128xf32>
    %c2_i32_97 = arith.constant 2 : i32
    %321 = vector.broadcast %c2_i32_97 : i32 to vector<16x1xi32>
    %322 = arith.addi %47, %321 : vector<16x1xi32>
    %c0_i32_98 = arith.constant 0 : i32
    %323 = vector.broadcast %c0_i32_98 : i32 to vector<16x1xi32>
    %324 = arith.cmpi sge, %322, %323 : vector<16x1xi32>
    %c16_i32_99 = arith.constant 16 : i32
    %325 = vector.broadcast %c16_i32_99 : i32 to vector<16x1xi32>
    %326 = arith.cmpi slt, %322, %325 : vector<16x1xi32>
    %327 = arith.andi %324, %326 : vector<16x1xi1>
    %cst_100 = arith.constant 0.000000e+00 : f32
    %328 = vector.shape_cast %327 : vector<16x1xi1> to vector<16x1xi1>
    %329 = vector.broadcast %328 : vector<16x1xi1> to vector<16x128xi1>
    %330 = vector.broadcast %cst_100 : f32 to vector<16x128xf32>
    %331 = arith.select %329, %320, %330 : vector<16x128xi1>, vector<16x128xf32>
    %c17 = arith.constant 17 : index
    %c0_101 = arith.constant 0 : index
    %332 = vector.load %arg8[%c17, %c0_101] : memref<31x128xf32, #tpu.memory_space<vmem>>, vector<1x128xf32>
    %333 = vector.broadcast %332 : vector<1x128xf32> to vector<16x128xf32>
    %334 = arith.mulf %331, %333 : vector<16x128xf32>
    %335 = arith.addf %319, %334 : vector<16x128xf32>
    %c13_i32_102 = arith.constant 13 : i32
    %336 = tpu.dynamic_rotate %30 by %c13_i32_102 dim 0 : vector<16x128xf32>, i32 -> vector<16x128xf32>
    %c3_i32_103 = arith.constant 3 : i32
    %337 = vector.broadcast %c3_i32_103 : i32 to vector<16x1xi32>
    %338 = arith.addi %47, %337 : vector<16x1xi32>
    %c0_i32_104 = arith.constant 0 : i32
    %339 = vector.broadcast %c0_i32_104 : i32 to vector<16x1xi32>
    %340 = arith.cmpi sge, %338, %339 : vector<16x1xi32>
    %c16_i32_105 = arith.constant 16 : i32
    %341 = vector.broadcast %c16_i32_105 : i32 to vector<16x1xi32>
    %342 = arith.cmpi slt, %338, %341 : vector<16x1xi32>
    %343 = arith.andi %340, %342 : vector<16x1xi1>
    %cst_106 = arith.constant 0.000000e+00 : f32
    %344 = vector.shape_cast %343 : vector<16x1xi1> to vector<16x1xi1>
    %345 = vector.broadcast %344 : vector<16x1xi1> to vector<16x128xi1>
    %346 = vector.broadcast %cst_106 : f32 to vector<16x128xf32>
    %347 = arith.select %345, %336, %346 : vector<16x128xi1>, vector<16x128xf32>
    %c18 = arith.constant 18 : index
    %c0_107 = arith.constant 0 : index
    %348 = vector.load %arg8[%c18, %c0_107] : memref<31x128xf32, #tpu.memory_space<vmem>>, vector<1x128xf32>
    %349 = vector.broadcast %348 : vector<1x128xf32> to vector<16x128xf32>
    %350 = arith.mulf %347, %349 : vector<16x128xf32>
    %351 = arith.addf %335, %350 : vector<16x128xf32>
    %c12_i32_108 = arith.constant 12 : i32
    %352 = tpu.dynamic_rotate %30 by %c12_i32_108 dim 0 : vector<16x128xf32>, i32 -> vector<16x128xf32>
    %c4_i32_109 = arith.constant 4 : i32
    %353 = vector.broadcast %c4_i32_109 : i32 to vector<16x1xi32>
    %354 = arith.addi %47, %353 : vector<16x1xi32>
    %c0_i32_110 = arith.constant 0 : i32
    %355 = vector.broadcast %c0_i32_110 : i32 to vector<16x1xi32>
    %356 = arith.cmpi sge, %354, %355 : vector<16x1xi32>
    %c16_i32_111 = arith.constant 16 : i32
    %357 = vector.broadcast %c16_i32_111 : i32 to vector<16x1xi32>
    %358 = arith.cmpi slt, %354, %357 : vector<16x1xi32>
    %359 = arith.andi %356, %358 : vector<16x1xi1>
    %cst_112 = arith.constant 0.000000e+00 : f32
    %360 = vector.shape_cast %359 : vector<16x1xi1> to vector<16x1xi1>
    %361 = vector.broadcast %360 : vector<16x1xi1> to vector<16x128xi1>
    %362 = vector.broadcast %cst_112 : f32 to vector<16x128xf32>
    %363 = arith.select %361, %352, %362 : vector<16x128xi1>, vector<16x128xf32>
    %c19 = arith.constant 19 : index
    %c0_113 = arith.constant 0 : index
    %364 = vector.load %arg8[%c19, %c0_113] : memref<31x128xf32, #tpu.memory_space<vmem>>, vector<1x128xf32>
    %365 = vector.broadcast %364 : vector<1x128xf32> to vector<16x128xf32>
    %366 = arith.mulf %363, %365 : vector<16x128xf32>
    %367 = arith.addf %351, %366 : vector<16x128xf32>
    %c11_i32_114 = arith.constant 11 : i32
    %368 = tpu.dynamic_rotate %30 by %c11_i32_114 dim 0 : vector<16x128xf32>, i32 -> vector<16x128xf32>
    %c5_i32_115 = arith.constant 5 : i32
    %369 = vector.broadcast %c5_i32_115 : i32 to vector<16x1xi32>
    %370 = arith.addi %47, %369 : vector<16x1xi32>
    %c0_i32_116 = arith.constant 0 : i32
    %371 = vector.broadcast %c0_i32_116 : i32 to vector<16x1xi32>
    %372 = arith.cmpi sge, %370, %371 : vector<16x1xi32>
    %c16_i32_117 = arith.constant 16 : i32
    %373 = vector.broadcast %c16_i32_117 : i32 to vector<16x1xi32>
    %374 = arith.cmpi slt, %370, %373 : vector<16x1xi32>
    %375 = arith.andi %372, %374 : vector<16x1xi1>
    %cst_118 = arith.constant 0.000000e+00 : f32
    %376 = vector.shape_cast %375 : vector<16x1xi1> to vector<16x1xi1>
    %377 = vector.broadcast %376 : vector<16x1xi1> to vector<16x128xi1>
    %378 = vector.broadcast %cst_118 : f32 to vector<16x128xf32>
    %379 = arith.select %377, %368, %378 : vector<16x128xi1>, vector<16x128xf32>
    %c20 = arith.constant 20 : index
    %c0_119 = arith.constant 0 : index
    %380 = vector.load %arg8[%c20, %c0_119] : memref<31x128xf32, #tpu.memory_space<vmem>>, vector<1x128xf32>
    %381 = vector.broadcast %380 : vector<1x128xf32> to vector<16x128xf32>
    %382 = arith.mulf %379, %381 : vector<16x128xf32>
    %383 = arith.addf %367, %382 : vector<16x128xf32>
    %c10_i32_120 = arith.constant 10 : i32
    %384 = tpu.dynamic_rotate %30 by %c10_i32_120 dim 0 : vector<16x128xf32>, i32 -> vector<16x128xf32>
    %c6_i32_121 = arith.constant 6 : i32
    %385 = vector.broadcast %c6_i32_121 : i32 to vector<16x1xi32>
    %386 = arith.addi %47, %385 : vector<16x1xi32>
    %c0_i32_122 = arith.constant 0 : i32
    %387 = vector.broadcast %c0_i32_122 : i32 to vector<16x1xi32>
    %388 = arith.cmpi sge, %386, %387 : vector<16x1xi32>
    %c16_i32_123 = arith.constant 16 : i32
    %389 = vector.broadcast %c16_i32_123 : i32 to vector<16x1xi32>
    %390 = arith.cmpi slt, %386, %389 : vector<16x1xi32>
    %391 = arith.andi %388, %390 : vector<16x1xi1>
    %cst_124 = arith.constant 0.000000e+00 : f32
    %392 = vector.shape_cast %391 : vector<16x1xi1> to vector<16x1xi1>
    %393 = vector.broadcast %392 : vector<16x1xi1> to vector<16x128xi1>
    %394 = vector.broadcast %cst_124 : f32 to vector<16x128xf32>
    %395 = arith.select %393, %384, %394 : vector<16x128xi1>, vector<16x128xf32>
    %c21 = arith.constant 21 : index
    %c0_125 = arith.constant 0 : index
    %396 = vector.load %arg8[%c21, %c0_125] : memref<31x128xf32, #tpu.memory_space<vmem>>, vector<1x128xf32>
    %397 = vector.broadcast %396 : vector<1x128xf32> to vector<16x128xf32>
    %398 = arith.mulf %395, %397 : vector<16x128xf32>
    %399 = arith.addf %383, %398 : vector<16x128xf32>
    %c9_i32_126 = arith.constant 9 : i32
    %400 = tpu.dynamic_rotate %30 by %c9_i32_126 dim 0 : vector<16x128xf32>, i32 -> vector<16x128xf32>
    %c7_i32_127 = arith.constant 7 : i32
    %401 = vector.broadcast %c7_i32_127 : i32 to vector<16x1xi32>
    %402 = arith.addi %47, %401 : vector<16x1xi32>
    %c0_i32_128 = arith.constant 0 : i32
    %403 = vector.broadcast %c0_i32_128 : i32 to vector<16x1xi32>
    %404 = arith.cmpi sge, %402, %403 : vector<16x1xi32>
    %c16_i32_129 = arith.constant 16 : i32
    %405 = vector.broadcast %c16_i32_129 : i32 to vector<16x1xi32>
    %406 = arith.cmpi slt, %402, %405 : vector<16x1xi32>
    %407 = arith.andi %404, %406 : vector<16x1xi1>
    %cst_130 = arith.constant 0.000000e+00 : f32
    %408 = vector.shape_cast %407 : vector<16x1xi1> to vector<16x1xi1>
    %409 = vector.broadcast %408 : vector<16x1xi1> to vector<16x128xi1>
    %410 = vector.broadcast %cst_130 : f32 to vector<16x128xf32>
    %411 = arith.select %409, %400, %410 : vector<16x128xi1>, vector<16x128xf32>
    %c22 = arith.constant 22 : index
    %c0_131 = arith.constant 0 : index
    %412 = vector.load %arg8[%c22, %c0_131] : memref<31x128xf32, #tpu.memory_space<vmem>>, vector<1x128xf32>
    %413 = vector.broadcast %412 : vector<1x128xf32> to vector<16x128xf32>
    %414 = arith.mulf %411, %413 : vector<16x128xf32>
    %415 = arith.addf %399, %414 : vector<16x128xf32>
    %c8_i32_132 = arith.constant 8 : i32
    %416 = tpu.dynamic_rotate %30 by %c8_i32_132 dim 0 : vector<16x128xf32>, i32 -> vector<16x128xf32>
    %c8_i32_133 = arith.constant 8 : i32
    %417 = vector.broadcast %c8_i32_133 : i32 to vector<16x1xi32>
    %418 = arith.addi %47, %417 : vector<16x1xi32>
    %c0_i32_134 = arith.constant 0 : i32
    %419 = vector.broadcast %c0_i32_134 : i32 to vector<16x1xi32>
    %420 = arith.cmpi sge, %418, %419 : vector<16x1xi32>
    %c16_i32_135 = arith.constant 16 : i32
    %421 = vector.broadcast %c16_i32_135 : i32 to vector<16x1xi32>
    %422 = arith.cmpi slt, %418, %421 : vector<16x1xi32>
    %423 = arith.andi %420, %422 : vector<16x1xi1>
    %cst_136 = arith.constant 0.000000e+00 : f32
    %424 = vector.shape_cast %423 : vector<16x1xi1> to vector<16x1xi1>
    %425 = vector.broadcast %424 : vector<16x1xi1> to vector<16x128xi1>
    %426 = vector.broadcast %cst_136 : f32 to vector<16x128xf32>
    %427 = arith.select %425, %416, %426 : vector<16x128xi1>, vector<16x128xf32>
    %c23 = arith.constant 23 : index
    %c0_137 = arith.constant 0 : index
    %428 = vector.load %arg8[%c23, %c0_137] : memref<31x128xf32, #tpu.memory_space<vmem>>, vector<1x128xf32>
    %429 = vector.broadcast %428 : vector<1x128xf32> to vector<16x128xf32>
    %430 = arith.mulf %427, %429 : vector<16x128xf32>
    %431 = arith.addf %415, %430 : vector<16x128xf32>
    %c7_i32_138 = arith.constant 7 : i32
    %432 = tpu.dynamic_rotate %30 by %c7_i32_138 dim 0 : vector<16x128xf32>, i32 -> vector<16x128xf32>
    %c9_i32_139 = arith.constant 9 : i32
    %433 = vector.broadcast %c9_i32_139 : i32 to vector<16x1xi32>
    %434 = arith.addi %47, %433 : vector<16x1xi32>
    %c0_i32_140 = arith.constant 0 : i32
    %435 = vector.broadcast %c0_i32_140 : i32 to vector<16x1xi32>
    %436 = arith.cmpi sge, %434, %435 : vector<16x1xi32>
    %c16_i32_141 = arith.constant 16 : i32
    %437 = vector.broadcast %c16_i32_141 : i32 to vector<16x1xi32>
    %438 = arith.cmpi slt, %434, %437 : vector<16x1xi32>
    %439 = arith.andi %436, %438 : vector<16x1xi1>
    %cst_142 = arith.constant 0.000000e+00 : f32
    %440 = vector.shape_cast %439 : vector<16x1xi1> to vector<16x1xi1>
    %441 = vector.broadcast %440 : vector<16x1xi1> to vector<16x128xi1>
    %442 = vector.broadcast %cst_142 : f32 to vector<16x128xf32>
    %443 = arith.select %441, %432, %442 : vector<16x128xi1>, vector<16x128xf32>
    %c24 = arith.constant 24 : index
    %c0_143 = arith.constant 0 : index
    %444 = vector.load %arg8[%c24, %c0_143] : memref<31x128xf32, #tpu.memory_space<vmem>>, vector<1x128xf32>
    %445 = vector.broadcast %444 : vector<1x128xf32> to vector<16x128xf32>
    %446 = arith.mulf %443, %445 : vector<16x128xf32>
    %447 = arith.addf %431, %446 : vector<16x128xf32>
    %c6_i32_144 = arith.constant 6 : i32
    %448 = tpu.dynamic_rotate %30 by %c6_i32_144 dim 0 : vector<16x128xf32>, i32 -> vector<16x128xf32>
    %c10_i32_145 = arith.constant 10 : i32
    %449 = vector.broadcast %c10_i32_145 : i32 to vector<16x1xi32>
    %450 = arith.addi %47, %449 : vector<16x1xi32>
    %c0_i32_146 = arith.constant 0 : i32
    %451 = vector.broadcast %c0_i32_146 : i32 to vector<16x1xi32>
    %452 = arith.cmpi sge, %450, %451 : vector<16x1xi32>
    %c16_i32_147 = arith.constant 16 : i32
    %453 = vector.broadcast %c16_i32_147 : i32 to vector<16x1xi32>
    %454 = arith.cmpi slt, %450, %453 : vector<16x1xi32>
    %455 = arith.andi %452, %454 : vector<16x1xi1>
    %cst_148 = arith.constant 0.000000e+00 : f32
    %456 = vector.shape_cast %455 : vector<16x1xi1> to vector<16x1xi1>
    %457 = vector.broadcast %456 : vector<16x1xi1> to vector<16x128xi1>
    %458 = vector.broadcast %cst_148 : f32 to vector<16x128xf32>
    %459 = arith.select %457, %448, %458 : vector<16x128xi1>, vector<16x128xf32>
    %c25 = arith.constant 25 : index
    %c0_149 = arith.constant 0 : index
    %460 = vector.load %arg8[%c25, %c0_149] : memref<31x128xf32, #tpu.memory_space<vmem>>, vector<1x128xf32>
    %461 = vector.broadcast %460 : vector<1x128xf32> to vector<16x128xf32>
    %462 = arith.mulf %459, %461 : vector<16x128xf32>
    %463 = arith.addf %447, %462 : vector<16x128xf32>
    %c5_i32_150 = arith.constant 5 : i32
    %464 = tpu.dynamic_rotate %30 by %c5_i32_150 dim 0 : vector<16x128xf32>, i32 -> vector<16x128xf32>
    %c11_i32_151 = arith.constant 11 : i32
    %465 = vector.broadcast %c11_i32_151 : i32 to vector<16x1xi32>
    %466 = arith.addi %47, %465 : vector<16x1xi32>
    %c0_i32_152 = arith.constant 0 : i32
    %467 = vector.broadcast %c0_i32_152 : i32 to vector<16x1xi32>
    %468 = arith.cmpi sge, %466, %467 : vector<16x1xi32>
    %c16_i32_153 = arith.constant 16 : i32
    %469 = vector.broadcast %c16_i32_153 : i32 to vector<16x1xi32>
    %470 = arith.cmpi slt, %466, %469 : vector<16x1xi32>
    %471 = arith.andi %468, %470 : vector<16x1xi1>
    %cst_154 = arith.constant 0.000000e+00 : f32
    %472 = vector.shape_cast %471 : vector<16x1xi1> to vector<16x1xi1>
    %473 = vector.broadcast %472 : vector<16x1xi1> to vector<16x128xi1>
    %474 = vector.broadcast %cst_154 : f32 to vector<16x128xf32>
    %475 = arith.select %473, %464, %474 : vector<16x128xi1>, vector<16x128xf32>
    %c26 = arith.constant 26 : index
    %c0_155 = arith.constant 0 : index
    %476 = vector.load %arg8[%c26, %c0_155] : memref<31x128xf32, #tpu.memory_space<vmem>>, vector<1x128xf32>
    %477 = vector.broadcast %476 : vector<1x128xf32> to vector<16x128xf32>
    %478 = arith.mulf %475, %477 : vector<16x128xf32>
    %479 = arith.addf %463, %478 : vector<16x128xf32>
    %c4_i32_156 = arith.constant 4 : i32
    %480 = tpu.dynamic_rotate %30 by %c4_i32_156 dim 0 : vector<16x128xf32>, i32 -> vector<16x128xf32>
    %c12_i32_157 = arith.constant 12 : i32
    %481 = vector.broadcast %c12_i32_157 : i32 to vector<16x1xi32>
    %482 = arith.addi %47, %481 : vector<16x1xi32>
    %c0_i32_158 = arith.constant 0 : i32
    %483 = vector.broadcast %c0_i32_158 : i32 to vector<16x1xi32>
    %484 = arith.cmpi sge, %482, %483 : vector<16x1xi32>
    %c16_i32_159 = arith.constant 16 : i32
    %485 = vector.broadcast %c16_i32_159 : i32 to vector<16x1xi32>
    %486 = arith.cmpi slt, %482, %485 : vector<16x1xi32>
    %487 = arith.andi %484, %486 : vector<16x1xi1>
    %cst_160 = arith.constant 0.000000e+00 : f32
    %488 = vector.shape_cast %487 : vector<16x1xi1> to vector<16x1xi1>
    %489 = vector.broadcast %488 : vector<16x1xi1> to vector<16x128xi1>
    %490 = vector.broadcast %cst_160 : f32 to vector<16x128xf32>
    %491 = arith.select %489, %480, %490 : vector<16x128xi1>, vector<16x128xf32>
    %c27 = arith.constant 27 : index
    %c0_161 = arith.constant 0 : index
    %492 = vector.load %arg8[%c27, %c0_161] : memref<31x128xf32, #tpu.memory_space<vmem>>, vector<1x128xf32>
    %493 = vector.broadcast %492 : vector<1x128xf32> to vector<16x128xf32>
    %494 = arith.mulf %491, %493 : vector<16x128xf32>
    %495 = arith.addf %479, %494 : vector<16x128xf32>
    %c3_i32_162 = arith.constant 3 : i32
    %496 = tpu.dynamic_rotate %30 by %c3_i32_162 dim 0 : vector<16x128xf32>, i32 -> vector<16x128xf32>
    %c13_i32_163 = arith.constant 13 : i32
    %497 = vector.broadcast %c13_i32_163 : i32 to vector<16x1xi32>
    %498 = arith.addi %47, %497 : vector<16x1xi32>
    %c0_i32_164 = arith.constant 0 : i32
    %499 = vector.broadcast %c0_i32_164 : i32 to vector<16x1xi32>
    %500 = arith.cmpi sge, %498, %499 : vector<16x1xi32>
    %c16_i32_165 = arith.constant 16 : i32
    %501 = vector.broadcast %c16_i32_165 : i32 to vector<16x1xi32>
    %502 = arith.cmpi slt, %498, %501 : vector<16x1xi32>
    %503 = arith.andi %500, %502 : vector<16x1xi1>
    %cst_166 = arith.constant 0.000000e+00 : f32
    %504 = vector.shape_cast %503 : vector<16x1xi1> to vector<16x1xi1>
    %505 = vector.broadcast %504 : vector<16x1xi1> to vector<16x128xi1>
    %506 = vector.broadcast %cst_166 : f32 to vector<16x128xf32>
    %507 = arith.select %505, %496, %506 : vector<16x128xi1>, vector<16x128xf32>
    %c28 = arith.constant 28 : index
    %c0_167 = arith.constant 0 : index
    %508 = vector.load %arg8[%c28, %c0_167] : memref<31x128xf32, #tpu.memory_space<vmem>>, vector<1x128xf32>
    %509 = vector.broadcast %508 : vector<1x128xf32> to vector<16x128xf32>
    %510 = arith.mulf %507, %509 : vector<16x128xf32>
    %511 = arith.addf %495, %510 : vector<16x128xf32>
    %c2_i32_168 = arith.constant 2 : i32
    %512 = tpu.dynamic_rotate %30 by %c2_i32_168 dim 0 : vector<16x128xf32>, i32 -> vector<16x128xf32>
    %c14_i32_169 = arith.constant 14 : i32
    %513 = vector.broadcast %c14_i32_169 : i32 to vector<16x1xi32>
    %514 = arith.addi %47, %513 : vector<16x1xi32>
    %c0_i32_170 = arith.constant 0 : i32
    %515 = vector.broadcast %c0_i32_170 : i32 to vector<16x1xi32>
    %516 = arith.cmpi sge, %514, %515 : vector<16x1xi32>
    %c16_i32_171 = arith.constant 16 : i32
    %517 = vector.broadcast %c16_i32_171 : i32 to vector<16x1xi32>
    %518 = arith.cmpi slt, %514, %517 : vector<16x1xi32>
    %519 = arith.andi %516, %518 : vector<16x1xi1>
    %cst_172 = arith.constant 0.000000e+00 : f32
    %520 = vector.shape_cast %519 : vector<16x1xi1> to vector<16x1xi1>
    %521 = vector.broadcast %520 : vector<16x1xi1> to vector<16x128xi1>
    %522 = vector.broadcast %cst_172 : f32 to vector<16x128xf32>
    %523 = arith.select %521, %512, %522 : vector<16x128xi1>, vector<16x128xf32>
    %c29 = arith.constant 29 : index
    %c0_173 = arith.constant 0 : index
    %524 = vector.load %arg8[%c29, %c0_173] : memref<31x128xf32, #tpu.memory_space<vmem>>, vector<1x128xf32>
    %525 = vector.broadcast %524 : vector<1x128xf32> to vector<16x128xf32>
    %526 = arith.mulf %523, %525 : vector<16x128xf32>
    %527 = arith.addf %511, %526 : vector<16x128xf32>
    %c1_i32_174 = arith.constant 1 : i32
    %528 = tpu.dynamic_rotate %30 by %c1_i32_174 dim 0 : vector<16x128xf32>, i32 -> vector<16x128xf32>
    %c15_i32_175 = arith.constant 15 : i32
    %529 = vector.broadcast %c15_i32_175 : i32 to vector<16x1xi32>
    %530 = arith.addi %47, %529 : vector<16x1xi32>
    %c0_i32_176 = arith.constant 0 : i32
    %531 = vector.broadcast %c0_i32_176 : i32 to vector<16x1xi32>
    %532 = arith.cmpi sge, %530, %531 : vector<16x1xi32>
    %c16_i32_177 = arith.constant 16 : i32
    %533 = vector.broadcast %c16_i32_177 : i32 to vector<16x1xi32>
    %534 = arith.cmpi slt, %530, %533 : vector<16x1xi32>
    %535 = arith.andi %532, %534 : vector<16x1xi1>
    %cst_178 = arith.constant 0.000000e+00 : f32
    %536 = vector.shape_cast %535 : vector<16x1xi1> to vector<16x1xi1>
    %537 = vector.broadcast %536 : vector<16x1xi1> to vector<16x128xi1>
    %538 = vector.broadcast %cst_178 : f32 to vector<16x128xf32>
    %539 = arith.select %537, %528, %538 : vector<16x128xi1>, vector<16x128xf32>
    %c30 = arith.constant 30 : index
    %c0_179 = arith.constant 0 : index
    %540 = vector.load %arg8[%c30, %c0_179] : memref<31x128xf32, #tpu.memory_space<vmem>>, vector<1x128xf32>
    %541 = vector.broadcast %540 : vector<1x128xf32> to vector<16x128xf32>
    %542 = arith.mulf %539, %541 : vector<16x128xf32>
    %543 = arith.addf %527, %542 : vector<16x128xf32>
    %c0_180 = arith.constant 0 : index
    %c0_181 = arith.constant 0 : index
    %544 = vector.load %arg9[%c0_180, %c0_181] : memref<1x128xf32, #tpu.memory_space<vmem>>, vector<1x128xf32>
    %545 = vector.broadcast %544 : vector<1x128xf32> to vector<16x128xf32>
    %546 = arith.addf %543, %545 : vector<16x128xf32>
    %547 = arith.negf %546 : vector<16x128xf32>
    %548 = math.exp %547 : vector<16x128xf32>
    %cst_182 = arith.constant 1.000000e+00 : f32
    %549 = vector.broadcast %cst_182 : f32 to vector<16x128xf32>
    %550 = arith.addf %549, %548 : vector<16x128xf32>
    %551 = arith.divf %549, %550 : vector<16x128xf32>
    %552 = arith.mulf %546, %551 : vector<16x128xf32>
    %553 = arith.truncf %552 : vector<16x128xf32> to vector<16x128xbf16>
    %c0_183 = arith.constant 0 : index
    %c0_184 = arith.constant 0 : index
    %554 = vector.load %arg10[%c0_183, %c0_184] : memref<128x128xbf16, #tpu.memory_space<vmem>>, vector<128x128xbf16>
    %cst_185 = arith.constant dense<0.000000e+00> : vector<16x128xf32>
    %555 = tpu.matmul %553, %554, %cst_185 {dimension_numbers = #tpu.dot_dimension_numbers<[1], [0], [0], [1], [0, 0, 1, 1], [], []>} : vector<16x128xbf16>, vector<128x128xbf16>, vector<16x128xf32> -> vector<16x128xf32>
    %c0_186 = arith.constant 0 : index
    %c0_187 = arith.constant 0 : index
    %556 = vector.load %arg11[%c0_186, %c0_187] : memref<1x128xf32, #tpu.memory_space<vmem>>, vector<1x128xf32>
    %557 = vector.broadcast %556 : vector<1x128xf32> to vector<16x128xf32>
    %558 = arith.addf %555, %557 : vector<16x128xf32>
    %559 = vector.shape_cast %558 : vector<16x128xf32> to vector<1x16x128xf32>
    %c0_188 = arith.constant 0 : index
    %c0_189 = arith.constant 0 : index
    %c0_190 = arith.constant 0 : index
    %560 = vector.load %arg12[%c0_188, %c0_189, %c0_190] : memref<1x16x128xf32, #tpu.memory_space<vmem>>, vector<1x16x128xf32>
    tpu.vector_store %arg12[%c0_188, %c0_189, %c0_190], %559 {strides = array<i32>} : memref<1x16x128xf32, #tpu.memory_space<vmem>>, vector<1x16x128xf32>,
    return
  }
  func.func @transform_0(%arg0: i32) -> (i32, i32, i32) {
    %c0_i32 = arith.constant 0 : i32
    %c0_i32_0 = arith.constant 0 : i32
    %c0_i32_1 = arith.constant 0 : i32
    return %arg0, %c0_i32, %c0_i32_0 : i32, i32, i32
  }
  func.func @transform_1(%arg0: i32) -> (i32, i32) {
    %c0_i32 = arith.constant 0 : i32
    %c0_i32_0 = arith.constant 0 : i32
    %c0_i32_1 = arith.constant 0 : i32
    return %c0_i32, %c0_i32_0 : i32, i32
  }
  func.func @transform_2(%arg0: i32) -> (i32, i32) {
    %c0_i32 = arith.constant 0 : i32
    %c0_i32_0 = arith.constant 0 : i32
    %c0_i32_1 = arith.constant 0 : i32
    return %c0_i32, %c0_i32_0 : i32, i32
  }
  func.func @transform_3(%arg0: i32) -> (i32, i32) {
    %c0_i32 = arith.constant 0 : i32
    %c0_i32_0 = arith.constant 0 : i32
    %c0_i32_1 = arith.constant 0 : i32
    return %c0_i32, %c0_i32_0 : i32, i32
  }
  func.func @transform_4(%arg0: i32) -> (i32, i32) {
    %c0_i32 = arith.constant 0 : i32
    %c0_i32_0 = arith.constant 0 : i32
    %c0_i32_1 = arith.constant 0 : i32
    return %c0_i32, %c0_i32_0 : i32, i32
  }
  func.func @transform_5(%arg0: i32) -> (i32, i32) {
    %c0_i32 = arith.constant 0 : i32
    %c0_i32_0 = arith.constant 0 : i32
    %c0_i32_1 = arith.constant 0 : i32
    return %c0_i32, %c0_i32_0 : i32, i32
  }
  func.func @transform_6(%arg0: i32) -> (i32, i32) {
    %c0_i32 = arith.constant 0 : i32
    %c0_i32_0 = arith.constant 0 : i32
    %c0_i32_1 = arith.constant 0 : i32
    return %c0_i32, %c0_i32_0 : i32, i32
  }
  func.func @transform_7(%arg0: i32) -> (i32, i32) {
    %c0_i32 = arith.constant 0 : i32
    %c0_i32_0 = arith.constant 0 : i32
    %c0_i32_1 = arith.constant 0 : i32
    return %c0_i32, %c0_i32_0 : i32, i32
  }
  func.func @transform_8(%arg0: i32) -> (i32, i32) {
    %c0_i32 = arith.constant 0 : i32
    %c0_i32_0 = arith.constant 0 : i32
    %c0_i32_1 = arith.constant 0 : i32
    return %c0_i32, %c0_i32_0 : i32, i32
  }
  func.func @transform_9(%arg0: i32) -> (i32, i32) {
    %c0_i32 = arith.constant 0 : i32
    %c0_i32_0 = arith.constant 0 : i32
    %c0_i32_1 = arith.constant 0 : i32
    return %c0_i32, %c0_i32_0 : i32, i32
  }
  func.func @transform_10(%arg0: i32) -> (i32, i32) {
    %c0_i32 = arith.constant 0 : i32
    %c0_i32_0 = arith.constant 0 : i32
    %c0_i32_1 = arith.constant 0 : i32
    return %c0_i32, %c0_i32_0 : i32, i32
  }
  func.func @transform_11(%arg0: i32) -> (i32, i32, i32) {
    %c0_i32 = arith.constant 0 : i32
    %c0_i32_0 = arith.constant 0 : i32
    %c0_i32_1 = arith.constant 0 : i32
    return %arg0, %c0_i32, %c0_i32_0 : i32, i32, i32
  }
}

</mosaic_0001>

<bundles_post_ra>
// kernel: tpu_custom_call.1
= control target key start
LH: loop header
LB: loop body
LE: loop exit
PB: predicated region body
PF: predicated region fallthrough
CT: control target
= control target key end

     0   :  { %s3236_s0 = inlined_call_operand.hbm [shape: bf16[2,16,128], index: 0, kind: input, shape index: {}]   ;;  %s3237_s1 = inlined_call_operand.hbm [shape: bf16[128,128], index: 1, kind: input, shape index: {}]   ;;  %s3238_s2 = inlined_call_operand.vmem [shape: f32[1,128], index: 2, kind: input, shape index: {}]   ;;  %s3239_s3 = inlined_call_operand.hbm [shape: bf16[128,128], index: 3, kind: input, shape index: {}]   ;;  %s3240_s4 = inlined_call_operand.vmem [shape: f32[1,128], index: 4, kind: input, shape index: {}]   ;;  %s3241_s5 = inlined_call_operand.hbm [shape: bf16[128,256], index: 5, kind: input, shape index: {}]   ;;  %s3242_s6 = inlined_call_operand.vmem [shape: f32[1,256], index: 6, kind: input, shape index: {}]   ;;  %s3243_s7 = inlined_call_operand.hbm [shape: f32[31,128], index: 7, kind: input, shape index: {}]   ;;  %s3244_s8 = inlined_call_operand.vmem [shape: f32[1,128], index: 8, kind: input, shape index: {}]   ;;  %s3245_s9 = inlined_call_operand.hbm [shape: bf16[128,128], index: 9, kind: input, shape index: {}]   ;;  %s3246_s10 = inlined_call_operand.vmem [shape: f32[1,128], index: 10, kind: input, shape index: {}]   ;;  %s3247_s11 = inlined_call_operand.hbm [shape: f32[2,16,128], index: 11, kind: output, shape index: {}]  }
   0x1   :  { %3257 = sst [smem:[#allocation19_spill]] %s3237_s1 }
   0x2   :  { %3258 = sst [smem:[#allocation20_spill]] %s3244_s8 }
   0x3   :  { %3259 = sst [smem:[#allocation21_spill]] %s3246_s10 }
   0x4   :  { %3260 = sst [smem:[#allocation22_spill]] %s3247_s11 }
   0x5   :  { %16 = vsyncpa [#allocation3], 0 }
   0x6   :  { %18 = vsyncpa [#allocation3 + $0x1], 0 }
   0x7   :  { %19 = vsyncpa [#allocation6], 0 }
   0x8   :  { %20 = vsyncpa [#allocation9], 0 }
   0x9   :  { %21 = vsyncpa [#allocation12], 0 }
   0xa   :  { %22 = vsyncpa [#allocation4], 0 }
   0xb   :  { %24 = vsyncpa [#allocation4 + $0x1], 0  ;;  %s2618_s17 = smov 0   ;;  %s2620_s18 = smov 0  }
   0xc   :  { %s2622_s19 = smov 0   ;;  %s2624_s20 = smov 0  }
   0xd LB: > { %s2542_s21 = smov [#allocation5]   ;;  %s2639_s23 = sadd.s32 4294967295, %s2540_s20   ;;  %s2540_s20 = sphi %s2624_s20, %s3291_s20   ;;  %s2536_s19 = sphi %s2622_s19, %s3290_s19   ;;  %s2532_s18 = sphi %s2620_s18, %s3289_s18   ;;  %s2528_s17 = sphi %s2618_s17, %s3288_s17  }
   0xe   : > { %s309_s22 = sshll.u32 %s2542_s21, 4  ;;  %p1929_p0 = scmp.ge.s32.totalorder %s2540_s20, 1  ;;  %s2644_s22 = int_to_ptr.vmem [resolvable:$true] %s309_s22 }
   0xf   : > { %p3251_p1 = scmp.eq.s32.totalorder %s2639_s23, 0  ;;  %p297_p2 = scmp.lt.s32.totalorder %s2540_s20, 3 }
  0x10   : > { %s2543_s25 = smov [#allocation8]   ;;  %s2544_s28 = smov [#allocation7]  }
  0x11   : > { %p2646_p3 = pnand %p1929_p0, %p297_p2  ;;  %s341_s26 = sshll.u32 %s2543_s25, 4  ;;  %s2659_s26 = int_to_ptr.vmem [resolvable:$true] %s341_s26 }
  0x12   : > { %s2661_s29 = sshll.u32 %s2544_s28, 4  ;;  %s3263_s1 = sld [smem:[#allocation19_spill]]  ;;  %s326_s29 = int_to_ptr.vmem [resolvable:$true] %s2661_s29 }
  0x13   : > { %s3261_s24 = scalar_select %p2646_p3, 1, 0 }
  0x14   : > { %p2145_p5 = pneg %p2646_p3 }
  0x16   : > { %p2655_p6 = pnand %p2145_p5, %p3251_p1 }
  0x18   : > { %s2292_s13 = scalar_lea.hbm %s3263_s1, 1024  ;;  %p2671_p8 = pneg %p2655_p6 }
  0x19   : > { %p2293_p7 = scmp.ne.s32.totalorder %s3263_s1, %s2292_s13  ;;  %p2299_p11 = scmp.lt.u32.totalorder %s2292_s13, %s3263_s1 }
  0x1b   : > { %p2295_p9 = pnand %p2671_p8, %p2293_p7 }
  0x1d   : > { %p2296_p10 = pneg %p2295_p9 }
  0x1f   : > { %p2301_p12 = pnand %p2299_p11, %p2296_p10 }
  0x21   : > { %2304 = shalt.err (!%p2301_p12)
}
  0x22   : > { %s2305_s28 = scalar_lea.vmem %s2644_s22, 1024  ;;  %p2313_p5 = scmp.lt.s32.totalorder %s2644_s22, %s2644_s22 }
  0x23   : > { %p2306_p13 = scmp.ne.s32.totalorder %s2644_s22, %s2305_s28  ;;  %p2314_p4 = scmp.lt.s32.totalorder %s2305_s28, %s2305_s28 }
  0x25   : > { %p2308_p0 = pnand %p2306_p13, %p2671_p8  ;;  %p2315_p7 = por %p2314_p4, %p2313_p5 }
  0x27   : > { %p2309_p2 = pneg %p2308_p0 }
  0x29   : > { %p2316_p9 = pnand %p2315_p7, %p2309_p2 }
  0x2b   : > { %2319 = shalt.err (!%p2316_p9)
}
  0x2c   : > { %s3249_s30 = smov 64   ;;  %s3255_s12 = smov 4  }
  0x2d   : > { %2148 = dma.hbm_to_vmem [thread:$0]  (!%p2655_p6), %s3263_s1, 1024, %s2644_s22, [#allocation6], %s3249_s30, %s3249_s30, %s3255_s12  }
  0x2e   : > { %s2320_s25 = scalar_lea.hbm %s3241_s5, 2048 }
  0x2f   : > { %p2321_p4 = scmp.ne.s32.totalorder %s3241_s5, %s2320_s25  ;;  %p2327_p12 = scmp.lt.u32.totalorder %s2320_s25, %s3241_s5 }
  0x31   : > { %p2323_p10 = pnand %p2321_p4, %p2671_p8 }
  0x33   : > { %p2324_p11 = pneg %p2323_p10 }
  0x35   : > { %p2329_p13 = pnand %p2327_p12, %p2324_p11 }
  0x37   : > { %2332 = shalt.err (!%p2329_p13)
}
  0x38   : > { %s2333_s22 = scalar_lea.vmem %s2659_s26, 2048  ;;  %p2341_p7 = scmp.lt.s32.totalorder %s2659_s26, %s2659_s26 }
  0x39   : > { %p2334_p0 = scmp.ne.s32.totalorder %s2659_s26, %s2333_s22  ;;  %p2342_p9 = scmp.lt.s32.totalorder %s2333_s22, %s2333_s22 }
  0x3b   : > { %p2336_p2 = pnand %p2334_p0, %p2671_p8  ;;  %p2343_p4 = por %p2342_p9, %p2341_p7 }
  0x3d   : > { %p2337_p5 = pneg %p2336_p2 }
  0x3f   : > { %p2344_p10 = pnand %p2343_p4, %p2337_p5 }
  0x41   : > { %2347 = shalt.err (!%p2344_p10)
}
  0x42   : > { %s3253_s11 = smov 128   ;;  %s3254_s8 = smov 8  }
  0x43   : > { %2154 = dma.hbm_to_vmem [thread:$0]  (!%p2655_p6), %s3241_s5, 2048, %s2659_s26, [#allocation9], %s3253_s11, %s3253_s11, %s3254_s8  }
  0x44   : > { %s2348_s21 = scalar_lea.hbm %s3239_s3, 1024 }
  0x45   : > { %p2349_p11 = scmp.ne.s32.totalorder %s3239_s3, %s2348_s21  ;;  %p2355_p0 = scmp.lt.u32.totalorder %s2348_s21, %s3239_s3 }
  0x47   : > { %p2351_p12 = pnand %p2349_p11, %p2671_p8 }
  0x49   : > { %p2352_p13 = pneg %p2351_p12 }
  0x4b   : > { %p2357_p2 = pnand %p2355_p0, %p2352_p13 }
  0x4d   : > { %2360 = shalt.err (!%p2357_p2)
}
  0x4e   : > { %s2361_s10 = scalar_lea.vmem %s326_s29, 1024  ;;  %p2369_p4 = scmp.lt.s32.totalorder %s326_s29, %s326_s29 }
  0x4f   : > { %p2362_p5 = scmp.ne.s32.totalorder %s326_s29, %s2361_s10  ;;  %p2370_p10 = scmp.lt.s32.totalorder %s2361_s10, %s2361_s10 }
  0x51   : > { %p2364_p7 = pnand %p2362_p5, %p2671_p8  ;;  %p2371_p1 = por %p2370_p10, %p2369_p4 }
  0x53   : > { %p2365_p9 = pneg %p2364_p7 }
  0x55   : > { %p2372_p3 = pnand %p2371_p1, %p2365_p9 }
  0x57   : > { %2375 = shalt.err (!%p2372_p3)
}
  0x58   : > { %s3265_s26 = smov 64   ;;  %s2549_s14 = smov [#allocation10]  }
  0x59   : > { %2151 = dma.hbm_to_vmem [thread:$0]  (!%p2655_p6), %s3239_s3, 1024, %s326_s29, [#allocation6], %s3265_s26, %s3265_s26, %s3255_s12  }
  0x5a   : > { %s357_s15 = sshll.u32 %s2549_s14, 4  ;;  %s2550_s21 = smov [#allocation11]   ;;  %s358_s15 = int_to_ptr.vmem [resolvable:$true] %s357_s15 }
  0x5b   : > { %s373_s25 = sshll.u32 %s2550_s21, 4  ;;  %s2376_s10 = scalar_lea.hbm %s3243_s7, 512  ;;  %s374_s25 = int_to_ptr.vmem [resolvable:$true] %s373_s25 }
  0x5c   : > { %p2377_p1 = scmp.ne.s32.totalorder %s3243_s7, %s2376_s10  ;;  %p2383_p12 = scmp.lt.u32.totalorder %s2376_s10, %s3243_s7 }
  0x5e   : > { %p2379_p3 = pnand %p2377_p1, %p2671_p8 }
  0x60   : > { %p2380_p11 = pneg %p2379_p3 }
  0x62   : > { %p2385_p13 = pnand %p2383_p12, %p2380_p11 }
  0x64   : > { %2388 = shalt.err (!%p2385_p13)
}
  0x65   : > { %s2389_s29 = scalar_lea.vmem %s358_s15, 512  ;;  %p2397_p7 = scmp.lt.s32.totalorder %s358_s15, %s358_s15 }
  0x66   : > { %p2390_p0 = scmp.ne.s32.totalorder %s358_s15, %s2389_s29  ;;  %p2398_p9 = scmp.lt.s32.totalorder %s2389_s29, %s2389_s29 }
  0x68   : > { %p2392_p2 = pnand %p2390_p0, %p2671_p8  ;;  %p2399_p4 = por %p2398_p9, %p2397_p7 }
  0x6a   : > { %p2393_p5 = pneg %p2392_p2 }
  0x6c   : > { %p2400_p10 = pnand %p2399_p4, %p2393_p5 }
  0x6e   : > { %2403 = shalt.err (!%p2400_p10)
}
  0x6f   : > { %s3266_s11 = smov 8   ;;  %s3267_s8 = smov 128  }
  0x70   : > { %2157 = dma.hbm_to_vmem [thread:$0]  (!%p2655_p6), %s3243_s7, 512, %s358_s15, [#allocation9], %s3267_s8, %s3267_s8, %s3266_s11  }
  0x71   : > { %s2404_s28 = scalar_lea.hbm %s3245_s9, 1024 }
  0x72   : > { %p2405_p1 = scmp.ne.s32.totalorder %s3245_s9, %s2404_s28  ;;  %p2411_p12 = scmp.lt.u32.totalorder %s2404_s28, %s3245_s9 }
  0x74   : > { %p2407_p3 = pnand %p2405_p1, %p2671_p8 }
  0x76   : > { %p2408_p11 = pneg %p2407_p3 }
  0x78   : > { %p2413_p13 = pnand %p2411_p12, %p2408_p11 }
  0x7a   : > { %2416 = shalt.err (!%p2413_p13)
}
  0x7b   : > { %s2417_s1 = scalar_lea.vmem %s374_s25, 1024  ;;  %p2425_p7 = scmp.lt.s32.totalorder %s374_s25, %s374_s25 }
  0x7c   : > { %p2418_p0 = scmp.ne.s32.totalorder %s374_s25, %s2417_s1  ;;  %p2426_p9 = scmp.lt.s32.totalorder %s2417_s1, %s2417_s1 }
  0x7e   : > { %p2420_p2 = pnand %p2418_p0, %p2671_p8  ;;  %p2427_p4 = por %p2426_p9, %p2425_p7 }
  0x80   : > { %p2421_p5 = pneg %p2420_p2 }
  0x82   : > { %p2428_p10 = pnand %p2427_p4, %p2421_p5 }
  0x84   : > { %2431 = shalt.err (!%p2428_p10)
}
  0x85   : > { %2160 = dma.hbm_to_vmem [thread:$0]  (!%p2655_p6), %s3245_s9, 1024, %s374_s25, [#allocation12], %s3265_s26, %s3265_s26, %s3255_s12  }
  0x86   : > { %s1928_s27 = sadd.s32 4294967294, %s2540_s20   ;;  %s2787_s16 = sadd.s32 1, %s2540_s20  }
  0x87   : > { %s37_s8 = sadd.s32 1, %s2536_s19  ;;  %s34_s13 = ssub.s32 %s2540_s20, %s2787_s16 }
  0x88   : > { %p44_p8 = scmp.ne.s32.totalorder %s2536_s19, %s2532_s18  ;;  %p35_p1 = scmp.eq.s32.totalorder %s34_s13, 0 }
  0x89   : > { %p45_p3 = scmp.eq.s32.totalorder %s2540_s20, 0  ;;  %p50_p11 = scmp.ne.s32.totalorder %s2532_s18, %s2528_s17 }
  0x8a   : > { %p284_p12 = scmp.eq.s32.totalorder %s2639_s23, 1  ;;  %p3268_p0 = scmp.eq.s32.totalorder %s2639_s23, 0 }
  0x8b   : > { %s2799_s14 = scalar_select %p35_p1, %s2536_s19, %s37_s8  }
  0x8c   : > { %p46_p13 = por %p45_p3, %p44_p8  ;;  %p2803_p2 = por %p3268_p0, %p50_p11 }
  0x8d   : > { %p2807_p6 = por %p284_p12, %p44_p8  ;;  %p290_p5 = scmp.eq.s32.totalorder %s1928_s27, 1 }
  0x8e   : > { %p2174_p7 = scmp.lt.s32.totalorder %s2540_s20, 2  ;;  %s390_s28 = sand.u32 1, %s2536_s19  }
  0x8f   : > { %s3270_s25 = scalar_select %p2807_p6, 1, 0 }
  0x90   : > { %p2813_p9 = por %p290_p5, %p50_p11  ;;  %s1936_s10 = sshll.u32 %s390_s28, 3 }
  0x91   : > { %s2032_s30 = sshll.u32 %s2540_s20, 7  ;;  %s394_s11 = scalar_lea.vmem [#allocation2], %s1936_s10 }
  0x92   : > { %s3271_s22 = scalar_select %p2813_p9, 1, 0 }
  0x93   : > { %s2821_s15 = scalar_lea.hbm %s3236_s0, %s2032_s30  ;;  %s401_s8 = sshll.u32 %s394_s11, 4  ;;  %s2827_s8 = int_to_ptr.vmem [resolvable:$true] %s401_s8 }
  0x94   : > { %p2823_p4 = pnand %p2174_p7, %p46_p13  ;;  %s2829_s13 = scalar_lea.sflag [#allocation3], %s390_s28 }
  0x95   : > { %s2432_s12 = scalar_lea.hbm %s2821_s15, 128  ;;  %s2437_s29 = scalar_lea.hbm %s3236_s0, 256 }
  0x96   : > { %p2433_p10 = scmp.ne.s32.totalorder %s2821_s15, %s2432_s12  ;;  %p2434_p8 = pneg %p2823_p4 }
  0x97   : > { %p2438_p11 = scmp.lt.u32.totalorder %s2821_s15, %s3236_s0  ;;  %p2439_p12 = scmp.lt.u32.totalorder %s2437_s29, %s2432_s12 }
  0x98   : > { %p2435_p1 = pnand %p2434_p8, %p2433_p10  ;;  %p2441_p0 = scmp.lt.u32.totalorder %s2432_s12, %s2821_s15 }
  0x99   : > { %p2440_p13 = por %p2439_p12, %p2438_p11 }
  0x9a   : > { %p2436_p3 = pneg %p2435_p1 }
  0x9b   : > { %p2442_p5 = por %p2441_p0, %p2440_p13 }
  0x9d   : > { %p2443_p7 = pnand %p2442_p5, %p2436_p3 }
  0x9f   : > { %2446 = shalt.err (!%p2443_p7)
}
  0xa0   : > { %s2447_s28 = scalar_lea.vmem %s2827_s8, 128  ;;  %s2551_s10 = smov [#allocation2]  }
  0xa1   : > { %p2448_p10 = scmp.ne.s32.totalorder %s2827_s8, %s2447_s28  ;;  %s2452_s30 = sshll.u32 %s2551_s10, 4  ;;  %s2453_s30 = int_to_ptr.vmem [resolvable:$false] %s2452_s30 }
  0xa2   : > { %s2454_s1 = scalar_lea.vmem %s2453_s30, 256  ;;  %p2455_p6 = scmp.lt.s32.totalorder %s2827_s8, %s2453_s30 }
  0xa3   : > { %p2450_p1 = pnand %p2448_p10, %p2434_p8  ;;  %p2456_p11 = scmp.lt.s32.totalorder %s2454_s1, %s2447_s28 }
  0xa5   : > { %p2451_p9 = pneg %p2450_p1  ;;  %p2457_p12 = por %p2456_p11, %p2455_p6 }
  0xa7   : > { %p2458_p13 = pnand %p2457_p12, %p2451_p9 }
  0xa9   : > { %2461 = shalt.err (!%p2458_p13)
}
  0xaa   : > { %s3273_s12 = smov 4   ;;  %p3274_p8 = scmp.ne.s32.totalorder %s3261_s24, 0 }
  0xab   : > { %2164 = dma.hbm_to_vmem [thread:$0]  (!%p2823_p4), %s2821_s15, 128, %s2827_s8, %s2829_s13, %s3265_s26, %s3265_s26, %s3273_s12  }
  0xac   : > { %413 = sbr.rel (%p3274_p8) target bundleno = 1238 (0x4d6), region = 64  ;;  %s2863_s29 = sand.u32 (!%p3274_p8), 1, %s2532_s18  }
  0xad   : > { %s1940_s11 = sshll.u32 (!%p3274_p8), %s2863_s29, 3  ;;  %s416_s28 = scalar_lea.sflag (!%p3274_p8), [#allocation3], %s2863_s29 }
  0xae   : > { %s2867_s10 = scalar_lea.vmem (!%p3274_p8), [#allocation2], %s1940_s11 }
  0xb3   : > { %2507 = dma.done.wait (%p2803_p2), %s416_s28, 128  }
  0xb4   : > { %2509 = vsyncadd (%p2803_p2), %s416_s28, 4294967168  ;;  %p3275_p6 = scmp.eq.s32.totalorder %s2639_s23, 0 }
  0xb6   : > { %2511 = dma.done.wait (%p3275_p6), [#allocation6], 2048   ;;  %p3276_p9 = pmov %p3275_p6 }
  0xb7   : > { %p3277_p4 = pmov %p3275_p6 }
  0xb8   : > { %2513 = vsyncadd (%p3276_p9), [#allocation6], 4294965248 }
  0xb9   : > { %2515 = dma.done.wait (%p3277_p4), [#allocation9], 2560   ;;  %p3278_p3 = pmov %p3277_p4 }
  0xbb   : > { %2517 = vsyncadd (%p3278_p3), [#allocation9], 4294964736  ;;  %p3279_p0 = pmov %p3278_p3 }
  0xbd   : > { %2519 = dma.done.wait (%p3279_p0), [#allocation12], 1024   ;;  %p3280_p5 = pmov %p3279_p0 }
  0xbe   : > { %v2552_v0 = vmov 0.0   ;;  %vm2553_vm0 = vmmov 0   ;;  %v2227_v1 = vld [vmem:[#allocation5] sm:$0xff]   ;;  %v2228_v2 = vld [vmem:[#allocation5 + $0x8] sm:$0xff]   ;;  %v2229_v3 = vld [vmem:[#allocation5 + $0x10] sm:$0xff]   ;;  %v2554_v44 = vmov 0   ;;  %v735_v63 = vlaneseq }
  0xbf   : > { %2521 = vsyncadd (%p3280_p5), [#allocation12], 4294966272  ;;  %2061 = vmatprep.subr.bf16.mxu0 %v2552_v0  ;;  %2077 = vmatprep.mubr.msk.bf16.mxu0 %vm2553_vm0, %v2552_v0  ;;  %v2236_v4 = vld [vmem:[#allocation7] sm:$0xff]   ;;  %v2230_v5 = vld [vmem:[#allocation5 + $0x18] sm:$0xff]   ;;  %s3282_s1 = sld [smem:[#allocation20_spill]]  ;;  %s1946_s12 = sshll.u32 %s2863_s29, 4 }
  0xc0   : > { %2081 = vmatprep.subr.bf16.mxu1 %v2552_v0  ;;  %2097 = vmatprep.mubr.msk.bf16.mxu1 %vm2553_vm0, %v2552_v0  ;;  %v2237_v6 = vld [vmem:[#allocation7 + $0x8] sm:$0xff]   ;;  %v2231_v7 = vld [vmem:[#allocation5 + $0x20] sm:$0xff]   ;;  %v2238_v8 = vld [vmem:[#allocation7 + $0x10] sm:$0xff]   ;;  %s477_s24 = scalar_lea.vmem [#allocation13], %s1946_s12  ;;  %s2033_s21 = sshll.u32 %s2639_s23, 8 }
  0xc1   : > { %2062 = vmatpush3.bf16.msra.mxu0 %v2227_v1  ;;  %2082 = vmatpush3.bf16.msra.mxu1 %v2236_v4  ;;  %v2232_v9 = vld [vmem:[#allocation5 + $0x28] sm:$0xff]   ;;  %v2239_v10 = vld [vmem:[#allocation7 + $0x18] sm:$0xff]   ;;  %v2233_v11 = vld [vmem:[#allocation5 + $0x30] sm:$0xff]   ;;  %v2922_v1 = vshrl.u32 %v735_v63, 7  ;;  %s1807_s26 = sshll.u32 %s477_s24, 4  ;;  %s3284_s27 = sld [smem:[#allocation22_spill]]  ;;  %s3187_s26 = int_to_ptr.vmem [resolvable:$true] %s1807_s26 }
  0xc2   : > { %2063 = vmatprep.subr.bf16.mxu0 %v2552_v0  ;;  %2083 = vmatprep.subr.bf16.mxu1 %v2552_v0  ;;  %v2240_v12 = vld [vmem:[#allocation7 + $0x20] sm:$0xff]   ;;  %v2234_v13 = vld [vmem:[#allocation5 + $0x38] sm:$0xff]   ;;  %v2241_v14 = vld [vmem:[#allocation7 + $0x28] sm:$0xff]   ;;  %s1794_s30 = scalar_lea.sflag [#allocation4], %s2863_s29  ;;  %s2462_s23 = scalar_lea.vmem %s3187_s26, 256 }
  0xc3   : > { %v2235_v15 = vld [vmem:[%s2867_s10] sm:$0xff]   ;;  %v2244_v18 = vld [vmem:[#allocation8] ss:$8 sps:$4 sm:$0xff]   ;;  %v2246_v19 = vld [vmem:[#allocation8 + $0x4] ss:$8 sps:$4 sm:$0xff]   ;;  %vm911_vm1 = vcmp.lt.s32.totalorder %v2922_v1, 7  ;;  %p2463_p2 = scmp.ne.s32.totalorder %s3187_s26, %s2462_s23 }
  0xc4   : > { %v2242_v16 = vld [vmem:[#allocation7 + $0x30] sm:$0xff]   ;;  %v2243_v17 = vld [vmem:[#allocation7 + $0x38] sm:$0xff]   ;;  %v2252_v22 = vld [vmem:[#allocation8 + $0x24] ss:$8 sps:$4 sm:$0xff]   ;;  %vm939_vm3 = vcmp.lt.s32.totalorder %v2922_v1, 6  ;;  %vm967_vm5 = vcmp.lt.s32.totalorder %v2922_v1, 5 }
  0xc5   : > { %2064 = vmatpush3.bf16.msra.mxu0 %v2228_v2  ;;  %2084 = vmatpush3.bf16.msra.mxu1 %v2237_v6  ;;  %v2249_v20 = vld [vmem:[#allocation8 + $0x14] ss:$8 sps:$4 sm:$0xff]   ;;  %v2247_v21 = vld [vmem:[#allocation8 + $0x10] ss:$8 sps:$4 sm:$0xff]   ;;  %v2250_v23 = vld [vmem:[#allocation8 + $0x20] ss:$8 sps:$4 sm:$0xff]  }
  0xc6   : > { %2065 = vmatprep.subr.bf16.mxu0 %v2552_v0  ;;  %2085 = vmatprep.subr.bf16.mxu1 %v2552_v0  ;;  %v2255_v24 = vld [vmem:[#allocation8 + $0x34] ss:$8 sps:$4 sm:$0xff]   ;;  %v2253_v25 = vld [vmem:[#allocation8 + $0x30] ss:$8 sps:$4 sm:$0xff]   ;;  %v2258_v26 = vld [vmem:[#allocation8 + $0x44] ss:$8 sps:$4 sm:$0xff]  }
  0xc7   : > { %v2256_v27 = vld [vmem:[#allocation8 + $0x40] ss:$8 sps:$4 sm:$0xff]   ;;  %v2261_v28 = vld [vmem:[#allocation8 + $0x54] ss:$8 sps:$4 sm:$0xff]   ;;  %v2259_v29 = vld [vmem:[#allocation8 + $0x50] ss:$8 sps:$4 sm:$0xff]   ;;  %s3192_s13 = scalar_lea.hbm %s3284_s27, %s2033_s21 }
  0xc8   : > { %v1947_v30 = vld [vmem:[%s3238_s2] ss:$0 sm:$0xff]  ;;  %v2264_v40 = vld [vmem:[#allocation8 + $0x64] ss:$8 sps:$4 sm:$0xff]   ;;  %v2262_v41 = vld [vmem:[#allocation8 + $0x60] ss:$8 sps:$4 sm:$0xff]  }
  0xc9   : > { %2066 = vmatpush3.bf16.msra.mxu0 %v2229_v3  ;;  %2086 = vmatpush3.bf16.msra.mxu1 %v2238_v8  ;;  %v2267_v42 = vld [vmem:[#allocation8 + $0x74] ss:$8 sps:$4 sm:$0xff]   ;;  %v2265_v43 = vld [vmem:[#allocation8 + $0x70] ss:$8 sps:$4 sm:$0xff]   ;;  %v2268_v55 = vld [vmem:[#allocation11] sm:$0xff]   ;;  %v741_v2 = vsub.s32 1, %v2922_v1 }
  0xca   : > { %2067 = vmatprep.subr.bf16.mxu0 %v2552_v0  ;;  %2087 = vmatprep.subr.bf16.mxu1 %v2552_v0  ;;  %v1957_v45 = vld [vmem:[%s3240_s4] ss:$0 sm:$0xff]  ;;  %v2269_v56 = vld [vmem:[#allocation11 + $0x8] sm:$0xff]   ;;  %v2271_v58 = vld [vmem:[#allocation11 + $0x18] sm:$0xff]   ;;  %vm995_vm7 = vcmp.lt.s32.totalorder %v2922_v1, 4  ;;  %vm1023_vm9 = vcmp.lt.s32.totalorder %v2922_v1, 3 }
  0xcb   : > { %v2270_v57 = vld [vmem:[#allocation11 + $0x10] sm:$0xff]   ;;  %v2272_v59 = vld [vmem:[#allocation11 + $0x20] sm:$0xff]   ;;  %v2273_v60 = vld [vmem:[#allocation11 + $0x28] sm:$0xff]   ;;  %vm1051_vm10 = vcmp.lt.s32.totalorder %v2922_v1, 2  ;;  %vm1079_vm12 = vcmp.lt.s32.totalorder %v2922_v1, 1  ;;  %s3283_s10 = sld [smem:[#allocation21_spill]] }
  0xcc   : > { %v2274_v61 = vld [vmem:[#allocation11 + $0x30] sm:$0xff]   ;;  %v2275_v62 = vld [vmem:[#allocation11 + $0x38] sm:$0xff]   ;;  %v2930_v8 = vld [vmem:[#allocation10 + $0x1] ss:$0 sm:$0xff]  ;;  %p3285_p7 = scmp.ne.s32.totalorder %s3270_s25, 0 }
  0xcd   : > { %2068 = vmatpush3.bf16.msra.mxu0 %v2230_v5  ;;  %2088 = vmatpush3.bf16.msra.mxu1 %v2239_v10  ;;  %v733_v3 = vld [vmem:[%s3242_s6] sm:$0x3] }
  0xce   : > { %2069 = vmatprep.subr.bf16.mxu0 %v2552_v0  ;;  %2089 = vmatprep.subr.bf16.mxu1 %v2552_v0  ;;  %v742_v4 = vrot.slane %v733_v3, %v741_v2  ;;  %p2464_p10 = pnand %p2463_p2, %p3285_p7 }
  0xd0   : > { %p2465_p1 = pneg %p2464_p10 }
  0xd1   : > { %2070 = vmatpush3.bf16.msra.mxu0 %v2231_v7  ;;  %2090 = vmatpush3.bf16.msra.mxu1 %v2240_v12  ;;  %v2928_v7 = vld [vmem:[#allocation10] ss:$0 sm:$0xff] }
  0xd2   : > { %2071 = vmatprep.subr.bf16.mxu0 %v2552_v0  ;;  %2091 = vmatprep.subr.bf16.mxu1 %v2552_v0 }
  0xd5   : > { %2072 = vmatpush3.bf16.msra.mxu0 %v2232_v9  ;;  %2092 = vmatpush3.bf16.msra.mxu1 %v2241_v14  ;;  %v961_v14 = vmul.f32 0.0, %v2930_v8 }
  0xd6   : > { %2073 = vmatprep.subr.bf16.mxu0 %v2552_v0  ;;  %2093 = vmatprep.subr.bf16.mxu1 %v2552_v0 }
  0xd9   : > { %2074 = vmatpush3.bf16.msra.mxu0 %v2233_v11  ;;  %2094 = vmatpush3.bf16.msra.mxu1 %v2242_v16 }
  0xda   : > { %2075 = vmatprep.subr.bf16.mxu0 %v2552_v0  ;;  %2095 = vmatprep.subr.bf16.mxu1 %v2552_v0 }
  0xdd   : > { %2076 = vmatpush3.bf16.msra.mxu0 %v2234_v13  ;;  %2096 = vmatpush3.bf16.msra.mxu1 %v2243_v17  ;;  %v933_v13 = vmul.f32 0.0, %v2928_v7 }
  0xde   : > { %2101 = vmatprep.subr.bf16.mxu1 %v2552_v0  ;;  %825 = vmatprep.subr.bf16.mxu0 %v2246_v19  ;;  %v2937_v19 = vld [vmem:[#allocation10 + $0x3] ss:$0 sm:$0xff] }
  0xdf   : > { %v963_v17 = vadd.f32 %v961_v14, %v933_v13 }
  0xe0   : > { %2078 = vmatmul.mubr.bf16.vlgmr.msra.gmra.mrb[0].mxu0 %v2235_v15  ;;  %v2934_v15 = vld [vmem:[#allocation10 + $0x2] ss:$0 sm:$0xff] }
  0xe1   : > { %826 = vmatpush1.bf16.msra.mxu0 %v2244_v18  ;;  %857 = vmatprep.mubr.bf16.mxu0 %v2554_v44  ;;  %v989_v18 = vmul.f32 0.0, %v2934_v15 }
  0xe2   : > { %827 = vmatprep.subr.bf16.mxu0 %v2249_v20 }
  0xe3   : > { %v991_v20 = vadd.f32 %v989_v18, %v963_v17 }
  0xe5   : > { %828 = vmatpush1.bf16.msra.mxu0 %v2247_v21  ;;  %v1017_v21 = vmul.f32 0.0, %v2937_v19 }
  0xe6   : > { %829 = vmatprep.subr.bf16.mxu0 %v2252_v22  ;;  %v2940_v22 = vld [vmem:[#allocation10 + $0x4] ss:$0 sm:$0xff] }
  0xe9   : > { %830 = vmatpush1.bf16.msra.mxu0 %v2250_v23  ;;  %v884_v23 = vadd.s32 8, %v2922_v1 }
  0xea   : > { %831 = vmatprep.subr.bf16.mxu0 %v2255_v24 }
  0xed   : > { %832 = vmatpush1.bf16.msra.mxu0 %v2253_v25  ;;  %v1019_v25 = vadd.f32 %v1017_v21, %v991_v20 }
  0xee   : > { %833 = vmatprep.subr.bf16.mxu0 %v2258_v26  ;;  %v1045_v26 = vmul.f32 0.0, %v2940_v22 }
  0xf1   : > { %834 = vmatpush1.bf16.msra.mxu0 %v2256_v27 }
  0xf2   : > { %835 = vmatprep.subr.bf16.mxu0 %v2261_v28  ;;  %v2944_v28 = vld [vmem:[#allocation10 + $0x5] ss:$0 sm:$0xff] }
  0xf5   : > { %836 = vmatpush1.bf16.msra.mxu0 %v2259_v29 }
  0xf6   : > { %837 = vmatprep.subr.bf16.mxu0 %v2264_v40 }
  0xf9   : > { %838 = vmatpush1.bf16.msra.mxu0 %v2262_v41 }
  0xfa   : > { %839 = vmatprep.subr.bf16.mxu0 %v2267_v42 }
  0xfd   : > { %840 = vmatpush1.bf16.msra.mxu0 %v2265_v43 }
 0x1b3   : > { %v592_v31 = vpop.f32.mrb[0].mxu0 }
 0x1b4   : > { %v593_v32 = vadd.f32 %v1947_v30, %v592_v31  ;;  %v2079_v33 = vpop.f32.mrb[1].mxu0 }
 0x1b5   : > { %v595_v34 = vpop.f32.mrb[2].mxu0  ;;  %v1047_v33 = vadd.f32 %v1045_v26, %v1019_v25 }
 0x1b6   : > { %v596_v35 = vadd.f32 %v1947_v30, %v595_v34  ;;  %v2080_v36 = vpop.f32.mrb[3].mxu0  ;;  %v599_v37 = vmax.f32 %v593_v32, 0.0  ;;  %v2946_v30 = vand.u32 15, %v884_v23  ;;  %v737_v32 = vsub.s32 0, %v2922_v1 }
 0x1b7   : > { %v1073_v34 = vmul.f32 0.0, %v2944_v28 }
 0x1b8   : > { %v600_v38 = vmax.f32 %v596_v35, 0.0  ;;  %v2950_v35 = vld [vmem:[#allocation10 + $0x6] ss:$0 sm:$0xff]  ;;  %v915_v36 = vadd.s32 4294967281, %v2946_v30  ;;  %v738_v40 = vrot.slane %v733_v3, %v737_v32  ;;  %v2963_v43 = vadd.s32 4294967284, %v2946_v30 }
 0x1b9   : > { %v1075_v41 = vadd.f32 %v1073_v34, %v1047_v33  ;;  %v1101_v42 = vmul.f32 0.0, %v2950_v35  ;;  %v2970_v44 = vadd.s32 4294967285, %v2946_v30 }
 0x1ba   : > { %v601_v39 = vpack.c.bf16 %v600_v38, %v599_v37  ;;  %v943_v37 = vadd.s32 4294967282, %v2946_v30  ;;  %v2955_v38 = vand.u32 15, %v2922_v1  ;;  %vm917_vm2 = vcmp.ge.s32.totalorder %v915_v36, 0 }
 0x1bb   : > { %vm1001_vm8 = vcmp.ge.s32.totalorder %v2963_v43, 0  ;;  %vm1029_vm11 = vcmp.ge.s32.totalorder %v2970_v44, 0 }
 0x1bc   : > { %2098 = vmatmul.mubr.bf16.vlgmr.msra.gmra.mrb[0].mxu1 %v601_v39  ;;  %v2958_v39 = vadd.s32 4294967283, %v2946_v30  ;;  %vm945_vm4 = vcmp.ge.s32.totalorder %v943_v37, 0 }
 0x1bd   : > { %2117 = vmatprep.mubr.msk.bf16.mxu1 %vm2553_vm0, %v2552_v0  ;;  %2102 = vmatpush3.bf16.msra.mxu1 %v2268_v55  ;;  %v2990_v55 = vadd.s32 4294967287, %v2946_v30 }
 0x1be   : > { %2103 = vmatprep.subr.bf16.mxu1 %v2552_v0  ;;  %vm973_vm6 = vcmp.ge.s32.totalorder %v2958_v39, 0  ;;  %v1992_v39 = vld [vmem:[#allocation10 + $0x8] ss:$0 sm:$0xff] }
 0x1bf   : > { %vm1085_vm0 = vcmp.ge.s32.totalorder %v2990_v55, 0 }
 0x1c1   : > { %2104 = vmatpush3.bf16.msra.mxu1 %v2269_v56  ;;  %v2993_v56 = vadd.s32 4294967291, %v2955_v38 }
 0x1c2   : > { %2105 = vmatprep.subr.bf16.mxu1 %v2552_v0 }
 0x1c3   : > { %vm1176_vm14 = vcmp.ge.s32.totalorder %v2993_v56, 0  ;;  %v1996_v56 = vld [vmem:[#allocation10 + $0xc] ss:$0 sm:$0xff] }
 0x1c5   : > { %2106 = vmatpush3.bf16.msra.mxu1 %v2270_v57 }
 0x1c6   : > { %2107 = vmatprep.subr.bf16.mxu1 %v2552_v0 }
 0x1c9   : > { %2108 = vmatpush3.bf16.msra.mxu1 %v2271_v58  ;;  %v2999_v58 = vadd.s32 4294967292, %v2955_v38 }
 0x1ca   : > { %2109 = vmatprep.subr.bf16.mxu1 %v2552_v0 }
 0x1cd   : > { %2110 = vmatpush3.bf16.msra.mxu1 %v2272_v59 }
 0x1ce   : > { %2111 = vmatprep.subr.bf16.mxu1 %v2552_v0 }
 0x1d1   : > { %2112 = vmatpush3.bf16.msra.mxu1 %v2273_v60 }
 0x1d2   : > { %2113 = vmatprep.subr.bf16.mxu1 %v2552_v0 }
 0x1d5   : > { %2114 = vmatpush3.bf16.msra.mxu1 %v2274_v61 }
 0x1d6   : > { %2115 = vmatprep.subr.bf16.mxu1 %v2552_v0 }
 0x1d9   : > { %2116 = vmatpush3.bf16.msra.mxu1 %v2275_v62  ;;  %v3006_v62 = vadd.s32 4294967293, %v2955_v38 }
 0x28f   : > { %v707_v46 = vpop.f32.mrb[0].mxu1 }
 0x290   : > { %v708_v47 = vadd.f32 %v1957_v45, %v707_v46  ;;  %v2099_v48 = vpop.f32.mrb[1].mxu1  ;;  %v2975_v46 = vadd.s32 4294967289, %v2955_v38 }
 0x291   : > { %v710_v49 = vpop.f32.mrb[2].mxu1  ;;  %v2978_v48 = vadd.s32 4294967286, %v2946_v30 }
 0x292   : > { %v711_v50 = vadd.f32 %v1957_v45, %v710_v49  ;;  %v2100_v51 = vpop.f32.mrb[3].mxu1  ;;  %v714_v52 = vmax.f32 %v708_v47, 0.0  ;;  %v2972_v45 = vld [vmem:[#allocation10 + $0x7] ss:$0 sm:$0xff]  ;;  %v1103_v49 = vadd.f32 %v1101_v42, %v1075_v41  ;;  %vm1130_vm13 = vcmp.ge.s32.totalorder %v2975_v46, 0 }
 0x293   : > { %v1266_v46 = vadd.s32 4294967295, %v2955_v38 }
 0x294   : > { %v715_v53 = vmax.f32 %v711_v50, 0.0  ;;  %v1124_v50 = vmul.f32 0.0, %v2972_v45 }
 0x296   : > { %v716_v54 = vpack.c.bf16 %v715_v53, %v714_v52  ;;  %v2985_v52 = vadd.s32 4294967290, %v2955_v38  ;;  %v1126_v61 = vadd.f32 %v1124_v50, %v1103_v49  ;;  %v1993_v49 = vld [vmem:[#allocation10 + $0x9] ss:$0 sm:$0xff] }
 0x298   : > { %858 = vmatmul.mubr.bf16.vlgmr.msra.gmra.mrb[4].mxu0 %v716_v54  ;;  %vm1153_vm15 = vcmp.ge.s32.totalorder %v2985_v52, 0 }
 0x36b   : > { %v859_v5 = vpop.f32.mrb[4].mxu0 }
 0x36c   : > { %v861_v6 = vpop.f32.mrb[5].mxu0  ;;  %v860_v47 = vadd.f32 %v859_v5, %v738_v40 }
 0x36d   : > { %v862_v9 = vadd.f32 %v861_v6, %v742_v4  ;;  %v863_v10 = vpop.f32.mrb[6].mxu0 }
 0x36e   : > { %v865_v0 = vpop.f32.mrb[7].mxu0  ;;  %v864_v54 = vadd.f32 %v863_v10, %v738_v40 }
 0x36f   : > { %v1982_v11 = vmul.f32 -1.442695, %v862_v9  ;;  %v866_v12 = vadd.f32 %v865_v0, %v742_v4 }
 0x371   : > { %2276 = vpow2.f32 %v1982_v11  ;;  %v1983_v16 = vmul.f32 -1.442695, %v866_v12 }
 0x373   : > { %2278 = vpow2.f32 %v1983_v16 }
 0x37b   : > { %v2277_v24 = vpop.eup %2276 }
 0x37c   : > { %v874_v27 = vadd.f32 1.0, %v2277_v24 }
 0x37d   : > { %v2279_v29 = vpop.eup %2278 }
 0x37e   : > { %2280 = vrcp.f32 %v874_v27  ;;  %v875_v31 = vadd.f32 1.0, %v2279_v29 }
 0x380   : > { %2282 = vrcp.f32 %v875_v31 }
 0x388   : > { %v2281_v51 = vpop.eup %2280 }
 0x389   : > { %v2987_v53 = vmul.f32 %v2281_v51, %v860_v47 }
 0x38a   : > { %v2283_v57 = vpop.eup %2282 }
 0x38b   : > { %v3001_v59 = vmul.f32 %v2283_v57, %v864_v54  ;;  %v909_v60 = vrot.slane %v2987_v53, 1  ;;  %v937_v63 = vrot.slane %v2987_v53, 2  ;;  %v965_v2 = vrot.slane %v2987_v53, 3 }
 0x38c   : > { %v993_v3 = vrot.slane %v2987_v53, 4  ;;  %v1021_v4 = vrot.slane %v2987_v53, 5  ;;  %v1049_v11 = vrot.slane %v2987_v53, 6  ;;  %v1243_v54 = vadd.s32 4294967294, %v2955_v38 }
 0x38d   : > { %v910_v5 = vrot.slane %v3001_v59, 1  ;;  %v938_v6 = vrot.slane %v3001_v59, 2  ;;  %v966_v9 = vrot.slane %v3001_v59, 3  ;;  %v994_v10 = vrot.slane %v3001_v59, 4 }
 0x38e   : > { %v1022_v0 = vrot.slane %v3001_v59, 5  ;;  %v1050_v12 = vrot.slane %v3001_v59, 6  ;;  %v1078_v13 = vrot.slane %v3001_v59, 7 }
 0x38f   : > { %v3025_v14 = vsel %vm911_vm1, %v909_v60, %v910_v5  ;;  %v3029_v16 = vsel %vm911_vm1, %v910_v5, %v909_v60  ;;  %v3033_v17 = vsel %vm939_vm3, %v937_v63, %v938_v6  ;;  %v3037_v18 = vsel %vm939_vm3, %v938_v6, %v937_v63  ;;  %v1994_v60 = vld [vmem:[#allocation10 + $0xa] ss:$0 sm:$0xff]  ;;  %v1995_v5 = vld [vmem:[#allocation10 + $0xb] ss:$0 sm:$0xff] }
 0x390   : > { %v927_v20 = vsel %vm917_vm2, %v3029_v16, 0.0  ;;  %v955_v21 = vsel %vm945_vm4, %v3037_v18, 0.0  ;;  %v3045_v23 = vsel %vm967_vm5, %v965_v2, %v966_v9  ;;  %v3049_v24 = vsel %vm967_vm5, %v966_v9, %v965_v2 }
 0x391   : > { %v934_v25 = vmul.f32 %v2928_v7, %v927_v20  ;;  %v962_v26 = vmul.f32 %v2930_v8, %v955_v21  ;;  %v983_v27 = vsel %vm973_vm6, %v3049_v24, 0.0  ;;  %v3058_v29 = vsel %vm995_vm7, %v993_v3, %v994_v10 }
 0x392   : > { %v3062_v31 = vsel %vm995_vm7, %v994_v10, %v993_v3  ;;  %v3066_v32 = vsel %vm1023_vm9, %v1021_v4, %v1022_v0  ;;  %v3070_v7 = vsel %vm1023_vm9, %v1022_v0, %v1021_v4  ;;  %v1077_v8 = vrot.slane %v2987_v53, 7 }
 0x393   : > { %v964_v33 = vadd.f32 %v962_v26, %v934_v25  ;;  %v990_v34 = vmul.f32 %v2934_v15, %v983_v27  ;;  %v1011_v36 = vsel %vm1001_vm8, %v3062_v31, 0.0  ;;  %v3079_v37 = vsel %vm1051_vm10, %v1049_v11, %v1050_v12 }
 0x394   : > { %v1039_v40 = vsel %vm1029_vm11, %v3070_v7, 0.0  ;;  %v3086_v41 = vsel %vm1051_vm10, %v1050_v12, %v1049_v11  ;;  %v3090_v15 = vsel %vm1079_vm12, %v1077_v8, %v1078_v13  ;;  %vm1199_vm1 = vcmp.ge.s32.totalorder %v2999_v58, 0 }
 0x395   : > { %v992_v42 = vadd.f32 %v990_v34, %v964_v33  ;;  %v1018_v43 = vmul.f32 %v2937_v19, %v1011_v36  ;;  %v3096_v47 = vsel %vm1079_vm12, %v1078_v13, %v1077_v8  ;;  %v1140_v44 = vsel %vm1130_vm13, %v3029_v16, 0.0  ;;  %v1997_v13 = vld [vmem:[#allocation10 + $0xd] ss:$0 sm:$0xff]  ;;  %v1999_v36 = vld [vmem:[#allocation10 + $0xf] ss:$0 sm:$0xff] }
 0x396   : > { %vm3281_vm2 = vcmp.ge.s32.totalorder %v2978_v48, 0  ;;  %v1147_v51 = vmul.f32 %v1992_v39, %v1140_v44  ;;  %vm1222_vm3 = vcmp.ge.s32.totalorder %v3006_v62, 0  ;;  %v1046_v19 = vmul.f32 %v2940_v22, %v1039_v40  ;;  %v1998_v62 = vld [vmem:[#allocation10 + $0xe] ss:$0 sm:$0xff]  ;;  %v2000_v44 = vld [vmem:[#allocation10 + $0x10] ss:$0 sm:$0xff] }
 0x397   : > { %v1067_v50 = vsel %vm3281_vm2, %v3086_v41, 0.0  ;;  %v1020_v57 = vadd.f32 %v1018_v43, %v992_v42  ;;  %v1163_v1 = vsel %vm1153_vm15, %v3037_v18, 0.0  ;;  %v1095_v48 = vsel %vm1085_vm0, %v3096_v47, 0.0 }
 0x398   : > { %v1149_v63 = vadd.f32 %v1147_v51, %v1126_v61  ;;  %v1170_v2 = vmul.f32 %v1993_v49, %v1163_v1  ;;  %v1186_v3 = vsel %vm1176_vm14, %v3049_v24, 0.0  ;;  %v1074_v22 = vmul.f32 %v2944_v28, %v1067_v50 }
 0x399   : > { %v1048_v4 = vadd.f32 %v1046_v19, %v1020_v57  ;;  %v1209_v52 = vsel %vm1199_vm1, %v3062_v31, 0.0  ;;  %v1193_v9 = vmul.f32 %v1994_v60, %v1186_v3  ;;  %vm1245_vm4 = vcmp.ge.s32.totalorder %v1243_v54, 0  ;;  %v2001_v19 = vld [vmem:[#allocation10 + $0x11] ss:$0 sm:$0xff] }
 0x39a   : > { %v1172_v6 = vadd.f32 %v1170_v2, %v1149_v63  ;;  %v1102_v55 = vmul.f32 %v2950_v35, %v1095_v48  ;;  %v1232_v61 = vsel %vm1222_vm3, %v3070_v7, 0.0  ;;  %v1216_v11 = vmul.f32 %v1995_v5, %v1209_v52  ;;  %v2002_v2 = vld [vmem:[#allocation10 + $0x12] ss:$0 sm:$0xff] }
 0x39b   : > { %v1076_v10 = vadd.f32 %v1074_v22, %v1048_v4  ;;  %vm1268_vm5 = vcmp.ge.s32.totalorder %v1266_v46, 0  ;;  %v1125_v58 = vmul.f32 %v2972_v45, %v2987_v53  ;;  %v1255_v12 = vsel %vm1245_vm4, %v3086_v41, 0.0 }
 0x39c   : > { %v1195_v0 = vadd.f32 %v1193_v9, %v1172_v6  ;;  %v1239_v21 = vmul.f32 %v1996_v56, %v1232_v61  ;;  %v1148_v35 = vmul.f32 %v1992_v39, %v3025_v14  ;;  %v1278_v26 = vsel %vm1268_vm5, %v3096_v47, 0.0 }
 0x39d   : > { %v1104_v28 = vadd.f32 %v1102_v55, %v1076_v10  ;;  %v1262_v8 = vmul.f32 %v1997_v13, %v1255_v12  ;;  %v1171_v34 = vmul.f32 %v1993_v49, %v3033_v17  ;;  %v1285_v42 = vmul.f32 %v1998_v62, %v1278_v26 }
 0x39e   : > { %v1218_v20 = vadd.f32 %v1216_v11, %v1195_v0  ;;  %v1194_v43 = vmul.f32 %v1994_v60, %v3045_v23  ;;  %v1306_v51 = vmul.f32 %v1999_v36, %v2987_v53  ;;  %v1217_v39 = vmul.f32 %v1995_v5, %v3058_v29  ;;  %v2003_v5 = vld [vmem:[#allocation10 + $0x13] ss:$0 sm:$0xff] }
 0x39f   : > { %v1127_v25 = vadd.f32 %v1125_v58, %v1104_v28  ;;  %v1311_v57 = vadd.s32 1, %v2946_v30  ;;  %v1329_v46 = vmul.f32 %v2000_v44, %v3025_v14  ;;  %v1240_v48 = vmul.f32 %v1996_v56, %v3066_v32 }
 0x3a0   : > { %v1241_v27 = vadd.f32 %v1239_v21, %v1218_v20  ;;  %v1334_v63 = vadd.s32 2, %v2946_v30  ;;  %v1357_v60 = vadd.s32 3, %v2946_v30  ;;  %v1352_v53 = vmul.f32 %v2001_v19, %v3033_v17  ;;  %v2004_v17 = vld [vmem:[#allocation10 + $0x14] ss:$0 sm:$0xff] }
 0x3a1   : > { %v1150_v33 = vadd.f32 %v1148_v35, %v1127_v25  ;;  %v1380_v4 = vadd.s32 4, %v2946_v30  ;;  %v1263_v52 = vmul.f32 %v1997_v13, %v3079_v37  ;;  %vm1315_vm6 = vcmp.lt.s32.totalorder %v1311_v57, 16  ;;  %v2005_v13 = vld [vmem:[#allocation10 + $0x15] ss:$0 sm:$0xff] }
 0x3a2   : > { %v1264_v40 = vadd.f32 %v1262_v8, %v1241_v27  ;;  %v1403_v14 = vadd.s32 5, %v2946_v30  ;;  %v1375_v9 = vmul.f32 %v2002_v2, %v3045_v23  ;;  %v1426_v10 = vadd.s32 6, %v2946_v30 }
 0x3a3   : > { %v1173_v45 = vadd.f32 %v1171_v34, %v1150_v33  ;;  %v1449_v55 = vadd.s32 7, %v2946_v30  ;;  %v1286_v56 = vmul.f32 %v1998_v62, %v3090_v15  ;;  %vm1338_vm7 = vcmp.lt.s32.totalorder %v1334_v63, 16  ;;  %v2006_v62 = vld [vmem:[#allocation10 + $0x16] ss:$0 sm:$0xff] }
 0x3a4   : > { %v1287_v50 = vadd.f32 %v1285_v42, %v1264_v40  ;;  %vm1361_vm8 = vcmp.lt.s32.totalorder %v1357_v60, 16  ;;  %v1323_v0 = vsel %vm1315_vm6, %v3029_v16, 0.0  ;;  %v1398_v28 = vmul.f32 %v2003_v5, %v3058_v29  ;;  %v2007_v40 = vld [vmem:[#allocation10 + $0x17] ss:$0 sm:$0xff] }
 0x3a5   : > { %v1196_v54 = vadd.f32 %v1194_v43, %v1173_v45  ;;  %v1494_v58 = vadd.s32 9, %v2955_v38  ;;  %v1307_v23 = vmul.f32 %v1999_v36, %v3001_v59  ;;  %vm1384_vm9 = vcmp.lt.s32.totalorder %v1380_v4, 16  ;;  %v2010_v4 = vld [vmem:[#allocation10 + $0x1a] ss:$0 sm:$0xff] }
 0x3a6   : > { %v1308_v1 = vadd.f32 %v1306_v51, %v1287_v50  ;;  %vm1407_vm10 = vcmp.lt.s32.totalorder %v1403_v14, 16  ;;  %v1346_v30 = vsel %vm1338_vm7, %v3037_v18, 0.0  ;;  %v1421_v21 = vmul.f32 %v2004_v17, %v3066_v32 }
 0x3a7   : > { %v1219_v49 = vadd.f32 %v1217_v39, %v1196_v54  ;;  %v1517_v25 = vadd.s32 10, %v2955_v38  ;;  %v1330_v26 = vmul.f32 %v2000_v44, %v1323_v0  ;;  %vm1430_vm11 = vcmp.lt.s32.totalorder %v1426_v10, 16  ;;  %v2008_v54 = vld [vmem:[#allocation10 + $0x18] ss:$0 sm:$0xff] }
 0x3a8   : > { %v1331_v3 = vadd.f32 %v1329_v46, %v1308_v1  ;;  %v1540_v29 = vadd.s32 11, %v2955_v38  ;;  %v1369_v27 = vsel %vm1361_vm8, %v3049_v24, 0.0  ;;  %v1444_v33 = vmul.f32 %v2005_v13, %v3079_v37 }
 0x3a9   : > { %v1242_v22 = vadd.f32 %v1240_v48, %v1219_v49  ;;  %vm1498_vm12 = vcmp.lt.s32.totalorder %v1494_v58, 16  ;;  %v1353_v36 = vmul.f32 %v2001_v19, %v1346_v30  ;;  %vm1453_vm13 = vcmp.lt.s32.totalorder %v1449_v55, 16 }
 0x3aa   : > { %v1354_v6 = vadd.f32 %v1352_v53, %v1331_v3  ;;  %v1563_v32 = vadd.s32 12, %v2955_v38  ;;  %v1392_v42 = vsel %vm1384_vm9, %v3062_v31, 0.0  ;;  %v1467_v43 = vmul.f32 %v2006_v62, %v3090_v15  ;;  %v2009_v15 = vld [vmem:[#allocation10 + $0x19] ss:$0 sm:$0xff] }
 0x3ab   : > { %v1265_v61 = vadd.f32 %v1263_v52, %v1242_v22  ;;  %vm1521_vm14 = vcmp.lt.s32.totalorder %v1517_v25, 16  ;;  %v1376_v50 = vmul.f32 %v2002_v2, %v1369_v27  ;;  %v1506_v51 = vsel %vm1498_vm12, %v3029_v16, 0.0  ;;  %v2014_v25 = vld [vmem:[#allocation10 + $0x1e] ss:$0 sm:$0xff] }
 0x3ac   : > { %v1377_v11 = vadd.f32 %v1375_v9, %v1354_v6  ;;  %v1586_v37 = vadd.s32 13, %v2955_v38  ;;  %v1415_v39 = vsel %vm1407_vm10, %v3070_v7, 0.0  ;;  %v1490_v19 = vmul.f32 %v2007_v40, %v3001_v59  ;;  %v2011_v9 = vld [vmem:[#allocation10 + $0x1b] ss:$0 sm:$0xff] }
 0x3ad   : > { %v1288_v12 = vadd.f32 %v1286_v56, %v1265_v61  ;;  %vm1544_vm15 = vcmp.lt.s32.totalorder %v1540_v29, 16  ;;  %v1399_v46 = vmul.f32 %v2003_v5, %v1392_v42  ;;  %v1529_v49 = vsel %vm1521_vm14, %v3037_v18, 0.0 }
 0x3ae   : > { %v1400_v20 = vadd.f32 %v1398_v28, %v1377_v11  ;;  %v1609_v48 = vadd.s32 14, %v2955_v38  ;;  %v1438_v16 = vsel %vm1430_vm11, %v3086_v41, 0.0  ;;  %v1513_v60 = vmul.f32 %v2008_v54, %v1506_v51 }
 0x3af   : > { %v1309_v35 = vadd.f32 %v1307_v23, %v1288_v12  ;;  %vm1567_vm0 = vcmp.lt.s32.totalorder %v1563_v32, 16  ;;  %v1422_v3 = vmul.f32 %v2004_v17, %v1415_v39  ;;  %v1552_v53 = vsel %vm1544_vm15, %v3049_v24, 0.0  ;;  %v2013_v23 = vld [vmem:[#allocation10 + $0x1d] ss:$0 sm:$0xff] }
 0x3b0   : > { %v1423_v8 = vadd.f32 %v1421_v21, %v1400_v20  ;;  %v1632_v59 = vadd.s32 15, %v2955_v38  ;;  %v1461_v22 = vsel %vm1453_vm13, %v3096_v47, 0.0  ;;  %v1536_v52 = vmul.f32 %v2009_v15, %v1529_v49  ;;  %v2012_v38 = vld [vmem:[#allocation10 + $0x1c] ss:$0 sm:$0xff] }
 0x3b1   : > { %v1332_v34 = vadd.f32 %v1330_v26, %v1309_v35  ;;  %vm1590_vm1 = vcmp.lt.s32.totalorder %v1586_v37, 16  ;;  %v1445_v14 = vmul.f32 %v2005_v13, %v1438_v16  ;;  %v1575_v6 = vsel %vm1567_vm0, %v3062_v31, 0.0 }
 0x3b2   : > { %v1446_v45 = vadd.f32 %v1444_v33, %v1423_v8  ;;  %v1559_v61 = vmul.f32 %v2010_v4, %v1552_v53  ;;  %vm1613_vm2 = vcmp.lt.s32.totalorder %v1609_v48, 16  ;;  %v1468_v17 = vmul.f32 %v2006_v62, %v1461_v22 }
 0x3b3   : > { %v1355_v44 = vadd.f32 %v1353_v36, %v1332_v34  ;;  %v1491_v24 = vmul.f32 0.0, %v2007_v40  ;;  %v1598_v0 = vsel %vm1590_vm1, %v3070_v7, 0.0  ;;  %v1582_v55 = vmul.f32 %v2011_v9, %v1575_v6 }
 0x3b4   : > { %v1469_v57 = vadd.f32 %v1467_v43, %v1446_v45  ;;  %vm1636_vm3 = vcmp.lt.s32.totalorder %v1632_v59, 16  ;;  %v1514_v58 = vmul.f32 0.0, %v2008_v54  ;;  %v1621_v12 = vsel %vm1613_vm2, %v3086_v41, 0.0  ;;  %v2015_v41 = vld [vmem:[%s3282_s1] ss:$0 sm:$0xff]  ;;  %s2555_s1 = smov [#allocation13]  }
 0x3b5   : > { %v1378_v1 = vadd.f32 %v1376_v50, %v1355_v44  ;;  %v1605_v31 = vmul.f32 %v2012_v38, %v1598_v0  ;;  %v1537_v20 = vmul.f32 0.0, %v2009_v15  ;;  %v1644_v21 = vsel %vm1636_vm3, %v3096_v47, 0.0  ;;  %s2466_s12 = sshll.u32 %s2555_s1, 4  ;;  %s2467_s12 = int_to_ptr.vmem [resolvable:$false] %s2466_s12 }
 0x3b6   : > { %v1492_v63 = vadd.f32 %v1490_v19, %v1469_v57  ;;  %v1628_v26 = vmul.f32 %v2013_v23, %v1621_v12  ;;  %v1560_v7 = vmul.f32 0.0, %v2010_v4  ;;  %v1651_v27 = vmul.f32 %v2014_v25, %v1644_v21  ;;  %s2468_s11 = scalar_lea.vmem %s2467_s12, 512  ;;  %p2469_p11 = scmp.lt.s32.totalorder %s3187_s26, %s2467_s12 }
 0x3b7   : > { %v1401_v2 = vadd.f32 %v1399_v46, %v1378_v1  ;;  %v1583_v33 = vmul.f32 0.0, %v2011_v9  ;;  %v1606_v40 = vmul.f32 0.0, %v2012_v38  ;;  %v1629_v45 = vmul.f32 0.0, %v2013_v23  ;;  %p2470_p12 = scmp.lt.s32.totalorder %s2468_s11, %s2462_s23 }
 0x3b8   : > { %v1515_v18 = vadd.f32 %v1513_v60, %v1492_v63  ;;  %v1652_v43 = vmul.f32 0.0, %v2014_v25  ;;  %v2018_v63 = vld [vmem:[%s3283_s10] ss:$0 sm:$0xff] }
 0x3b9   : > { %v1424_v5 = vadd.f32 %v1422_v3, %v1401_v2  ;;  %p2471_p13 = por %p2470_p12, %p2469_p11 }
 0x3ba   : > { %v1538_v10 = vadd.f32 %v1536_v52, %v1515_v18 }
 0x3bb   : > { %v1447_v56 = vadd.f32 %v1445_v14, %v1424_v5  ;;  %p2472_p8 = pnand %p2471_p13, %p2465_p1 }
 0x3bc   : > { %v1561_v11 = vadd.f32 %v1559_v61, %v1538_v10 }
 0x3bd   : > { %v1470_v28 = vadd.f32 %v1468_v17, %v1447_v56 }
 0x3be   : > { %v1584_v13 = vadd.f32 %v1582_v55, %v1561_v11 }
 0x3bf   : > { %v1493_v30 = vadd.f32 %v1491_v24, %v1470_v28 }
 0x3c0   : > { %v1607_v35 = vadd.f32 %v1605_v31, %v1584_v13 }
 0x3c1   : > { %v1516_v62 = vadd.f32 %v1514_v58, %v1493_v30 }
 0x3c2   : > { %v1630_v29 = vadd.f32 %v1628_v26, %v1607_v35 }
 0x3c3   : > { %v1539_v8 = vadd.f32 %v1537_v20, %v1516_v62 }
 0x3c4   : > { %v1653_v34 = vadd.f32 %v1651_v27, %v1630_v29 }
 0x3c5   : > { %v1562_v36 = vadd.f32 %v1560_v7, %v1539_v8 }
 0x3c6   : > { %v1662_v32 = vadd.f32 %v2015_v41, %v1653_v34 }
 0x3c7   : > { %v1585_v42 = vadd.f32 %v1583_v33, %v1562_v36 }
 0x3c8   : > { %v2016_v44 = vmul.f32 -1.442695, %v1662_v32 }
 0x3c9   : > { %v1608_v47 = vadd.f32 %v1606_v40, %v1585_v42 }
 0x3ca   : > { %2284 = vpow2.f32 %v2016_v44 }
 0x3cb   : > { %v1631_v50 = vadd.f32 %v1629_v45, %v1608_v47 }
 0x3cd   : > { %v1654_v51 = vadd.f32 %v1652_v43, %v1631_v50 }
 0x3cf   : > { %v1663_v54 = vadd.f32 %v2015_v41, %v1654_v51 }
 0x3d1   : > { %v2017_v37 = vmul.f32 -1.442695, %v1663_v54 }
 0x3d3   : > { %2286 = vpow2.f32 %v2017_v37 }
 0x3d4   : > { %v2285_v39 = vpop.eup %2284 }
 0x3d5   : > { %v1670_v57 = vadd.f32 1.0, %v2285_v39 }
 0x3d7   : > { %2288 = vrcp.f32 %v1670_v57 }
 0x3dd   : > { %v2287_v19 = vpop.eup %2286 }
 0x3de   : > { %v1671_v1 = vadd.f32 1.0, %v2287_v19 }
 0x3e0   : > { %2290 = vrcp.f32 %v1671_v1 }
 0x3e1   : > { %v2289_v46 = vpop.eup %2288 }
 0x3e2   : > { %v1676_v15 = vmul.f32 %v2289_v46, %v1662_v32 }
 0x3ea   : > { %v2291_v49 = vpop.eup %2290 }
 0x3eb   : > { %v1677_v48 = vmul.f32 %v2291_v49, %v1663_v54 }
 0x3ed   : > { %v1678_v16 = vpack.c.bf16 %v1677_v48, %v1676_v15 }
 0x3ef   : > { %2118 = vmatmul.mubr.bf16.vlgmr.msra.gmra.mrb[4].mxu1 %v1678_v16 }
 0x4c2   : > { %v1784_v60 = vpop.f32.mrb[4].mxu1 }
 0x4c3   : > { %v1785_v2 = vadd.f32 %v2018_v63, %v1784_v60  ;;  %v2119_v3 = vpop.f32.mrb[5].mxu1 }
 0x4c4   : > { %v1787_v53 = vpop.f32.mrb[6].mxu1 }
 0x4c5   : > { %1791 = vst [vmem:[%s477_s24] sm:$0xff] %v1785_v2  ;;  %v1788_v4 = vadd.f32 %v2018_v63, %v1787_v53  ;;  %v2120_v59 = vpop.f32.mrb[7].mxu1 }
 0x4c7   : > { %1792 = vst [vmem:[%s477_s24 + $0x8] sm:$0xff] %v1788_v4 }
 0x4c8   : > { %2475 = shalt.err (!%p2472_p8)
}
 0x4c9   : > { %s2476_s28 = scalar_lea.hbm %s3192_s13, 256  ;;  %s2480_s21 = scalar_lea.hbm %s3284_s27, 512 }
 0x4ca   : > { %p2477_p6 = scmp.ne.s32.totalorder %s3192_s13, %s2476_s28  ;;  %p2481_p3 = scmp.lt.u32.totalorder %s3192_s13, %s3284_s27 }
 0x4cb   : > { %p2482_p0 = scmp.lt.u32.totalorder %s2480_s21, %s2476_s28  ;;  %p2484_p2 = scmp.lt.u32.totalorder %s2476_s28, %s3192_s13 }
 0x4cc   : > { %p2478_p9 = pnand %p2477_p6, %p3285_p7 }
 0x4cd   : > { %p2483_p5 = por %p2482_p0, %p2481_p3 }
 0x4ce   : > { %p2479_p4 = pneg %p2478_p9 }
 0x4cf   : > { %p2485_p10 = por %p2484_p2, %p2483_p5 }
 0x4d1   : > { %p2486_p1 = pnand %p2485_p10, %p2479_p4 }
 0x4d3   : > { %2489 = shalt.err (!%p2486_p1)
}
 0x4d4   : > { %s2556_s23 = smov 128   ;;  %s2557_s1 = smov 8  }
 0x4d5   : > { %2143 = dma.vmem_to_hbm [thread:$0]  (%p3285_p7), %s3187_s26, 256, %s3192_s13, %s1794_s30, %s2556_s23, %s2556_s23, %s2557_s1  }
 0x4d6 PF: > { %s1822_s12 = sand.u32 1, %s2528_s17   ;;  %p3286_p11 = scmp.ne.s32.totalorder %s3271_s22, 0 }
 0x4d7   : > { %p3287_p12 = scmp.ge.s32.totalorder %s2540_s20, 2  ;;  %s1823_s11 = scalar_lea.sflag [#allocation4], %s1822_s12 }
 0x4d9   : > { %p2166_p13 = pnand %p3287_p12, %p3286_p11 }
 0x4db   : > { %2523 = dma.done.wait (!%p2166_p13), %s1823_s11, 256  }
 0x4dc   : > { %2525 = vsyncadd (!%p2166_p13), %s1823_s11, 4294967040  ;;  %p27_p8 = scmp.ge.s32.totalorder %s2787_s16, 4   ;;  %s3288_s17 = smov %s2532_s18 }
 0x4dd   : > { %s3289_s18 = smov %s2536_s19  ;;  %s3290_s19 = smov %s2799_s14 }
 0x4de   : > { %s3291_s20 = smov %s2787_s16  ;;  %29 = sbr.rel (!%p27_p8) target bundleno = 13 (0xd), region = 129 }
 0x4e5   :  { %1828 = vsyncpa [#allocation3], 1 }
 0x4e6   :  { %1830 = vsyncpa [#allocation3 + $0x1], 1 }
 0x4e7   :  { %1831 = vsyncpa [#allocation6], 1 }
 0x4e8   :  { %1832 = vsyncpa [#allocation9], 1 }
 0x4e9   :  { %1833 = vsyncpa [#allocation12], 1 }
 0x4ea   :  { %1834 = vsyncpa [#allocation4], 1 }
 0x4eb   :  { %1836 = vsyncpa [#allocation4 + $0x1], 1 }

// kernel: tpu_custom_call.1
= control target key start
LH: loop header
LB: loop body
LE: loop exit
PB: predicated region body
PF: predicated region fallthrough
CT: control target
= control target key end

     0   :  { %s3236_s0 = inlined_call_operand.hbm [shape: bf16[2,16,128], index: 0, kind: input, shape index: {}]   ;;  %s3237_s1 = inlined_call_operand.hbm [shape: bf16[128,128], index: 1, kind: input, shape index: {}]   ;;  %s3238_s2 = inlined_call_operand.vmem [shape: f32[1,128], index: 2, kind: input, shape index: {}]   ;;  %s3239_s3 = inlined_call_operand.hbm [shape: bf16[128,128], index: 3, kind: input, shape index: {}]   ;;  %s3240_s4 = inlined_call_operand.vmem [shape: f32[1,128], index: 4, kind: input, shape index: {}]   ;;  %s3241_s5 = inlined_call_operand.hbm [shape: bf16[128,256], index: 5, kind: input, shape index: {}]   ;;  %s3242_s6 = inlined_call_operand.vmem [shape: f32[1,256], index: 6, kind: input, shape index: {}]   ;;  %s3243_s7 = inlined_call_operand.hbm [shape: f32[31,128], index: 7, kind: input, shape index: {}]   ;;  %s3244_s8 = inlined_call_operand.vmem [shape: f32[1,128], index: 8, kind: input, shape index: {}]   ;;  %s3245_s9 = inlined_call_operand.hbm [shape: bf16[128,128], index: 9, kind: input, shape index: {}]   ;;  %s3246_s10 = inlined_call_operand.vmem [shape: f32[1,128], index: 10, kind: input, shape index: {}]   ;;  %s3247_s11 = inlined_call_operand.hbm [shape: f32[2,16,128], index: 11, kind: output, shape index: {}]  }
   0x1   :  { %3257 = sst [smem:[#allocation19_spill]] %s3237_s1 }
   0x2   :  { %3258 = sst [smem:[#allocation20_spill]] %s3244_s8 }
   0x3   :  { %3259 = sst [smem:[#allocation21_spill]] %s3246_s10 }
   0x4   :  { %3260 = sst [smem:[#allocation22_spill]] %s3247_s11 }
   0x5   :  { %16 = vsyncpa [#allocation3], 0 }
   0x6   :  { %18 = vsyncpa [#allocation3 + $0x1], 0 }
   0x7   :  { %19 = vsyncpa [#allocation6], 0 }
   0x8   :  { %20 = vsyncpa [#allocation9], 0 }
   0x9   :  { %21 = vsyncpa [#allocation12], 0 }
   0xa   :  { %22 = vsyncpa [#allocation4], 0 }
   0xb   :  { %24 = vsyncpa [#allocation4 + $0x1], 0  ;;  %s2618_s17 = smov 0   ;;  %s2620_s18 = smov 0  }
   0xc   :  { %s2622_s19 = smov 0   ;;  %s2624_s20 = smov 0  }
   0xd LB: > { %s2542_s21 = smov [#allocation5]   ;;  %s2639_s23 = sadd.s32 4294967295, %s2540_s20   ;;  %s2540_s20 = sphi %s2624_s20, %s3291_s20   ;;  %s2536_s19 = sphi %s2622_s19, %s3290_s19   ;;  %s2532_s18 = sphi %s2620_s18, %s3289_s18   ;;  %s2528_s17 = sphi %s2618_s17, %s3288_s17  }
   0xe   : > { %s309_s22 = sshll.u32 %s2542_s21, 4  ;;  %p1929_p0 = scmp.ge.s32.totalorder %s2540_s20, 1  ;;  %s2644_s22 = int_to_ptr.vmem [resolvable:$true] %s309_s22 }
   0xf   : > { %p3251_p1 = scmp.eq.s32.totalorder %s2639_s23, 0  ;;  %p297_p2 = scmp.lt.s32.totalorder %s2540_s20, 3 }
  0x10   : > { %s2543_s25 = smov [#allocation8]   ;;  %s2544_s28 = smov [#allocation7]  }
  0x11   : > { %p2646_p3 = pnand %p1929_p0, %p297_p2  ;;  %s341_s26 = sshll.u32 %s2543_s25, 4  ;;  %s2659_s26 = int_to_ptr.vmem [resolvable:$true] %s341_s26 }
  0x12   : > { %s2661_s29 = sshll.u32 %s2544_s28, 4  ;;  %s3263_s1 = sld [smem:[#allocation19_spill]]  ;;  %s326_s29 = int_to_ptr.vmem [resolvable:$true] %s2661_s29 }
  0x13   : > { %s3261_s24 = scalar_select %p2646_p3, 1, 0 }
  0x14   : > { %p2145_p5 = pneg %p2646_p3 }
  0x16   : > { %p2655_p6 = pnand %p2145_p5, %p3251_p1 }
  0x18   : > { %s2292_s13 = scalar_lea.hbm %s3263_s1, 1024  ;;  %p2671_p8 = pneg %p2655_p6 }
  0x19   : > { %p2293_p7 = scmp.ne.s32.totalorder %s3263_s1, %s2292_s13  ;;  %p2299_p11 = scmp.lt.u32.totalorder %s2292_s13, %s3263_s1 }
  0x1b   : > { %p2295_p9 = pnand %p2671_p8, %p2293_p7 }
  0x1d   : > { %p2296_p10 = pneg %p2295_p9 }
  0x1f   : > { %p2301_p12 = pnand %p2299_p11, %p2296_p10 }
  0x21   : > { %2304 = shalt.err (!%p2301_p12)
}
  0x22   : > { %s2305_s28 = scalar_lea.vmem %s2644_s22, 1024  ;;  %p2313_p5 = scmp.lt.s32.totalorder %s2644_s22, %s2644_s22 }
  0x23   : > { %p2306_p13 = scmp.ne.s32.totalorder %s2644_s22, %s2305_s28  ;;  %p2314_p4 = scmp.lt.s32.totalorder %s2305_s28, %s2305_s28 }
  0x25   : > { %p2308_p0 = pnand %p2306_p13, %p2671_p8  ;;  %p2315_p7 = por %p2314_p4, %p2313_p5 }
  0x27   : > { %p2309_p2 = pneg %p2308_p0 }
  0x29   : > { %p2316_p9 = pnand %p2315_p7, %p2309_p2 }
  0x2b   : > { %2319 = shalt.err (!%p2316_p9)
}
  0x2c   : > { %s3249_s30 = smov 64   ;;  %s3255_s12 = smov 4  }
  0x2d   : > { %2148 = dma.hbm_to_vmem [thread:$0]  (!%p2655_p6), %s3263_s1, 1024, %s2644_s22, [#allocation6], %s3249_s30, %s3249_s30, %s3255_s12  }
  0x2e   : > { %s2320_s25 = scalar_lea.hbm %s3241_s5, 2048 }
  0x2f   : > { %p2321_p4 = scmp.ne.s32.totalorder %s3241_s5, %s2320_s25  ;;  %p2327_p12 = scmp.lt.u32.totalorder %s2320_s25, %s3241_s5 }
  0x31   : > { %p2323_p10 = pnand %p2321_p4, %p2671_p8 }
  0x33   : > { %p2324_p11 = pneg %p2323_p10 }
  0x35   : > { %p2329_p13 = pnand %p2327_p12, %p2324_p11 }
  0x37   : > { %2332 = shalt.err (!%p2329_p13)
}
  0x38   : > { %s2333_s22 = scalar_lea.vmem %s2659_s26, 2048  ;;  %p2341_p7 = scmp.lt.s32.totalorder %s2659_s26, %s2659_s26 }
  0x39   : > { %p2334_p0 = scmp.ne.s32.totalorder %s2659_s26, %s2333_s22  ;;  %p2342_p9 = scmp.lt.s32.totalorder %s2333_s22, %s2333_s22 }
  0x3b   : > { %p2336_p2 = pnand %p2334_p0, %p2671_p8  ;;  %p2343_p4 = por %p2342_p9, %p2341_p7 }
  0x3d   : > { %p2337_p5 = pneg %p2336_p2 }
  0x3f   : > { %p2344_p10 = pnand %p2343_p4, %p2337_p5 }
  0x41   : > { %2347 = shalt.err (!%p2344_p10)
}
  0x42   : > { %s3253_s11 = smov 128   ;;  %s3254_s8 = smov 8  }
  0x43   : > { %2154 = dma.hbm_to_vmem [thread:$0]  (!%p2655_p6), %s3241_s5, 2048, %s2659_s26, [#allocation9], %s3253_s11, %s3253_s11, %s3254_s8  }
  0x44   : > { %s2348_s21 = scalar_lea.hbm %s3239_s3, 1024 }
  0x45   : > { %p2349_p11 = scmp.ne.s32.totalorder %s3239_s3, %s2348_s21  ;;  %p2355_p0 = scmp.lt.u32.totalorder %s2348_s21, %s3239_s3 }
  0x47   : > { %p2351_p12 = pnand %p2349_p11, %p2671_p8 }
  0x49   : > { %p2352_p13 = pneg %p2351_p12 }
  0x4b   : > { %p2357_p2 = pnand %p2355_p0, %p2352_p13 }
  0x4d   : > { %2360 = shalt.err (!%p2357_p2)
}
  0x4e   : > { %s2361_s10 = scalar_lea.vmem %s326_s29, 1024  ;;  %p2369_p4 = scmp.lt.s32.totalorder %s326_s29, %s326_s29 }
  0x4f   : > { %p2362_p5 = scmp.ne.s32.totalorder %s326_s29, %s2361_s10  ;;  %p2370_p10 = scmp.lt.s32.totalorder %s2361_s10, %s2361_s10 }
  0x51   : > { %p2364_p7 = pnand %p2362_p5, %p2671_p8  ;;  %p2371_p1 = por %p2370_p10, %p2369_p4 }
  0x53   : > { %p2365_p9 = pneg %p2364_p7 }
  0x55   : > { %p2372_p3 = pnand %p2371_p1, %p2365_p9 }
  0x57   : > { %2375 = shalt.err (!%p2372_p3)
}
  0x58   : > { %s3265_s26 = smov 64   ;;  %s2549_s14 = smov [#allocation10]  }
  0x59   : > { %2151 = dma.hbm_to_vmem [thread:$0]  (!%p2655_p6), %s3239_s3, 1024, %s326_s29, [#allocation6], %s3265_s26, %s3265_s26, %s3255_s12  }
  0x5a   : > { %s357_s15 = sshll.u32 %s2549_s14, 4  ;;  %s2550_s21 = smov [#allocation11]   ;;  %s358_s15 = int_to_ptr.vmem [resolvable:$true] %s357_s15 }
  0x5b   : > { %s373_s25 = sshll.u32 %s2550_s21, 4  ;;  %s2376_s10 = scalar_lea.hbm %s3243_s7, 512  ;;  %s374_s25 = int_to_ptr.vmem [resolvable:$true] %s373_s25 }
  0x5c   : > { %p2377_p1 = scmp.ne.s32.totalorder %s3243_s7, %s2376_s10  ;;  %p2383_p12 = scmp.lt.u32.totalorder %s2376_s10, %s3243_s7 }
  0x5e   : > { %p2379_p3 = pnand %p2377_p1, %p2671_p8 }
  0x60   : > { %p2380_p11 = pneg %p2379_p3 }
  0x62   : > { %p2385_p13 = pnand %p2383_p12, %p2380_p11 }
  0x64   : > { %2388 = shalt.err (!%p2385_p13)
}
  0x65   : > { %s2389_s29 = scalar_lea.vmem %s358_s15, 512  ;;  %p2397_p7 = scmp.lt.s32.totalorder %s358_s15, %s358_s15 }
  0x66   : > { %p2390_p0 = scmp.ne.s32.totalorder %s358_s15, %s2389_s29  ;;  %p2398_p9 = scmp.lt.s32.totalorder %s2389_s29, %s2389_s29 }
  0x68   : > { %p2392_p2 = pnand %p2390_p0, %p2671_p8  ;;  %p2399_p4 = por %p2398_p9, %p2397_p7 }
  0x6a   : > { %p2393_p5 = pneg %p2392_p2 }
  0x6c   : > { %p2400_p10 = pnand %p2399_p4, %p2393_p5 }
  0x6e   : > { %2403 = shalt.err (!%p2400_p10)
}
  0x6f   : > { %s3266_s11 = smov 8   ;;  %s3267_s8 = smov 128  }
  0x70   : > { %2157 = dma.hbm_to_vmem [thread:$0]  (!%p2655_p6), %s3243_s7, 512, %s358_s15, [#allocation9], %s3267_s8, %s3267_s8, %s3266_s11  }
  0x71   : > { %s2404_s28 = scalar_lea.hbm %s3245_s9, 1024 }
  0x72   : > { %p2405_p1 = scmp.ne.s32.totalorder %s3245_s9, %s2404_s28  ;;  %p2411_p12 = scmp.lt.u32.totalorder %s2404_s28, %s3245_s9 }
  0x74   : > { %p2407_p3 = pnand %p2405_p1, %p2671_p8 }
  0x76   : > { %p2408_p11 = pneg %p2407_p3 }
  0x78   : > { %p2413_p13 = pnand %p2411_p12, %p2408_p11 }
  0x7a   : > { %2416 = shalt.err (!%p2413_p13)
}
  0x7b   : > { %s2417_s1 = scalar_lea.vmem %s374_s25, 1024  ;;  %p2425_p7 = scmp.lt.s32.totalorder %s374_s25, %s374_s25 }
  0x7c   : > { %p2418_p0 = scmp.ne.s32.totalorder %s374_s25, %s2417_s1  ;;  %p2426_p9 = scmp.lt.s32.totalorder %s2417_s1, %s2417_s1 }
  0x7e   : > { %p2420_p2 = pnand %p2418_p0, %p2671_p8  ;;  %p2427_p4 = por %p2426_p9, %p2425_p7 }
  0x80   : > { %p2421_p5 = pneg %p2420_p2 }
  0x82   : > { %p2428_p10 = pnand %p2427_p4, %p2421_p5 }
  0x84   : > { %2431 = shalt.err (!%p2428_p10)
}
  0x85   : > { %2160 = dma.hbm_to_vmem [thread:$0]  (!%p2655_p6), %s3245_s9, 1024, %s374_s25, [#allocation12], %s3265_s26, %s3265_s26, %s3255_s12  }
  0x86   : > { %s1928_s27 = sadd.s32 4294967294, %s2540_s20   ;;  %s2787_s16 = sadd.s32 1, %s2540_s20  }
  0x87   : > { %s37_s8 = sadd.s32 1, %s2536_s19  ;;  %s34_s13 = ssub.s32 %s2540_s20, %s2787_s16 }
  0x88   : > { %p44_p8 = scmp.ne.s32.totalorder %s2536_s19, %s2532_s18  ;;  %p35_p1 = scmp.eq.s32.totalorder %s34_s13, 0 }
  0x89   : > { %p45_p3 = scmp.eq.s32.totalorder %s2540_s20, 0  ;;  %p50_p11 = scmp.ne.s32.totalorder %s2532_s18, %s2528_s17 }
  0x8a   : > { %p284_p12 = scmp.eq.s32.totalorder %s2639_s23, 1  ;;  %p3268_p0 = scmp.eq.s32.totalorder %s2639_s23, 0 }
  0x8b   : > { %s2799_s14 = scalar_select %p35_p1, %s2536_s19, %s37_s8  }
  0x8c   : > { %p46_p13 = por %p45_p3, %p44_p8  ;;  %p2803_p2 = por %p3268_p0, %p50_p11 }
  0x8d   : > { %p2807_p6 = por %p284_p12, %p44_p8  ;;  %p290_p5 = scmp.eq.s32.totalorder %s1928_s27, 1 }
  0x8e   : > { %p2174_p7 = scmp.lt.s32.totalorder %s2540_s20, 2  ;;  %s390_s28 = sand.u32 1, %s2536_s19  }
  0x8f   : > { %s3270_s25 = scalar_select %p2807_p6, 1, 0 }
  0x90   : > { %p2813_p9 = por %p290_p5, %p50_p11  ;;  %s1936_s10 = sshll.u32 %s390_s28, 3 }
  0x91   : > { %s2032_s30 = sshll.u32 %s2540_s20, 7  ;;  %s394_s11 = scalar_lea.vmem [#allocation2], %s1936_s10 }
  0x92   : > { %s3271_s22 = scalar_select %p2813_p9, 1, 0 }
  0x93   : > { %s2821_s15 = scalar_lea.hbm %s3236_s0, %s2032_s30  ;;  %s401_s8 = sshll.u32 %s394_s11, 4  ;;  %s2827_s8 = int_to_ptr.vmem [resolvable:$true] %s401_s8 }
  0x94   : > { %p2823_p4 = pnand %p2174_p7, %p46_p13  ;;  %s2829_s13 = scalar_lea.sflag [#allocation3], %s390_s28 }
  0x95   : > { %s2432_s12 = scalar_lea.hbm %s2821_s15, 128  ;;  %s2437_s29 = scalar_lea.hbm %s3236_s0, 256 }
  0x96   : > { %p2433_p10 = scmp.ne.s32.totalorder %s2821_s15, %s2432_s12  ;;  %p2434_p8 = pneg %p2823_p4 }
  0x97   : > { %p2438_p11 = scmp.lt.u32.totalorder %s2821_s15, %s3236_s0  ;;  %p2439_p12 = scmp.lt.u32.totalorder %s2437_s29, %s2432_s12 }
  0x98   : > { %p2435_p1 = pnand %p2434_p8, %p2433_p10  ;;  %p2441_p0 = scmp.lt.u32.totalorder %s2432_s12, %s2821_s15 }
  0x99   : > { %p2440_p13 = por %p2439_p12, %p2438_p11 }
  0x9a   : > { %p2436_p3 = pneg %p2435_p1 }
  0x9b   : > { %p2442_p5 = por %p2441_p0, %p2440_p13 }
  0x9d   : > { %p2443_p7 = pnand %p2442_p5, %p2436_p3 }
  0x9f   : > { %2446 = shalt.err (!%p2443_p7)
}
  0xa0   : > { %s2447_s28 = scalar_lea.vmem %s2827_s8, 128  ;;  %s2551_s10 = smov [#allocation2]  }
  0xa1   : > { %p2448_p10 = scmp.ne.s32.totalorder %s2827_s8, %s2447_s28  ;;  %s2452_s30 = sshll.u32 %s2551_s10, 4  ;;  %s2453_s30 = int_to_ptr.vmem [resolvable:$false] %s2452_s30 }
  0xa2   : > { %s2454_s1 = scalar_lea.vmem %s2453_s30, 256  ;;  %p2455_p6 = scmp.lt.s32.totalorder %s2827_s8, %s2453_s30 }
  0xa3   : > { %p2450_p1 = pnand %p2448_p10, %p2434_p8  ;;  %p2456_p11 = scmp.lt.s32.totalorder %s2454_s1, %s2447_s28 }
  0xa5   : > { %p2451_p9 = pneg %p2450_p1  ;;  %p2457_p12 = por %p2456_p11, %p2455_p6 }
  0xa7   : > { %p2458_p13 = pnand %p2457_p12, %p2451_p9 }
  0xa9   : > { %2461 = shalt.err (!%p2458_p13)
}
  0xaa   : > { %s3273_s12 = smov 4   ;;  %p3274_p8 = scmp.ne.s32.totalorder %s3261_s24, 0 }
  0xab   : > { %2164 = dma.hbm_to_vmem [thread:$0]  (!%p2823_p4), %s2821_s15, 128, %s2827_s8, %s2829_s13, %s3265_s26, %s3265_s26, %s3273_s12  }
  0xac   : > { %413 = sbr.rel (%p3274_p8) target bundleno = 1238 (0x4d6), region = 64  ;;  %s2863_s29 = sand.u32 (!%p3274_p8), 1, %s2532_s18  }
  0xad   : > { %s1940_s11 = sshll.u32 (!%p3274_p8), %s2863_s29, 3  ;;  %s416_s28 = scalar_lea.sflag (!%p3274_p8), [#allocation3], %s2863_s29 }
  0xae   : > { %s2867_s10 = scalar_lea.vmem (!%p3274_p8), [#allocation2], %s1940_s11 }
  0xb3   : > { %2507 = dma.done.wait (%p2803_p2), %s416_s28, 128  }
  0xb4   : > { %2509 = vsyncadd (%p2803_p2), %s416_s28, 4294967168  ;;  %p3275_p6 = scmp.eq.s32.totalorder %s2639_s23, 0 }
  0xb6   : > { %2511 = dma.done.wait (%p3275_p6), [#allocation6], 2048   ;;  %p3276_p9 = pmov %p3275_p6 }
  0xb7   : > { %p3277_p4 = pmov %p3275_p6 }
  0xb8   : > { %2513 = vsyncadd (%p3276_p9), [#allocation6], 4294965248 }
  0xb9   : > { %2515 = dma.done.wait (%p3277_p4), [#allocation9], 2560   ;;  %p3278_p3 = pmov %p3277_p4 }
  0xbb   : > { %2517 = vsyncadd (%p3278_p3), [#allocation9], 4294964736  ;;  %p3279_p0 = pmov %p3278_p3 }
  0xbd   : > { %2519 = dma.done.wait (%p3279_p0), [#allocation12], 1024   ;;  %p3280_p5 = pmov %p3279_p0 }
  0xbe   : > { %v2552_v0 = vmov 0.0   ;;  %vm2553_vm0 = vmmov 0   ;;  %v2227_v1 = vld [vmem:[#allocation5] sm:$0xff]   ;;  %v2228_v2 = vld [vmem:[#allocation5 + $0x8] sm:$0xff]   ;;  %v2229_v3 = vld [vmem:[#allocation5 + $0x10] sm:$0xff]   ;;  %v2554_v44 = vmov 0   ;;  %v735_v63 = vlaneseq }
  0xbf   : > { %2521 = vsyncadd (%p3280_p5), [#allocation12], 4294966272  ;;  %2061 = vmatprep.subr.bf16.mxu0 %v2552_v0  ;;  %2077 = vmatprep.mubr.msk.bf16.mxu0 %vm2553_vm0, %v2552_v0  ;;  %v2236_v4 = vld [vmem:[#allocation7] sm:$0xff]   ;;  %v2230_v5 = vld [vmem:[#allocation5 + $0x18] sm:$0xff]   ;;  %s3282_s1 = sld [smem:[#allocation20_spill]]  ;;  %s1946_s12 = sshll.u32 %s2863_s29, 4 }
  0xc0   : > { %2081 = vmatprep.subr.bf16.mxu1 %v2552_v0  ;;  %2097 = vmatprep.mubr.msk.bf16.mxu1 %vm2553_vm0, %v2552_v0  ;;  %v2237_v6 = vld [vmem:[#allocation7 + $0x8] sm:$0xff]   ;;  %v2231_v7 = vld [vmem:[#allocation5 + $0x20] sm:$0xff]   ;;  %v2238_v8 = vld [vmem:[#allocation7 + $0x10] sm:$0xff]   ;;  %s477_s24 = scalar_lea.vmem [#allocation13], %s1946_s12  ;;  %s2033_s21 = sshll.u32 %s2639_s23, 8 }
  0xc1   : > { %2062 = vmatpush3.bf16.msra.mxu0 %v2227_v1  ;;  %2082 = vmatpush3.bf16.msra.mxu1 %v2236_v4  ;;  %v2232_v9 = vld [vmem:[#allocation5 + $0x28] sm:$0xff]   ;;  %v2239_v10 = vld [vmem:[#allocation7 + $0x18] sm:$0xff]   ;;  %v2233_v11 = vld [vmem:[#allocation5 + $0x30] sm:$0xff]   ;;  %v2922_v1 = vshrl.u32 %v735_v63, 7  ;;  %s1807_s26 = sshll.u32 %s477_s24, 4  ;;  %s3284_s27 = sld [smem:[#allocation22_spill]]  ;;  %s3187_s26 = int_to_ptr.vmem [resolvable:$true] %s1807_s26 }
  0xc2   : > { %2063 = vmatprep.subr.bf16.mxu0 %v2552_v0  ;;  %2083 = vmatprep.subr.bf16.mxu1 %v2552_v0  ;;  %v2240_v12 = vld [vmem:[#allocation7 + $0x20] sm:$0xff]   ;;  %v2234_v13 = vld [vmem:[#allocation5 + $0x38] sm:$0xff]   ;;  %v2241_v14 = vld [vmem:[#allocation7 + $0x28] sm:$0xff]   ;;  %s1794_s30 = scalar_lea.sflag [#allocation4], %s2863_s29  ;;  %s2462_s23 = scalar_lea.vmem %s3187_s26, 256 }
  0xc3   : > { %v2235_v15 = vld [vmem:[%s2867_s10] sm:$0xff]   ;;  %v2244_v18 = vld [vmem:[#allocation8] ss:$8 sps:$4 sm:$0xff]   ;;  %v2246_v19 = vld [vmem:[#allocation8 + $0x4] ss:$8 sps:$4 sm:$0xff]   ;;  %vm911_vm1 = vcmp.lt.s32.totalorder %v2922_v1, 7  ;;  %p2463_p2 = scmp.ne.s32.totalorder %s3187_s26, %s2462_s23 }
  0xc4   : > { %v2242_v16 = vld [vmem:[#allocation7 + $0x30] sm:$0xff]   ;;  %v2243_v17 = vld [vmem:[#allocation7 + $0x38] sm:$0xff]   ;;  %v2252_v22 = vld [vmem:[#allocation8 + $0x24] ss:$8 sps:$4 sm:$0xff]   ;;  %vm939_vm3 = vcmp.lt.s32.totalorder %v2922_v1, 6  ;;  %vm967_vm5 = vcmp.lt.s32.totalorder %v2922_v1, 5 }
  0xc5   : > { %2064 = vmatpush3.bf16.msra.mxu0 %v2228_v2  ;;  %2084 = vmatpush3.bf16.msra.mxu1 %v2237_v6  ;;  %v2249_v20 = vld [vmem:[#allocation8 + $0x14] ss:$8 sps:$4 sm:$0xff]   ;;  %v2247_v21 = vld [vmem:[#allocation8 + $0x10] ss:$8 sps:$4 sm:$0xff]   ;;  %v2250_v23 = vld [vmem:[#allocation8 + $0x20] ss:$8 sps:$4 sm:$0xff]  }
  0xc6   : > { %2065 = vmatprep.subr.bf16.mxu0 %v2552_v0  ;;  %2085 = vmatprep.subr.bf16.mxu1 %v2552_v0  ;;  %v2255_v24 = vld [vmem:[#allocation8 + $0x34] ss:$8 sps:$4 sm:$0xff]   ;;  %v2253_v25 = vld [vmem:[#allocation8 + $0x30] ss:$8 sps:$4 sm:$0xff]   ;;  %v2258_v26 = vld [vmem:[#allocation8 + $0x44] ss:$8 sps:$4 sm:$0xff]  }
  0xc7   : > { %v2256_v27 = vld [vmem:[#allocation8 + $0x40] ss:$8 sps:$4 sm:$0xff]   ;;  %v2261_v28 = vld [vmem:[#allocation8 + $0x54] ss:$8 sps:$4 sm:$0xff]   ;;  %v2259_v29 = vld [vmem:[#allocation8 + $0x50] ss:$8 sps:$4 sm:$0xff]   ;;  %s3192_s13 = scalar_lea.hbm %s3284_s27, %s2033_s21 }
  0xc8   : > { %v1947_v30 = vld [vmem:[%s3238_s2] ss:$0 sm:$0xff]  ;;  %v2264_v40 = vld [vmem:[#allocation8 + $0x64] ss:$8 sps:$4 sm:$0xff]   ;;  %v2262_v41 = vld [vmem:[#allocation8 + $0x60] ss:$8 sps:$4 sm:$0xff]  }
  0xc9   : > { %2066 = vmatpush3.bf16.msra.mxu0 %v2229_v3  ;;  %2086 = vmatpush3.bf16.msra.mxu1 %v2238_v8  ;;  %v2267_v42 = vld [vmem:[#allocation8 + $0x74] ss:$8 sps:$4 sm:$0xff]   ;;  %v2265_v43 = vld [vmem:[#allocation8 + $0x70] ss:$8 sps:$4 sm:$0xff]   ;;  %v2268_v55 = vld [vmem:[#allocation11] sm:$0xff]   ;;  %v741_v2 = vsub.s32 1, %v2922_v1 }
  0xca   : > { %2067 = vmatprep.subr.bf16.mxu0 %v2552_v0  ;;  %2087 = vmatprep.subr.bf16.mxu1 %v2552_v0  ;;  %v1957_v45 = vld [vmem:[%s3240_s4] ss:$0 sm:$0xff]  ;;  %v2269_v56 = vld [vmem:[#allocation11 + $0x8] sm:$0xff]   ;;  %v2271_v58 = vld [vmem:[#allocation11 + $0x18] sm:$0xff]   ;;  %vm995_vm7 = vcmp.lt.s32.totalorder %v2922_v1, 4  ;;  %vm1023_vm9 = vcmp.lt.s32.totalorder %v2922_v1, 3 }
  0xcb   : > { %v2270_v57 = vld [vmem:[#allocation11 + $0x10] sm:$0xff]   ;;  %v2272_v59 = vld [vmem:[#allocation11 + $0x20] sm:$0xff]   ;;  %v2273_v60 = vld [vmem:[#allocation11 + $0x28] sm:$0xff]   ;;  %vm1051_vm10 = vcmp.lt.s32.totalorder %v2922_v1, 2  ;;  %vm1079_vm12 = vcmp.lt.s32.totalorder %v2922_v1, 1  ;;  %s3283_s10 = sld [smem:[#allocation21_spill]] }
  0xcc   : > { %v2274_v61 = vld [vmem:[#allocation11 + $0x30] sm:$0xff]   ;;  %v2275_v62 = vld [vmem:[#allocation11 + $0x38] sm:$0xff]   ;;  %v2930_v8 = vld [vmem:[#allocation10 + $0x1] ss:$0 sm:$0xff]  ;;  %p3285_p7 = scmp.ne.s32.totalorder %s3270_s25, 0 }
  0xcd   : > { %2068 = vmatpush3.bf16.msra.mxu0 %v2230_v5  ;;  %2088 = vmatpush3.bf16.msra.mxu1 %v2239_v10  ;;  %v733_v3 = vld [vmem:[%s3242_s6] sm:$0x3] }
  0xce   : > { %2069 = vmatprep.subr.bf16.mxu0 %v2552_v0  ;;  %2089 = vmatprep.subr.bf16.mxu1 %v2552_v0  ;;  %v742_v4 = vrot.slane %v733_v3, %v741_v2  ;;  %p2464_p10 = pnand %p2463_p2, %p3285_p7 }
  0xd0   : > { %p2465_p1 = pneg %p2464_p10 }
  0xd1   : > { %2070 = vmatpush3.bf16.msra.mxu0 %v2231_v7  ;;  %2090 = vmatpush3.bf16.msra.mxu1 %v2240_v12  ;;  %v2928_v7 = vld [vmem:[#allocation10] ss:$0 sm:$0xff] }
  0xd2   : > { %2071 = vmatprep.subr.bf16.mxu0 %v2552_v0  ;;  %2091 = vmatprep.subr.bf16.mxu1 %v2552_v0 }
  0xd5   : > { %2072 = vmatpush3.bf16.msra.mxu0 %v2232_v9  ;;  %2092 = vmatpush3.bf16.msra.mxu1 %v2241_v14  ;;  %v961_v14 = vmul.f32 0.0, %v2930_v8 }
  0xd6   : > { %2073 = vmatprep.subr.bf16.mxu0 %v2552_v0  ;;  %2093 = vmatprep.subr.bf16.mxu1 %v2552_v0 }
  0xd9   : > { %2074 = vmatpush3.bf16.msra.mxu0 %v2233_v11  ;;  %2094 = vmatpush3.bf16.msra.mxu1 %v2242_v16 }
  0xda   : > { %2075 = vmatprep.subr.bf16.mxu0 %v2552_v0  ;;  %2095 = vmatprep.subr.bf16.mxu1 %v2552_v0 }
  0xdd   : > { %2076 = vmatpush3.bf16.msra.mxu0 %v2234_v13  ;;  %2096 = vmatpush3.bf16.msra.mxu1 %v2243_v17  ;;  %v933_v13 = vmul.f32 0.0, %v2928_v7 }
  0xde   : > { %2101 = vmatprep.subr.bf16.mxu1 %v2552_v0  ;;  %825 = vmatprep.subr.bf16.mxu0 %v2246_v19  ;;  %v2937_v19 = vld [vmem:[#allocation10 + $0x3] ss:$0 sm:$0xff] }
  0xdf   : > { %v963_v17 = vadd.f32 %v961_v14, %v933_v13 }
  0xe0   : > { %2078 = vmatmul.mubr.bf16.vlgmr.msra.gmra.mrb[0].mxu0 %v2235_v15  ;;  %v2934_v15 = vld [vmem:[#allocation10 + $0x2] ss:$0 sm:$0xff] }
  0xe1   : > { %826 = vmatpush1.bf16.msra.mxu0 %v2244_v18  ;;  %857 = vmatprep.mubr.bf16.mxu0 %v2554_v44  ;;  %v989_v18 = vmul.f32 0.0, %v2934_v15 }
  0xe2   : > { %827 = vmatprep.subr.bf16.mxu0 %v2249_v20 }
  0xe3   : > { %v991_v20 = vadd.f32 %v989_v18, %v963_v17 }
  0xe5   : > { %828 = vmatpush1.bf16.msra.mxu0 %v2247_v21  ;;  %v1017_v21 = vmul.f32 0.0, %v2937_v19 }
  0xe6   : > { %829 = vmatprep.subr.bf16.mxu0 %v2252_v22  ;;  %v2940_v22 = vld [vmem:[#allocation10 + $0x4] ss:$0 sm:$0xff] }
  0xe9   : > { %830 = vmatpush1.bf16.msra.mxu0 %v2250_v23  ;;  %v884_v23 = vadd.s32 8, %v2922_v1 }
  0xea   : > { %831 = vmatprep.subr.bf16.mxu0 %v2255_v24 }
  0xed   : > { %832 = vmatpush1.bf16.msra.mxu0 %v2253_v25  ;;  %v1019_v25 = vadd.f32 %v1017_v21, %v991_v20 }
  0xee   : > { %833 = vmatprep.subr.bf16.mxu0 %v2258_v26  ;;  %v1045_v26 = vmul.f32 0.0, %v2940_v22 }
  0xf1   : > { %834 = vmatpush1.bf16.msra.mxu0 %v2256_v27 }
  0xf2   : > { %835 = vmatprep.subr.bf16.mxu0 %v2261_v28  ;;  %v2944_v28 = vld [vmem:[#allocation10 + $0x5] ss:$0 sm:$0xff] }
  0xf5   : > { %836 = vmatpush1.bf16.msra.mxu0 %v2259_v29 }
  0xf6   : > { %837 = vmatprep.subr.bf16.mxu0 %v2264_v40 }
  0xf9   : > { %838 = vmatpush1.bf16.msra.mxu0 %v2262_v41 }
  0xfa   : > { %839 = vmatprep.subr.bf16.mxu0 %v2267_v42 }
  0xfd   : > { %840 = vmatpush1.bf16.msra.mxu0 %v2265_v43 }
 0x1b3   : > { %v592_v31 = vpop.f32.mrb[0].mxu0 }
 0x1b4   : > { %v593_v32 = vadd.f32 %v1947_v30, %v592_v31  ;;  %v2079_v33 = vpop.f32.mrb[1].mxu0 }
 0x1b5   : > { %v595_v34 = vpop.f32.mrb[2].mxu0  ;;  %v1047_v33 = vadd.f32 %v1045_v26, %v1019_v25 }
 0x1b6   : > { %v596_v35 = vadd.f32 %v1947_v30, %v595_v34  ;;  %v2080_v36 = vpop.f32.mrb[3].mxu0  ;;  %v599_v37 = vmax.f32 %v593_v32, 0.0  ;;  %v2946_v30 = vand.u32 15, %v884_v23  ;;  %v737_v32 = vsub.s32 0, %v2922_v1 }
 0x1b7   : > { %v1073_v34 = vmul.f32 0.0, %v2944_v28 }
 0x1b8   : > { %v600_v38 = vmax.f32 %v596_v35, 0.0  ;;  %v2950_v35 = vld [vmem:[#allocation10 + $0x6] ss:$0 sm:$0xff]  ;;  %v915_v36 = vadd.s32 4294967281, %v2946_v30  ;;  %v738_v40 = vrot.slane %v733_v3, %v737_v32  ;;  %v2963_v43 = vadd.s32 4294967284, %v2946_v30 }
 0x1b9   : > { %v1075_v41 = vadd.f32 %v1073_v34, %v1047_v33  ;;  %v1101_v42 = vmul.f32 0.0, %v2950_v35  ;;  %v2970_v44 = vadd.s32 4294967285, %v2946_v30 }
 0x1ba   : > { %v601_v39 = vpack.c.bf16 %v600_v38, %v599_v37  ;;  %v943_v37 = vadd.s32 4294967282, %v2946_v30  ;;  %v2955_v38 = vand.u32 15, %v2922_v1  ;;  %vm917_vm2 = vcmp.ge.s32.totalorder %v915_v36, 0 }
 0x1bb   : > { %vm1001_vm8 = vcmp.ge.s32.totalorder %v2963_v43, 0  ;;  %vm1029_vm11 = vcmp.ge.s32.totalorder %v2970_v44, 0 }
 0x1bc   : > { %2098 = vmatmul.mubr.bf16.vlgmr.msra.gmra.mrb[0].mxu1 %v601_v39  ;;  %v2958_v39 = vadd.s32 4294967283, %v2946_v30  ;;  %vm945_vm4 = vcmp.ge.s32.totalorder %v943_v37, 0 }
 0x1bd   : > { %2117 = vmatprep.mubr.msk.bf16.mxu1 %vm2553_vm0, %v2552_v0  ;;  %2102 = vmatpush3.bf16.msra.mxu1 %v2268_v55  ;;  %v2990_v55 = vadd.s32 4294967287, %v2946_v30 }
 0x1be   : > { %2103 = vmatprep.subr.bf16.mxu1 %v2552_v0  ;;  %vm973_vm6 = vcmp.ge.s32.totalorder %v2958_v39, 0  ;;  %v1992_v39 = vld [vmem:[#allocation10 + $0x8] ss:$0 sm:$0xff] }
 0x1bf   : > { %vm1085_vm0 = vcmp.ge.s32.totalorder %v2990_v55, 0 }
 0x1c1   : > { %2104 = vmatpush3.bf16.msra.mxu1 %v2269_v56  ;;  %v2993_v56 = vadd.s32 4294967291, %v2955_v38 }
 0x1c2   : > { %2105 = vmatprep.subr.bf16.mxu1 %v2552_v0 }
 0x1c3   : > { %vm1176_vm14 = vcmp.ge.s32.totalorder %v2993_v56, 0  ;;  %v1996_v56 = vld [vmem:[#allocation10 + $0xc] ss:$0 sm:$0xff] }
 0x1c5   : > { %2106 = vmatpush3.bf16.msra.mxu1 %v2270_v57 }
 0x1c6   : > { %2107 = vmatprep.subr.bf16.mxu1 %v2552_v0 }
 0x1c9   : > { %2108 = vmatpush3.bf16.msra.mxu1 %v2271_v58  ;;  %v2999_v58 = vadd.s32 4294967292, %v2955_v38 }
 0x1ca   : > { %2109 = vmatprep.subr.bf16.mxu1 %v2552_v0 }
 0x1cd   : > { %2110 = vmatpush3.bf16.msra.mxu1 %v2272_v59 }
 0x1ce   : > { %2111 = vmatprep.subr.bf16.mxu1 %v2552_v0 }
 0x1d1   : > { %2112 = vmatpush3.bf16.msra.mxu1 %v2273_v60 }
 0x1d2   : > { %2113 = vmatprep.subr.bf16.mxu1 %v2552_v0 }
 0x1d5   : > { %2114 = vmatpush3.bf16.msra.mxu1 %v2274_v61 }
 0x1d6   : > { %2115 = vmatprep.subr.bf16.mxu1 %v2552_v0 }
 0x1d9   : > { %2116 = vmatpush3.bf16.msra.mxu1 %v2275_v62  ;;  %v3006_v62 = vadd.s32 4294967293, %v2955_v38 }
 0x28f   : > { %v707_v46 = vpop.f32.mrb[0].mxu1 }
 0x290   : > { %v708_v47 = vadd.f32 %v1957_v45, %v707_v46  ;;  %v2099_v48 = vpop.f32.mrb[1].mxu1  ;;  %v2975_v46 = vadd.s32 4294967289, %v2955_v38 }
 0x291   : > { %v710_v49 = vpop.f32.mrb[2].mxu1  ;;  %v2978_v48 = vadd.s32 4294967286, %v2946_v30 }
 0x292   : > { %v711_v50 = vadd.f32 %v1957_v45, %v710_v49  ;;  %v2100_v51 = vpop.f32.mrb[3].mxu1  ;;  %v714_v52 = vmax.f32 %v708_v47, 0.0  ;;  %v2972_v45 = vld [vmem:[#allocation10 + $0x7] ss:$0 sm:$0xff]  ;;  %v1103_v49 = vadd.f32 %v1101_v42, %v1075_v41  ;;  %vm1130_vm13 = vcmp.ge.s32.totalorder %v2975_v46, 0 }
 0x293   : > { %v1266_v46 = vadd.s32 4294967295, %v2955_v38 }
 0x294   : > { %v715_v53 = vmax.f32 %v711_v50, 0.0  ;;  %v1124_v50 = vmul.f32 0.0, %v2972_v45 }
 0x296   : > { %v716_v54 = vpack.c.bf16 %v715_v53, %v714_v52  ;;  %v2985_v52 = vadd.s32 4294967290, %v2955_v38  ;;  %v1126_v61 = vadd.f32 %v1124_v50, %v1103_v49  ;;  %v1993_v49 = vld [vmem:[#allocation10 + $0x9] ss:$0 sm:$0xff] }
 0x298   : > { %858 = vmatmul.mubr.bf16.vlgmr.msra.gmra.mrb[4].mxu0 %v716_v54  ;;  %vm1153_vm15 = vcmp.ge.s32.totalorder %v2985_v52, 0 }
 0x36b   : > { %v859_v5 = vpop.f32.mrb[4].mxu0 }
 0x36c   : > { %v861_v6 = vpop.f32.mrb[5].mxu0  ;;  %v860_v47 = vadd.f32 %v859_v5, %v738_v40 }
 0x36d   : > { %v862_v9 = vadd.f32 %v861_v6, %v742_v4  ;;  %v863_v10 = vpop.f32.mrb[6].mxu0 }
 0x36e   : > { %v865_v0 = vpop.f32.mrb[7].mxu0  ;;  %v864_v54 = vadd.f32 %v863_v10, %v738_v40 }
 0x36f   : > { %v1982_v11 = vmul.f32 -1.442695, %v862_v9  ;;  %v866_v12 = vadd.f32 %v865_v0, %v742_v4 }
 0x371   : > { %2276 = vpow2.f32 %v1982_v11  ;;  %v1983_v16 = vmul.f32 -1.442695, %v866_v12 }
 0x373   : > { %2278 = vpow2.f32 %v1983_v16 }
 0x37b   : > { %v2277_v24 = vpop.eup %2276 }
 0x37c   : > { %v874_v27 = vadd.f32 1.0, %v2277_v24 }
 0x37d   : > { %v2279_v29 = vpop.eup %2278 }
 0x37e   : > { %2280 = vrcp.f32 %v874_v27  ;;  %v875_v31 = vadd.f32 1.0, %v2279_v29 }
 0x380   : > { %2282 = vrcp.f32 %v875_v31 }
 0x388   : > { %v2281_v51 = vpop.eup %2280 }
 0x389   : > { %v2987_v53 = vmul.f32 %v2281_v51, %v860_v47 }
 0x38a   : > { %v2283_v57 = vpop.eup %2282 }
 0x38b   : > { %v3001_v59 = vmul.f32 %v2283_v57, %v864_v54  ;;  %v909_v60 = vrot.slane %v2987_v53, 1  ;;  %v937_v63 = vrot.slane %v2987_v53, 2  ;;  %v965_v2 = vrot.slane %v2987_v53, 3 }
 0x38c   : > { %v993_v3 = vrot.slane %v2987_v53, 4  ;;  %v1021_v4 = vrot.slane %v2987_v53, 5  ;;  %v1049_v11 = vrot.slane %v2987_v53, 6  ;;  %v1243_v54 = vadd.s32 4294967294, %v2955_v38 }
 0x38d   : > { %v910_v5 = vrot.slane %v3001_v59, 1  ;;  %v938_v6 = vrot.slane %v3001_v59, 2  ;;  %v966_v9 = vrot.slane %v3001_v59, 3  ;;  %v994_v10 = vrot.slane %v3001_v59, 4 }
 0x38e   : > { %v1022_v0 = vrot.slane %v3001_v59, 5  ;;  %v1050_v12 = vrot.slane %v3001_v59, 6  ;;  %v1078_v13 = vrot.slane %v3001_v59, 7 }
 0x38f   : > { %v3025_v14 = vsel %vm911_vm1, %v909_v60, %v910_v5  ;;  %v3029_v16 = vsel %vm911_vm1, %v910_v5, %v909_v60  ;;  %v3033_v17 = vsel %vm939_vm3, %v937_v63, %v938_v6  ;;  %v3037_v18 = vsel %vm939_vm3, %v938_v6, %v937_v63  ;;  %v1994_v60 = vld [vmem:[#allocation10 + $0xa] ss:$0 sm:$0xff]  ;;  %v1995_v5 = vld [vmem:[#allocation10 + $0xb] ss:$0 sm:$0xff] }
 0x390   : > { %v927_v20 = vsel %vm917_vm2, %v3029_v16, 0.0  ;;  %v955_v21 = vsel %vm945_vm4, %v3037_v18, 0.0  ;;  %v3045_v23 = vsel %vm967_vm5, %v965_v2, %v966_v9  ;;  %v3049_v24 = vsel %vm967_vm5, %v966_v9, %v965_v2 }
 0x391   : > { %v934_v25 = vmul.f32 %v2928_v7, %v927_v20  ;;  %v962_v26 = vmul.f32 %v2930_v8, %v955_v21  ;;  %v983_v27 = vsel %vm973_vm6, %v3049_v24, 0.0  ;;  %v3058_v29 = vsel %vm995_vm7, %v993_v3, %v994_v10 }
 0x392   : > { %v3062_v31 = vsel %vm995_vm7, %v994_v10, %v993_v3  ;;  %v3066_v32 = vsel %vm1023_vm9, %v1021_v4, %v1022_v0  ;;  %v3070_v7 = vsel %vm1023_vm9, %v1022_v0, %v1021_v4  ;;  %v1077_v8 = vrot.slane %v2987_v53, 7 }
 0x393   : > { %v964_v33 = vadd.f32 %v962_v26, %v934_v25  ;;  %v990_v34 = vmul.f32 %v2934_v15, %v983_v27  ;;  %v1011_v36 = vsel %vm1001_vm8, %v3062_v31, 0.0  ;;  %v3079_v37 = vsel %vm1051_vm10, %v1049_v11, %v1050_v12 }
 0x394   : > { %v1039_v40 = vsel %vm1029_vm11, %v3070_v7, 0.0  ;;  %v3086_v41 = vsel %vm1051_vm10, %v1050_v12, %v1049_v11  ;;  %v3090_v15 = vsel %vm1079_vm12, %v1077_v8, %v1078_v13  ;;  %vm1199_vm1 = vcmp.ge.s32.totalorder %v2999_v58, 0 }
 0x395   : > { %v992_v42 = vadd.f32 %v990_v34, %v964_v33  ;;  %v1018_v43 = vmul.f32 %v2937_v19, %v1011_v36  ;;  %v3096_v47 = vsel %vm1079_vm12, %v1078_v13, %v1077_v8  ;;  %v1140_v44 = vsel %vm1130_vm13, %v3029_v16, 0.0  ;;  %v1997_v13 = vld [vmem:[#allocation10 + $0xd] ss:$0 sm:$0xff]  ;;  %v1999_v36 = vld [vmem:[#allocation10 + $0xf] ss:$0 sm:$0xff] }
 0x396   : > { %vm3281_vm2 = vcmp.ge.s32.totalorder %v2978_v48, 0  ;;  %v1147_v51 = vmul.f32 %v1992_v39, %v1140_v44  ;;  %vm1222_vm3 = vcmp.ge.s32.totalorder %v3006_v62, 0  ;;  %v1046_v19 = vmul.f32 %v2940_v22, %v1039_v40  ;;  %v1998_v62 = vld [vmem:[#allocation10 + $0xe] ss:$0 sm:$0xff]  ;;  %v2000_v44 = vld [vmem:[#allocation10 + $0x10] ss:$0 sm:$0xff] }
 0x397   : > { %v1067_v50 = vsel %vm3281_vm2, %v3086_v41, 0.0  ;;  %v1020_v57 = vadd.f32 %v1018_v43, %v992_v42  ;;  %v1163_v1 = vsel %vm1153_vm15, %v3037_v18, 0.0  ;;  %v1095_v48 = vsel %vm1085_vm0, %v3096_v47, 0.0 }
 0x398   : > { %v1149_v63 = vadd.f32 %v1147_v51, %v1126_v61  ;;  %v1170_v2 = vmul.f32 %v1993_v49, %v1163_v1  ;;  %v1186_v3 = vsel %vm1176_vm14, %v3049_v24, 0.0  ;;  %v1074_v22 = vmul.f32 %v2944_v28, %v1067_v50 }
 0x399   : > { %v1048_v4 = vadd.f32 %v1046_v19, %v1020_v57  ;;  %v1209_v52 = vsel %vm1199_vm1, %v3062_v31, 0.0  ;;  %v1193_v9 = vmul.f32 %v1994_v60, %v1186_v3  ;;  %vm1245_vm4 = vcmp.ge.s32.totalorder %v1243_v54, 0  ;;  %v2001_v19 = vld [vmem:[#allocation10 + $0x11] ss:$0 sm:$0xff] }
 0x39a   : > { %v1172_v6 = vadd.f32 %v1170_v2, %v1149_v63  ;;  %v1102_v55 = vmul.f32 %v2950_v35, %v1095_v48  ;;  %v1232_v61 = vsel %vm1222_vm3, %v3070_v7, 0.0  ;;  %v1216_v11 = vmul.f32 %v1995_v5, %v1209_v52  ;;  %v2002_v2 = vld [vmem:[#allocation10 + $0x12] ss:$0 sm:$0xff] }
 0x39b   : > { %v1076_v10 = vadd.f32 %v1074_v22, %v1048_v4  ;;  %vm1268_vm5 = vcmp.ge.s32.totalorder %v1266_v46, 0  ;;  %v1125_v58 = vmul.f32 %v2972_v45, %v2987_v53  ;;  %v1255_v12 = vsel %vm1245_vm4, %v3086_v41, 0.0 }
 0x39c   : > { %v1195_v0 = vadd.f32 %v1193_v9, %v1172_v6  ;;  %v1239_v21 = vmul.f32 %v1996_v56, %v1232_v61  ;;  %v1148_v35 = vmul.f32 %v1992_v39, %v3025_v14  ;;  %v1278_v26 = vsel %vm1268_vm5, %v3096_v47, 0.0 }
 0x39d   : > { %v1104_v28 = vadd.f32 %v1102_v55, %v1076_v10  ;;  %v1262_v8 = vmul.f32 %v1997_v13, %v1255_v12  ;;  %v1171_v34 = vmul.f32 %v1993_v49, %v3033_v17  ;;  %v1285_v42 = vmul.f32 %v1998_v62, %v1278_v26 }
 0x39e   : > { %v1218_v20 = vadd.f32 %v1216_v11, %v1195_v0  ;;  %v1194_v43 = vmul.f32 %v1994_v60, %v3045_v23  ;;  %v1306_v51 = vmul.f32 %v1999_v36, %v2987_v53  ;;  %v1217_v39 = vmul.f32 %v1995_v5, %v3058_v29  ;;  %v2003_v5 = vld [vmem:[#allocation10 + $0x13] ss:$0 sm:$0xff] }
 0x39f   : > { %v1127_v25 = vadd.f32 %v1125_v58, %v1104_v28  ;;  %v1311_v57 = vadd.s32 1, %v2946_v30  ;;  %v1329_v46 = vmul.f32 %v2000_v44, %v3025_v14  ;;  %v1240_v48 = vmul.f32 %v1996_v56, %v3066_v32 }
 0x3a0   : > { %v1241_v27 = vadd.f32 %v1239_v21, %v1218_v20  ;;  %v1334_v63 = vadd.s32 2, %v2946_v30  ;;  %v1357_v60 = vadd.s32 3, %v2946_v30  ;;  %v1352_v53 = vmul.f32 %v2001_v19, %v3033_v17  ;;  %v2004_v17 = vld [vmem:[#allocation10 + $0x14] ss:$0 sm:$0xff] }
 0x3a1   : > { %v1150_v33 = vadd.f32 %v1148_v35, %v1127_v25  ;;  %v1380_v4 = vadd.s32 4, %v2946_v30  ;;  %v1263_v52 = vmul.f32 %v1997_v13, %v3079_v37  ;;  %vm1315_vm6 = vcmp.lt.s32.totalorder %v1311_v57, 16  ;;  %v2005_v13 = vld [vmem:[#allocation10 + $0x15] ss:$0 sm:$0xff] }
 0x3a2   : > { %v1264_v40 = vadd.f32 %v1262_v8, %v1241_v27  ;;  %v1403_v14 = vadd.s32 5, %v2946_v30  ;;  %v1375_v9 = vmul.f32 %v2002_v2, %v3045_v23  ;;  %v1426_v10 = vadd.s32 6, %v2946_v30 }
 0x3a3   : > { %v1173_v45 = vadd.f32 %v1171_v34, %v1150_v33  ;;  %v1449_v55 = vadd.s32 7, %v2946_v30  ;;  %v1286_v56 = vmul.f32 %v1998_v62, %v3090_v15  ;;  %vm1338_vm7 = vcmp.lt.s32.totalorder %v1334_v63, 16  ;;  %v2006_v62 = vld [vmem:[#allocation10 + $0x16] ss:$0 sm:$0xff] }
 0x3a4   : > { %v1287_v50 = vadd.f32 %v1285_v42, %v1264_v40  ;;  %vm1361_vm8 = vcmp.lt.s32.totalorder %v1357_v60, 16  ;;  %v1323_v0 = vsel %vm1315_vm6, %v3029_v16, 0.0  ;;  %v1398_v28 = vmul.f32 %v2003_v5, %v3058_v29  ;;  %v2007_v40 = vld [vmem:[#allocation10 + $0x17] ss:$0 sm:$0xff] }
 0x3a5   : > { %v1196_v54 = vadd.f32 %v1194_v43, %v1173_v45  ;;  %v1494_v58 = vadd.s32 9, %v2955_v38  ;;  %v1307_v23 = vmul.f32 %v1999_v36, %v3001_v59  ;;  %vm1384_vm9 = vcmp.lt.s32.totalorder %v1380_v4, 16  ;;  %v2010_v4 = vld [vmem:[#allocation10 + $0x1a] ss:$0 sm:$0xff] }
 0x3a6   : > { %v1308_v1 = vadd.f32 %v1306_v51, %v1287_v50  ;;  %vm1407_vm10 = vcmp.lt.s32.totalorder %v1403_v14, 16  ;;  %v1346_v30 = vsel %vm1338_vm7, %v3037_v18, 0.0  ;;  %v1421_v21 = vmul.f32 %v2004_v17, %v3066_v32 }
 0x3a7   : > { %v1219_v49 = vadd.f32 %v1217_v39, %v1196_v54  ;;  %v1517_v25 = vadd.s32 10, %v2955_v38  ;;  %v1330_v26 = vmul.f32 %v2000_v44, %v1323_v0  ;;  %vm1430_vm11 = vcmp.lt.s32.totalorder %v1426_v10, 16  ;;  %v2008_v54 = vld [vmem:[#allocation10 + $0x18] ss:$0 sm:$0xff] }
 0x3a8   : > { %v1331_v3 = vadd.f32 %v1329_v46, %v1308_v1  ;;  %v1540_v29 = vadd.s32 11, %v2955_v38  ;;  %v1369_v27 = vsel %vm1361_vm8, %v3049_v24, 0.0  ;;  %v1444_v33 = vmul.f32 %v2005_v13, %v3079_v37 }
 0x3a9   : > { %v1242_v22 = vadd.f32 %v1240_v48, %v1219_v49  ;;  %vm1498_vm12 = vcmp.lt.s32.totalorder %v1494_v58, 16  ;;  %v1353_v36 = vmul.f32 %v2001_v19, %v1346_v30  ;;  %vm1453_vm13 = vcmp.lt.s32.totalorder %v1449_v55, 16 }
 0x3aa   : > { %v1354_v6 = vadd.f32 %v1352_v53, %v1331_v3  ;;  %v1563_v32 = vadd.s32 12, %v2955_v38  ;;  %v1392_v42 = vsel %vm1384_vm9, %v3062_v31, 0.0  ;;  %v1467_v43 = vmul.f32 %v2006_v62, %v3090_v15  ;;  %v2009_v15 = vld [vmem:[#allocation10 + $0x19] ss:$0 sm:$0xff] }
 0x3ab   : > { %v1265_v61 = vadd.f32 %v1263_v52, %v1242_v22  ;;  %vm1521_vm14 = vcmp.lt.s32.totalorder %v1517_v25, 16  ;;  %v1376_v50 = vmul.f32 %v2002_v2, %v1369_v27  ;;  %v1506_v51 = vsel %vm1498_vm12, %v3029_v16, 0.0  ;;  %v2014_v25 = vld [vmem:[#allocation10 + $0x1e] ss:$0 sm:$0xff] }
 0x3ac   : > { %v1377_v11 = vadd.f32 %v1375_v9, %v1354_v6  ;;  %v1586_v37 = vadd.s32 13, %v2955_v38  ;;  %v1415_v39 = vsel %vm1407_vm10, %v3070_v7, 0.0  ;;  %v1490_v19 = vmul.f32 %v2007_v40, %v3001_v59  ;;  %v2011_v9 = vld [vmem:[#allocation10 + $0x1b] ss:$0 sm:$0xff] }
 0x3ad   : > { %v1288_v12 = vadd.f32 %v1286_v56, %v1265_v61  ;;  %vm1544_vm15 = vcmp.lt.s32.totalorder %v1540_v29, 16  ;;  %v1399_v46 = vmul.f32 %v2003_v5, %v1392_v42  ;;  %v1529_v49 = vsel %vm1521_vm14, %v3037_v18, 0.0 }
 0x3ae   : > { %v1400_v20 = vadd.f32 %v1398_v28, %v1377_v11  ;;  %v1609_v48 = vadd.s32 14, %v2955_v38  ;;  %v1438_v16 = vsel %vm1430_vm11, %v3086_v41, 0.0  ;;  %v1513_v60 = vmul.f32 %v2008_v54, %v1506_v51 }
 0x3af   : > { %v1309_v35 = vadd.f32 %v1307_v23, %v1288_v12  ;;  %vm1567_vm0 = vcmp.lt.s32.totalorder %v1563_v32, 16  ;;  %v1422_v3 = vmul.f32 %v2004_v17, %v1415_v39  ;;  %v1552_v53 = vsel %vm1544_vm15, %v3049_v24, 0.0  ;;  %v2013_v23 = vld [vmem:[#allocation10 + $0x1d] ss:$0 sm:$0xff] }
 0x3b0   : > { %v1423_v8 = vadd.f32 %v1421_v21, %v1400_v20  ;;  %v1632_v59 = vadd.s32 15, %v2955_v38  ;;  %v1461_v22 = vsel %vm1453_vm13, %v3096_v47, 0.0  ;;  %v1536_v52 = vmul.f32 %v2009_v15, %v1529_v49  ;;  %v2012_v38 = vld [vmem:[#allocation10 + $0x1c] ss:$0 sm:$0xff] }
 0x3b1   : > { %v1332_v34 = vadd.f32 %v1330_v26, %v1309_v35  ;;  %vm1590_vm1 = vcmp.lt.s32.totalorder %v1586_v37, 16  ;;  %v1445_v14 = vmul.f32 %v2005_v13, %v1438_v16  ;;  %v1575_v6 = vsel %vm1567_vm0, %v3062_v31, 0.0 }
 0x3b2   : > { %v1446_v45 = vadd.f32 %v1444_v33, %v1423_v8  ;;  %v1559_v61 = vmul.f32 %v2010_v4, %v1552_v53  ;;  %vm1613_vm2 = vcmp.lt.s32.totalorder %v1609_v48, 16  ;;  %v1468_v17 = vmul.f32 %v2006_v62, %v1461_v22 }
 0x3b3   : > { %v1355_v44 = vadd.f32 %v1353_v36, %v1332_v34  ;;  %v1491_v24 = vmul.f32 0.0, %v2007_v40  ;;  %v1598_v0 = vsel %vm1590_vm1, %v3070_v7, 0.0  ;;  %v1582_v55 = vmul.f32 %v2011_v9, %v1575_v6 }
 0x3b4   : > { %v1469_v57 = vadd.f32 %v1467_v43, %v1446_v45  ;;  %vm1636_vm3 = vcmp.lt.s32.totalorder %v1632_v59, 16  ;;  %v1514_v58 = vmul.f32 0.0, %v2008_v54  ;;  %v1621_v12 = vsel %vm1613_vm2, %v3086_v41, 0.0  ;;  %v2015_v41 = vld [vmem:[%s3282_s1] ss:$0 sm:$0xff]  ;;  %s2555_s1 = smov [#allocation13]  }
 0x3b5   : > { %v1378_v1 = vadd.f32 %v1376_v50, %v1355_v44  ;;  %v1605_v31 = vmul.f32 %v2012_v38, %v1598_v0  ;;  %v1537_v20 = vmul.f32 0.0, %v2009_v15  ;;  %v1644_v21 = vsel %vm1636_vm3, %v3096_v47, 0.0  ;;  %s2466_s12 = sshll.u32 %s2555_s1, 4  ;;  %s2467_s12 = int_to_ptr.vmem [resolvable:$false] %s2466_s12 }
 0x3b6   : > { %v1492_v63 = vadd.f32 %v1490_v19, %v1469_v57  ;;  %v1628_v26 = vmul.f32 %v2013_v23, %v1621_v12  ;;  %v1560_v7 = vmul.f32 0.0, %v2010_v4  ;;  %v1651_v27 = vmul.f32 %v2014_v25, %v1644_v21  ;;  %s2468_s11 = scalar_lea.vmem %s2467_s12, 512  ;;  %p2469_p11 = scmp.lt.s32.totalorder %s3187_s26, %s2467_s12 }
 0x3b7   : > { %v1401_v2 = vadd.f32 %v1399_v46, %v1378_v1  ;;  %v1583_v33 = vmul.f32 0.0, %v2011_v9  ;;  %v1606_v40 = vmul.f32 0.0, %v2012_v38  ;;  %v1629_v45 = vmul.f32 0.0, %v2013_v23  ;;  %p2470_p12 = scmp.lt.s32.totalorder %s2468_s11, %s2462_s23 }
 0x3b8   : > { %v1515_v18 = vadd.f32 %v1513_v60, %v1492_v63  ;;  %v1652_v43 = vmul.f32 0.0, %v2014_v25  ;;  %v2018_v63 = vld [vmem:[%s3283_s10] ss:$0 sm:$0xff] }
 0x3b9   : > { %v1424_v5 = vadd.f32 %v1422_v3, %v1401_v2  ;;  %p2471_p13 = por %p2470_p12, %p2469_p11 }
 0x3ba   : > { %v1538_v10 = vadd.f32 %v1536_v52, %v1515_v18 }
 0x3bb   : > { %v1447_v56 = vadd.f32 %v1445_v14, %v1424_v5  ;;  %p2472_p8 = pnand %p2471_p13, %p2465_p1 }
 0x3bc   : > { %v1561_v11 = vadd.f32 %v1559_v61, %v1538_v10 }
 0x3bd   : > { %v1470_v28 = vadd.f32 %v1468_v17, %v1447_v56 }
 0x3be   : > { %v1584_v13 = vadd.f32 %v1582_v55, %v1561_v11 }
 0x3bf   : > { %v1493_v30 = vadd.f32 %v1491_v24, %v1470_v28 }
 0x3c0   : > { %v1607_v35 = vadd.f32 %v1605_v31, %v1584_v13 }
 0x3c1   : > { %v1516_v62 = vadd.f32 %v1514_v58, %v1493_v30 }
 0x3c2   : > { %v1630_v29 = vadd.f32 %v1628_v26, %v1607_v35 }
 0x3c3   : > { %v1539_v8 = vadd.f32 %v1537_v20, %v1516_v62 }
 0x3c4   : > { %v1653_v34 = vadd.f32 %v1651_v27, %v1630_v29 }
 0x3c5   : > { %v1562_v36 = vadd.f32 %v1560_v7, %v1539_v8 }
 0x3c6   : > { %v1662_v32 = vadd.f32 %v2015_v41, %v1653_v34 }
 0x3c7   : > { %v1585_v42 = vadd.f32 %v1583_v33, %v1562_v36 }
 0x3c8   : > { %v2016_v44 = vmul.f32 -1.442695, %v1662_v32 }
 0x3c9   : > { %v1608_v47 = vadd.f32 %v1606_v40, %v1585_v42 }
 0x3ca   : > { %2284 = vpow2.f32 %v2016_v44 }
 0x3cb   : > { %v1631_v50 = vadd.f32 %v1629_v45, %v1608_v47 }
 0x3cd   : > { %v1654_v51 = vadd.f32 %v1652_v43, %v1631_v50 }
 0x3cf   : > { %v1663_v54 = vadd.f32 %v2015_v41, %v1654_v51 }
 0x3d1   : > { %v2017_v37 = vmul.f32 -1.442695, %v1663_v54 }
 0x3d3   : > { %2286 = vpow2.f32 %v2017_v37 }
 0x3d4   : > { %v2285_v39 = vpop.eup %2284 }
 0x3d5   : > { %v1670_v57 = vadd.f32 1.0, %v2285_v39 }
 0x3d7   : > { %2288 = vrcp.f32 %v1670_v57 }
 0x3dd   : > { %v2287_v19 = vpop.eup %2286 }
 0x3de   : > { %v1671_v1 = vadd.f32 1.0, %v2287_v19 }
 0x3e0   : > { %2290 = vrcp.f32 %v1671_v1 }
 0x3e1   : > { %v2289_v46 = vpop.eup %2288 }
 0x3e2   : > { %v1676_v15 = vmul.f32 %v2289_v46, %v1662_v32 }
 0x3ea   : > { %v2291_v49 = vpop.eup %2290 }
 0x3eb   : > { %v1677_v48 = vmul.f32 %v2291_v49, %v1663_v54 }
 0x3ed   : > { %v1678_v16 = vpack.c.bf16 %v1677_v48, %v1676_v15 }
 0x3ef   : > { %2118 = vmatmul.mubr.bf16.vlgmr.msra.gmra.mrb[4].mxu1 %v1678_v16 }
 0x4c2   : > { %v1784_v60 = vpop.f32.mrb[4].mxu1 }
 0x4c3   : > { %v1785_v2 = vadd.f32 %v2018_v63, %v1784_v60  ;;  %v2119_v3 = vpop.f32.mrb[5].mxu1 }
 0x4c4   : > { %v1787_v53 = vpop.f32.mrb[6].mxu1 }
 0x4c5   : > { %1791 = vst [vmem:[%s477_s24] sm:$0xff] %v1785_v2  ;;  %v1788_v4 = vadd.f32 %v2018_v63, %v1787_v53  ;;  %v2120_v59 = vpop.f32.mrb[7].mxu1 }
 0x4c7   : > { %1792 = vst [vmem:[%s477_s24 + $0x8] sm:$0xff] %v1788_v4 }
 0x4c8   : > { %2475 = shalt.err (!%p2472_p8)
}
 0x4c9   : > { %s2476_s28 = scalar_lea.hbm %s3192_s13, 256  ;;  %s2480_s21 = scalar_lea.hbm %s3284_s27, 512 }
 0x4ca   : > { %p2477_p6 = scmp.ne.s32.totalorder %s3192_s13, %s2476_s28  ;;  %p2481_p3 = scmp.lt.u32.totalorder %s3192_s13, %s3284_s27 }
 0x4cb   : > { %p2482_p0 = scmp.lt.u32.totalorder %s2480_s21, %s2476_s28  ;;  %p2484_p2 = scmp.lt.u32.totalorder %s2476_s28, %s3192_s13 }
 0x4cc   : > { %p2478_p9 = pnand %p2477_p6, %p3285_p7 }
 0x4cd   : > { %p2483_p5 = por %p2482_p0, %p2481_p3 }
 0x4ce   : > { %p2479_p4 = pneg %p2478_p9 }
 0x4cf   : > { %p2485_p10 = por %p2484_p2, %p2483_p5 }
 0x4d1   : > { %p2486_p1 = pnand %p2485_p10, %p2479_p4 }
 0x4d3   : > { %2489 = shalt.err (!%p2486_p1)
}
 0x4d4   : > { %s2556_s23 = smov 128   ;;  %s2557_s1 = smov 8  }
 0x4d5   : > { %2143 = dma.vmem_to_hbm [thread:$0]  (%p3285_p7), %s3187_s26, 256, %s3192_s13, %s1794_s30, %s2556_s23, %s2556_s23, %s2557_s1  }
 0x4d6 PF: > { %s1822_s12 = sand.u32 1, %s2528_s17   ;;  %p3286_p11 = scmp.ne.s32.totalorder %s3271_s22, 0 }
 0x4d7   : > { %p3287_p12 = scmp.ge.s32.totalorder %s2540_s20, 2  ;;  %s1823_s11 = scalar_lea.sflag [#allocation4], %s1822_s12 }
 0x4d9   : > { %p2166_p13 = pnand %p3287_p12, %p3286_p11 }
 0x4db   : > { %2523 = dma.done.wait (!%p2166_p13), %s1823_s11, 256  }
 0x4dc   : > { %2525 = vsyncadd (!%p2166_p13), %s1823_s11, 4294967040  ;;  %p27_p8 = scmp.ge.s32.totalorder %s2787_s16, 4   ;;  %s3288_s17 = smov %s2532_s18 }
 0x4dd   : > { %s3289_s18 = smov %s2536_s19  ;;  %s3290_s19 = smov %s2799_s14 }
 0x4de   : > { %s3291_s20 = smov %s2787_s16  ;;  %29 = sbr.rel (!%p27_p8) target bundleno = 13 (0xd), region = 129 }
 0x4e5   :  { %1828 = vsyncpa [#allocation3], 1 }
 0x4e6   :  { %1830 = vsyncpa [#allocation3 + $0x1], 1 }
 0x4e7   :  { %1831 = vsyncpa [#allocation6], 1 }
 0x4e8   :  { %1832 = vsyncpa [#allocation9], 1 }
 0x4e9   :  { %1833 = vsyncpa [#allocation12], 1 }
 0x4ea   :  { %1834 = vsyncpa [#allocation4], 1 }
 0x4eb   :  { %1836 = vsyncpa [#allocation4 + $0x1], 1 }

</bundles_post_ra>
